<compile_context>
chip_gen: v7x
topology: tpu7x:2x2x1
jax: 0.10.0
libtpu: 0.0.40
codegen_flags: <defaults>
</compile_context>

<pallas_src>
import functools

import jax
import jax.numpy as jnp
from jax import lax
from jax.experimental import pallas as pl
from jax.experimental.pallas import tpu as pltpu


# ----------------------------------------------------------------------------
# Fused kernel.
#   refs = [x,
#           (wih_fb, whh_bd, b_fb) * num_layers,     # combined per-layer weights
#           f_vec, tw1, tb1, tw2, tb2,                # typ MLP
#           out,                                      # (S, 2H+E)
#           act_scratch (S,2H) f32, xw_scratch (S,8H) f32]
#
#   wih_fb : (d_in, 8H) bf16 = [W_ih_fwd^T | W_ih_bwd^T]
#   whh_bd : (2H, 8H)  bf16 block-diag([W_hh_fwd^T, W_hh_bwd^T])
#   b_fb   : (1, 8H)   f32  = [b_fwd | b_bwd]  (each = b_ih + b_hh)
# ----------------------------------------------------------------------------
def _fused_kernel(*refs, hidden, seq, num_layers):
    H = hidden
    S = seq
    G = 4 * H          # per-direction gate width
    W2H = 2 * H        # bidirectional hidden width

    idx = 0
    x_ref = refs[idx]; idx += 1
    layer_refs = refs[idx: idx + 3 * num_layers]; idx += 3 * num_layers
    f_ref, tw1_ref, tb1_ref, tw2_ref, tb2_ref = refs[idx: idx + 5]; idx += 5
    out_ref = refs[idx]; idx += 1
    act_ref, xw_ref = refs[idx], refs[idx + 1]

    E = tw2_ref.shape[1]

    def cell(gates, c_prev):
        i = jax.nn.sigmoid(gates[:, 0 * H:1 * H])
        f = jax.nn.sigmoid(gates[:, 1 * H:2 * H])
        g = jnp.tanh(gates[:, 2 * H:3 * H])
        o = jax.nn.sigmoid(gates[:, 3 * H:4 * H])
        c_new = f * c_prev + i * g
        h_new = o * jnp.tanh(c_new)
        return h_new, c_new

    # ---- bidirectional multi-layer LSTM, activations VMEM-resident ----------
    for layer in range(num_layers):
        wih_ref, whh_ref, b_ref = layer_refs[3 * layer: 3 * layer + 3]
        src_ref = x_ref if layer == 0 else act_ref

        x_bf = src_ref[...].astype(jnp.bfloat16)
        # Input projection for all timesteps, both directions, in one matmul.
        xw_ref[...] = (
            jnp.dot(x_bf, wih_ref[...], preferred_element_type=jnp.float32)
            + b_ref[...]
        )
        whh_bd = whh_ref[...]          # (2H, 8H) bf16, block-diagonal

        def step(t, carry):
            h, c = carry               # (1, 2H) f32 each: [fwd | bwd]
            # Single recurrent MXU op for both directions.
            rec = jnp.dot(h.astype(jnp.bfloat16), whh_bd,
                          preferred_element_type=jnp.float32)   # (1, 8H)
            gates_f = xw_ref[pl.ds(t, 1), pl.ds(0, G)] + rec[:, 0:G]
            gates_b = xw_ref[pl.ds(S - 1 - t, 1), pl.ds(G, G)] + rec[:, G:2 * G]
            hf, cf = cell(gates_f, c[:, 0:H])
            hb, cb = cell(gates_b, c[:, H:W2H])
            # Forward writes row t, backward writes row S-1-t (no flips).
            act_ref[pl.ds(t, 1), pl.ds(0, H)] = hf
            act_ref[pl.ds(S - 1 - t, 1), pl.ds(H, H)] = hb
            return (jnp.concatenate([hf, hb], axis=1),
                    jnp.concatenate([cf, cb], axis=1))

        init = (jnp.zeros((1, W2H), jnp.float32),
                jnp.zeros((1, W2H), jnp.float32))
        lax.fori_loop(0, S, step, init, unroll=True)

    # ---- TypologicalLanguageEmbed MLP (dropout = identity) ------------------
    h1 = (jnp.dot(f_ref[...].astype(jnp.bfloat16), tw1_ref[...],
                  preferred_element_type=jnp.float32) + tb1_ref[...])
    y = (jnp.dot(h1.astype(jnp.bfloat16), tw2_ref[...],
                 preferred_element_type=jnp.float32) + tb2_ref[...])
    typ = jnp.maximum(y, 0.0)                      # (1, E)

    # ---- final (S, 2H+E) slab written once -----------------------------------
    out_ref[:, 0:W2H] = act_ref[...].astype(out_ref.dtype)
    out_ref[:, W2H:W2H + E] = jnp.broadcast_to(typ, (S, E)).astype(out_ref.dtype)


def lstm_embedding_fused(x, flat_lstm_weights, f_vec, tw1, tb1, tw2, tb2, *, hidden):
    S = x.shape[0]
    num_layers = len(flat_lstm_weights) // 3
    E = tw2.shape[1]
    out_dim = 2 * hidden + E

    operands = [x, *flat_lstm_weights, f_vec, tw1, tb1, tw2, tb2]
    in_specs = [pl.BlockSpec(a.shape, lambda i: (0, 0)) for a in operands]

    kernel = functools.partial(_fused_kernel, hidden=hidden, seq=S,
                               num_layers=num_layers)
    return pl.pallas_call(
        kernel,
        out_shape=jax.ShapeDtypeStruct((S, out_dim), jnp.float32),
        grid=(1,),
        in_specs=in_specs,
        out_specs=pl.BlockSpec((S, out_dim), lambda i: (0, 0)),
        scratch_shapes=[
            pltpu.VMEM((S, 2 * hidden), jnp.float32),   # inter-layer activation
            pltpu.VMEM((S, 8 * hidden), jnp.float32),   # per-layer input projection
        ],
        compiler_params=pltpu.CompilerParams(
            dimension_semantics=("arbitrary",)),
    )(*operands)


# ----------------------------------------------------------------------------
# Parameter construction (deterministic, synthetic) — PyTorch-style layout.
# ----------------------------------------------------------------------------
def init_params(key, *, num_words, num_pos, lstm_layers, word_embed_size,
                pos_embed_size, lstm_hidden_size, typ_embed_size,
                num_typ_features):
    def uni(k, shape, scale=0.1):
        return jax.random.uniform(k, shape, jnp.float32, -scale, scale)

    keys = jax.random.split(key, 8 + 8 * lstm_layers)
    ki = iter(keys)
    p = {
        "word_embed": uni(next(ki), (num_words, word_embed_size), 1.0),
        "pos_embed": uni(next(ki), (num_pos, pos_embed_size), 1.0),
        # TypologicalLanguageEmbed: linear1 (F->F), linear2 (F->E), pre-transposed
        "typ_w1_t": uni(next(ki), (num_typ_features, num_typ_features)),
        "typ_b1": uni(next(ki), (1, num_typ_features)),
        "typ_w2_t": uni(next(ki), (num_typ_features, typ_embed_size)),
        "typ_b2": uni(next(ki), (1, typ_embed_size)),
        "lstm": [],
    }
    H = lstm_hidden_size
    d_in = word_embed_size + pos_embed_size
    for _ in range(lstm_layers):
        layer_p = {}
        for direction in ("fwd", "bwd"):
            layer_p[direction] = {
                "wih_t": uni(next(ki), (d_in, 4 * H)),   # W_ih^T
                "whh_t": uni(next(ki), (H, 4 * H)),      # W_hh^T
                "b": uni(next(ki), (1, 4 * H)),          # b_ih + b_hh
            }
        p["lstm"].append(layer_p)
        d_in = 2 * H
    return p


def _combine_direction_weights(layer_p, hidden):
    """Build fused per-layer weights: [fwd|bwd] input proj, block-diag W_hh."""
    H = hidden
    f, b = layer_p["fwd"], layer_p["bwd"]
    wih = jnp.concatenate([f["wih_t"], b["wih_t"]], axis=1)          # (d_in, 8H)
    whh = jnp.zeros((2 * H, 8 * H), jnp.float32)
    whh = whh.at[:H, :4 * H].set(f["whh_t"])
    whh = whh.at[H:, 4 * H:].set(b["whh_t"])
    bias = jnp.concatenate([f["b"], b["b"]], axis=1)                 # (1, 8H)
    return wih.astype(jnp.bfloat16), whh.astype(jnp.bfloat16), bias


# ----------------------------------------------------------------------------
# Full forward pass (embedding gathers in XLA, everything else in one kernel).
# ----------------------------------------------------------------------------
def lstm_embedding_forward(params, words, pos_tags, typ_feature_vec,
                           *, lstm_hidden_size):
    we = jnp.take(params["word_embed"], words, axis=0)       # (B, S, We)
    pe = jnp.take(params["pos_embed"], pos_tags, axis=0)     # (B, S, Pe)
    emb = jnp.concatenate([we, pe], axis=2)                   # (B, S, We+Pe)
    # nn.Dropout -> identity (eval mode)

    # typ_encode == 'concat' in the reference implies batch size 1.
    x = emb[0]                                                # (S, D_in)

    flat_w = []
    for layer_p in params["lstm"]:
        flat_w.extend(_combine_direction_weights(layer_p, lstm_hidden_size))

    out2d = lstm_embedding_fused(
        x, flat_w, typ_feature_vec,
        params["typ_w1_t"].astype(jnp.bfloat16), params["typ_b1"],
        params["typ_w2_t"].astype(jnp.bfloat16), params["typ_b2"],
        hidden=lstm_hidden_size)                              # (S, 2H+E)

    # final nn.Dropout -> identity (eval mode)
    return out2d[None]                                        # (1, S, 2H+E)


if __name__ == "__main__":
    # Small, module-consistent shapes.
    num_words = 50
    num_pos = 12
    lstm_layers = 2
    word_embed_size = 32
    pos_embed_size = 32
    lstm_hidden_size = 64
    typ_embed_size = 32
    num_typ_features = 64
    batch, seq = 1, 8   # typ_encode='concat' path requires batch == 1

    key = jax.random.PRNGKey(0)
    k_params, k_words, k_pos, k_feat = jax.random.split(key, 4)

    params = init_params(
        k_params,
        num_words=num_words, num_pos=num_pos, lstm_layers=lstm_layers,
        word_embed_size=word_embed_size, pos_embed_size=pos_embed_size,
        lstm_hidden_size=lstm_hidden_size, typ_embed_size=typ_embed_size,
        num_typ_features=num_typ_features,
    )

    words = jax.random.randint(k_words, (batch, seq), 0, num_words, jnp.int32)
    pos_tags = jax.random.randint(k_pos, (batch, seq), 0, num_pos, jnp.int32)
    # Synthetic deterministic stand-in for lang2vec features (binary-ish).
    typ_feature_vec = jax.random.bernoulli(
        k_feat, 0.5, (1, num_typ_features)).astype(jnp.float32)

    out = lstm_embedding_forward(
        params, words, pos_tags, typ_feature_vec,
        lstm_hidden_size=lstm_hidden_size,
    )
    out = jax.block_until_ready(out)
    assert out.shape == (batch, seq, 2 * lstm_hidden_size + typ_embed_size), out.shape
    assert bool(jnp.all(jnp.isfinite(out)))
    print("KERNEL_OK")
</pallas_src>

<mosaic_0001>
module attributes {stable_mosaic.version = 11 : i64} {
  func.func @_fused_kernel(%arg0: i32, %arg1: memref<8x64xf32, #tpu.memory_space<vmem>>, %arg2: memref<64x512xbf16, #tpu.memory_space<vmem>>, %arg3: memref<128x512xbf16, #tpu.memory_space<vmem>>, %arg4: memref<1x512xf32, #tpu.memory_space<vmem>>, %arg5: memref<128x512xbf16, #tpu.memory_space<vmem>>, %arg6: memref<128x512xbf16, #tpu.memory_space<vmem>>, %arg7: memref<1x512xf32, #tpu.memory_space<vmem>>, %arg8: memref<1x64xf32, #tpu.memory_space<vmem>>, %arg9: memref<64x64xbf16, #tpu.memory_space<vmem>>, %arg10: memref<1x64xf32, #tpu.memory_space<vmem>>, %arg11: memref<64x32xbf16, #tpu.memory_space<vmem>>, %arg12: memref<1x32xf32, #tpu.memory_space<vmem>>, %arg13: memref<8x160xf32, #tpu.memory_space<vmem>>, %arg14: memref<8x128xf32, #tpu.memory_space<vmem>>, %arg15: memref<8x512xf32, #tpu.memory_space<vmem>>) attributes {dimension_semantics = [#tpu.dimension_semantics<arbitrary>], iteration_bounds = array<i64: 1>, scalar_prefetch = 0 : i64, scratch_operands = 2 : i64, tpu.core_type = #tpu.core_type<tc>, window_params = [{pipeline_mode = #tpu.pipeline_mode<synchronous>, transform_indices = @transform_0, window_bounds = array<i64: 8, 64>}, {pipeline_mode = #tpu.pipeline_mode<synchronous>, transform_indices = @transform_1, window_bounds = array<i64: 64, 512>}, {pipeline_mode = #tpu.pipeline_mode<synchronous>, transform_indices = @transform_2, window_bounds = array<i64: 128, 512>}, {pipeline_mode = #tpu.pipeline_mode<synchronous>, transform_indices = @transform_3, window_bounds = array<i64: 1, 512>}, {pipeline_mode = #tpu.pipeline_mode<synchronous>, transform_indices = @transform_4, window_bounds = array<i64: 128, 512>}, {pipeline_mode = #tpu.pipeline_mode<synchronous>, transform_indices = @transform_5, window_bounds = array<i64: 128, 512>}, {pipeline_mode = #tpu.pipeline_mode<synchronous>, transform_indices = @transform_6, window_bounds = array<i64: 1, 512>}, {pipeline_mode = #tpu.pipeline_mode<synchronous>, transform_indices = @transform_7, window_bounds = array<i64: 1, 64>}, {pipeline_mode = #tpu.pipeline_mode<synchronous>, transform_indices = @transform_8, window_bounds = array<i64: 64, 64>}, {pipeline_mode = #tpu.pipeline_mode<synchronous>, transform_indices = @transform_9, window_bounds = array<i64: 1, 64>}, {pipeline_mode = #tpu.pipeline_mode<synchronous>, transform_indices = @transform_10, window_bounds = array<i64: 64, 32>}, {pipeline_mode = #tpu.pipeline_mode<synchronous>, transform_indices = @transform_11, window_bounds = array<i64: 1, 32>}, {pipeline_mode = #tpu.pipeline_mode<synchronous>, transform_indices = @transform_12, window_bounds = array<i64: 8, 160>}]} {
    %c0 = arith.constant 0 : index
    %c0_0 = arith.constant 0 : index
    %0 = vector.load %arg1[%c0, %c0_0] : memref<8x64xf32, #tpu.memory_space<vmem>>, vector<8x64xf32>
    %1 = arith.truncf %0 : vector<8x64xf32> to vector<8x64xbf16>
    %c0_1 = arith.constant 0 : index
    %c0_2 = arith.constant 0 : index
    %2 = vector.load %arg2[%c0_1, %c0_2] : memref<64x512xbf16, #tpu.memory_space<vmem>>, vector<64x512xbf16>
    %cst = arith.constant dense<0.000000e+00> : vector<8x512xf32>
    %3 = tpu.matmul %1, %2, %cst {dimension_numbers = #tpu.dot_dimension_numbers<[1], [0], [0], [1], [0, 0, 1, 1], [], []>} : vector<8x64xbf16>, vector<64x512xbf16>, vector<8x512xf32> -> vector<8x512xf32>
    %c0_3 = arith.constant 0 : index
    %c0_4 = arith.constant 0 : index
    %4 = vector.load %arg4[%c0_3, %c0_4] : memref<1x512xf32, #tpu.memory_space<vmem>>, vector<1x512xf32>
    %5 = vector.broadcast %4 : vector<1x512xf32> to vector<8x512xf32>
    %6 = arith.addf %3, %5 : vector<8x512xf32>
    %c0_5 = arith.constant 0 : index
    %c0_6 = arith.constant 0 : index
    %7 = vector.load %arg15[%c0_5, %c0_6] : memref<8x512xf32, #tpu.memory_space<vmem>>, vector<8x512xf32>
    tpu.vector_store %arg15[%c0_5, %c0_6], %6 {strides = array<i32>} : memref<8x512xf32, #tpu.memory_space<vmem>>, vector<8x512xf32>,
    %c0_7 = arith.constant 0 : index
    %c0_8 = arith.constant 0 : index
    %8 = vector.load %arg3[%c0_7, %c0_8] : memref<128x512xbf16, #tpu.memory_space<vmem>>, vector<128x512xbf16>
    %cst_9 = arith.constant 0.000000e+00 : f32
    %9 = vector.broadcast %cst_9 : f32 to vector<1x128xf32>
    %cst_10 = arith.constant 0.000000e+00 : f32
    %10 = vector.broadcast %cst_10 : f32 to vector<1x128xf32>
    %c0_i32 = arith.constant 0 : i32
    %11 = arith.truncf %9 : vector<1x128xf32> to vector<1x128xbf16>
    %cst_11 = arith.constant dense<0.000000e+00> : vector<1x512xf32>
    %12 = tpu.matmul %11, %8, %cst_11 {dimension_numbers = #tpu.dot_dimension_numbers<[1], [0], [0], [1], [0, 0, 1, 1], [], []>} : vector<1x128xbf16>, vector<128x512xbf16>, vector<1x512xf32> -> vector<1x512xf32>
    %13 = arith.index_cast %c0_i32 : i32 to index
    %c0_12 = arith.constant 0 : index
    %14 = vector.load %arg15[%13, %c0_12] : memref<8x512xf32, #tpu.memory_space<vmem>>, vector<1x256xf32>
    %15 = vector.extract_strided_slice %12 {offsets = [0, 0], sizes = [1, 256], strides = [1, 1]} : vector<1x512xf32> to vector<1x256xf32>
    %16 = arith.addf %14, %15 : vector<1x256xf32>
    %c7_i32 = arith.constant 7 : i32
    %17 = arith.subi %c7_i32, %c0_i32 : i32
    %18 = arith.index_cast %17 : i32 to index
    %c256 = arith.constant 256 : index
    %19 = vector.load %arg15[%18, %c256] : memref<8x512xf32, #tpu.memory_space<vmem>>, vector<1x256xf32>
    %20 = vector.extract_strided_slice %12 {offsets = [0, 256], sizes = [1, 256], strides = [1, 1]} : vector<1x512xf32> to vector<1x256xf32>
    %21 = arith.addf %19, %20 : vector<1x256xf32>
    %22 = vector.extract_strided_slice %10 {offsets = [0, 0], sizes = [1, 64], strides = [1, 1]} : vector<1x128xf32> to vector<1x64xf32>
    %23 = vector.extract_strided_slice %16 {offsets = [0, 0], sizes = [1, 64], strides = [1, 1]} : vector<1x256xf32> to vector<1x64xf32>
    %24 = arith.negf %23 : vector<1x64xf32>
    %25 = math.exp %24 : vector<1x64xf32>
    %cst_13 = arith.constant 1.000000e+00 : f32
    %26 = vector.broadcast %cst_13 : f32 to vector<1x64xf32>
    %27 = arith.addf %26, %25 : vector<1x64xf32>
    %28 = arith.divf %26, %27 : vector<1x64xf32>
    %29 = vector.extract_strided_slice %16 {offsets = [0, 64], sizes = [1, 64], strides = [1, 1]} : vector<1x256xf32> to vector<1x64xf32>
    %30 = arith.negf %29 : vector<1x64xf32>
    %31 = math.exp %30 : vector<1x64xf32>
    %cst_14 = arith.constant 1.000000e+00 : f32
    %32 = vector.broadcast %cst_14 : f32 to vector<1x64xf32>
    %33 = arith.addf %32, %31 : vector<1x64xf32>
    %34 = arith.divf %32, %33 : vector<1x64xf32>
    %35 = vector.extract_strided_slice %16 {offsets = [0, 128], sizes = [1, 64], strides = [1, 1]} : vector<1x256xf32> to vector<1x64xf32>
    %36 = math.tanh %35 : vector<1x64xf32>
    %37 = vector.extract_strided_slice %16 {offsets = [0, 192], sizes = [1, 64], strides = [1, 1]} : vector<1x256xf32> to vector<1x64xf32>
    %38 = arith.negf %37 : vector<1x64xf32>
    %39 = math.exp %38 : vector<1x64xf32>
    %cst_15 = arith.constant 1.000000e+00 : f32
    %40 = vector.broadcast %cst_15 : f32 to vector<1x64xf32>
    %41 = arith.addf %40, %39 : vector<1x64xf32>
    %42 = arith.divf %40, %41 : vector<1x64xf32>
    %43 = arith.mulf %34, %22 : vector<1x64xf32>
    %44 = arith.mulf %28, %36 : vector<1x64xf32>
    %45 = arith.addf %43, %44 : vector<1x64xf32>
    %46 = math.tanh %45 : vector<1x64xf32>
    %47 = arith.mulf %42, %46 : vector<1x64xf32>
    %48 = vector.extract_strided_slice %10 {offsets = [0, 64], sizes = [1, 64], strides = [1, 1]} : vector<1x128xf32> to vector<1x64xf32>
    %49 = vector.extract_strided_slice %21 {offsets = [0, 0], sizes = [1, 64], strides = [1, 1]} : vector<1x256xf32> to vector<1x64xf32>
    %50 = arith.negf %49 : vector<1x64xf32>
    %51 = math.exp %50 : vector<1x64xf32>
    %cst_16 = arith.constant 1.000000e+00 : f32
    %52 = vector.broadcast %cst_16 : f32 to vector<1x64xf32>
    %53 = arith.addf %52, %51 : vector<1x64xf32>
    %54 = arith.divf %52, %53 : vector<1x64xf32>
    %55 = vector.extract_strided_slice %21 {offsets = [0, 64], sizes = [1, 64], strides = [1, 1]} : vector<1x256xf32> to vector<1x64xf32>
    %56 = arith.negf %55 : vector<1x64xf32>
    %57 = math.exp %56 : vector<1x64xf32>
    %cst_17 = arith.constant 1.000000e+00 : f32
    %58 = vector.broadcast %cst_17 : f32 to vector<1x64xf32>
    %59 = arith.addf %58, %57 : vector<1x64xf32>
    %60 = arith.divf %58, %59 : vector<1x64xf32>
    %61 = vector.extract_strided_slice %21 {offsets = [0, 128], sizes = [1, 64], strides = [1, 1]} : vector<1x256xf32> to vector<1x64xf32>
    %62 = math.tanh %61 : vector<1x64xf32>
    %63 = vector.extract_strided_slice %21 {offsets = [0, 192], sizes = [1, 64], strides = [1, 1]} : vector<1x256xf32> to vector<1x64xf32>
    %64 = arith.negf %63 : vector<1x64xf32>
    %65 = math.exp %64 : vector<1x64xf32>
    %cst_18 = arith.constant 1.000000e+00 : f32
    %66 = vector.broadcast %cst_18 : f32 to vector<1x64xf32>
    %67 = arith.addf %66, %65 : vector<1x64xf32>
    %68 = arith.divf %66, %67 : vector<1x64xf32>
    %69 = arith.mulf %60, %48 : vector<1x64xf32>
    %70 = arith.mulf %54, %62 : vector<1x64xf32>
    %71 = arith.addf %69, %70 : vector<1x64xf32>
    %72 = math.tanh %71 : vector<1x64xf32>
    %73 = arith.mulf %68, %72 : vector<1x64xf32>
    %74 = arith.index_cast %c0_i32 : i32 to index
    %c0_19 = arith.constant 0 : index
    %75 = vector.load %arg14[%74, %c0_19] : memref<8x128xf32, #tpu.memory_space<vmem>>, vector<1x64xf32>
    tpu.vector_store %arg14[%74, %c0_19], %47 {strides = array<i32>} : memref<8x128xf32, #tpu.memory_space<vmem>>, vector<1x64xf32>,
    %c7_i32_20 = arith.constant 7 : i32
    %76 = arith.subi %c7_i32_20, %c0_i32 : i32
    %77 = arith.index_cast %76 : i32 to index
    %c64 = arith.constant 64 : index
    %78 = vector.load %arg14[%77, %c64] : memref<8x128xf32, #tpu.memory_space<vmem>>, vector<1x64xf32>
    tpu.vector_store %arg14[%77, %c64], %73 {strides = array<i32>} : memref<8x128xf32, #tpu.memory_space<vmem>>, vector<1x64xf32>,
    %79 = tpu.concatenate %47, %73 in 1 : vector<1x64xf32>, vector<1x64xf32> -> vector<1x128xf32>
    %80 = tpu.concatenate %45, %71 in 1 : vector<1x64xf32>, vector<1x64xf32> -> vector<1x128xf32>
    %c1_i32 = arith.constant 1 : i32
    %81 = arith.truncf %79 : vector<1x128xf32> to vector<1x128xbf16>
    %cst_21 = arith.constant dense<0.000000e+00> : vector<1x512xf32>
    %82 = tpu.matmul %81, %8, %cst_21 {dimension_numbers = #tpu.dot_dimension_numbers<[1], [0], [0], [1], [0, 0, 1, 1], [], []>} : vector<1x128xbf16>, vector<128x512xbf16>, vector<1x512xf32> -> vector<1x512xf32>
    %83 = arith.index_cast %c1_i32 : i32 to index
    %c0_22 = arith.constant 0 : index
    %84 = vector.load %arg15[%83, %c0_22] : memref<8x512xf32, #tpu.memory_space<vmem>>, vector<1x256xf32>
    %85 = vector.extract_strided_slice %82 {offsets = [0, 0], sizes = [1, 256], strides = [1, 1]} : vector<1x512xf32> to vector<1x256xf32>
    %86 = arith.addf %84, %85 : vector<1x256xf32>
    %c7_i32_23 = arith.constant 7 : i32
    %87 = arith.subi %c7_i32_23, %c1_i32 : i32
    %88 = arith.index_cast %87 : i32 to index
    %c256_24 = arith.constant 256 : index
    %89 = vector.load %arg15[%88, %c256_24] : memref<8x512xf32, #tpu.memory_space<vmem>>, vector<1x256xf32>
    %90 = vector.extract_strided_slice %82 {offsets = [0, 256], sizes = [1, 256], strides = [1, 1]} : vector<1x512xf32> to vector<1x256xf32>
    %91 = arith.addf %89, %90 : vector<1x256xf32>
    %92 = vector.extract_strided_slice %80 {offsets = [0, 0], sizes = [1, 64], strides = [1, 1]} : vector<1x128xf32> to vector<1x64xf32>
    %93 = vector.extract_strided_slice %86 {offsets = [0, 0], sizes = [1, 64], strides = [1, 1]} : vector<1x256xf32> to vector<1x64xf32>
    %94 = arith.negf %93 : vector<1x64xf32>
    %95 = math.exp %94 : vector<1x64xf32>
    %cst_25 = arith.constant 1.000000e+00 : f32
    %96 = vector.broadcast %cst_25 : f32 to vector<1x64xf32>
    %97 = arith.addf %96, %95 : vector<1x64xf32>
    %98 = arith.divf %96, %97 : vector<1x64xf32>
    %99 = vector.extract_strided_slice %86 {offsets = [0, 64], sizes = [1, 64], strides = [1, 1]} : vector<1x256xf32> to vector<1x64xf32>
    %100 = arith.negf %99 : vector<1x64xf32>
    %101 = math.exp %100 : vector<1x64xf32>
    %cst_26 = arith.constant 1.000000e+00 : f32
    %102 = vector.broadcast %cst_26 : f32 to vector<1x64xf32>
    %103 = arith.addf %102, %101 : vector<1x64xf32>
    %104 = arith.divf %102, %103 : vector<1x64xf32>
    %105 = vector.extract_strided_slice %86 {offsets = [0, 128], sizes = [1, 64], strides = [1, 1]} : vector<1x256xf32> to vector<1x64xf32>
    %106 = math.tanh %105 : vector<1x64xf32>
    %107 = vector.extract_strided_slice %86 {offsets = [0, 192], sizes = [1, 64], strides = [1, 1]} : vector<1x256xf32> to vector<1x64xf32>
    %108 = arith.negf %107 : vector<1x64xf32>
    %109 = math.exp %108 : vector<1x64xf32>
    %cst_27 = arith.constant 1.000000e+00 : f32
    %110 = vector.broadcast %cst_27 : f32 to vector<1x64xf32>
    %111 = arith.addf %110, %109 : vector<1x64xf32>
    %112 = arith.divf %110, %111 : vector<1x64xf32>
    %113 = arith.mulf %104, %92 : vector<1x64xf32>
    %114 = arith.mulf %98, %106 : vector<1x64xf32>
    %115 = arith.addf %113, %114 : vector<1x64xf32>
    %116 = math.tanh %115 : vector<1x64xf32>
    %117 = arith.mulf %112, %116 : vector<1x64xf32>
    %118 = vector.extract_strided_slice %80 {offsets = [0, 64], sizes = [1, 64], strides = [1, 1]} : vector<1x128xf32> to vector<1x64xf32>
    %119 = vector.extract_strided_slice %91 {offsets = [0, 0], sizes = [1, 64], strides = [1, 1]} : vector<1x256xf32> to vector<1x64xf32>
    %120 = arith.negf %119 : vector<1x64xf32>
    %121 = math.exp %120 : vector<1x64xf32>
    %cst_28 = arith.constant 1.000000e+00 : f32
    %122 = vector.broadcast %cst_28 : f32 to vector<1x64xf32>
    %123 = arith.addf %122, %121 : vector<1x64xf32>
    %124 = arith.divf %122, %123 : vector<1x64xf32>
    %125 = vector.extract_strided_slice %91 {offsets = [0, 64], sizes = [1, 64], strides = [1, 1]} : vector<1x256xf32> to vector<1x64xf32>
    %126 = arith.negf %125 : vector<1x64xf32>
    %127 = math.exp %126 : vector<1x64xf32>
    %cst_29 = arith.constant 1.000000e+00 : f32
    %128 = vector.broadcast %cst_29 : f32 to vector<1x64xf32>
    %129 = arith.addf %128, %127 : vector<1x64xf32>
    %130 = arith.divf %128, %129 : vector<1x64xf32>
    %131 = vector.extract_strided_slice %91 {offsets = [0, 128], sizes = [1, 64], strides = [1, 1]} : vector<1x256xf32> to vector<1x64xf32>
    %132 = math.tanh %131 : vector<1x64xf32>
    %133 = vector.extract_strided_slice %91 {offsets = [0, 192], sizes = [1, 64], strides = [1, 1]} : vector<1x256xf32> to vector<1x64xf32>
    %134 = arith.negf %133 : vector<1x64xf32>
    %135 = math.exp %134 : vector<1x64xf32>
    %cst_30 = arith.constant 1.000000e+00 : f32
    %136 = vector.broadcast %cst_30 : f32 to vector<1x64xf32>
    %137 = arith.addf %136, %135 : vector<1x64xf32>
    %138 = arith.divf %136, %137 : vector<1x64xf32>
    %139 = arith.mulf %130, %118 : vector<1x64xf32>
    %140 = arith.mulf %124, %132 : vector<1x64xf32>
    %141 = arith.addf %139, %140 : vector<1x64xf32>
    %142 = math.tanh %141 : vector<1x64xf32>
    %143 = arith.mulf %138, %142 : vector<1x64xf32>
    %144 = arith.index_cast %c1_i32 : i32 to index
    %c0_31 = arith.constant 0 : index
    %145 = vector.load %arg14[%144, %c0_31] : memref<8x128xf32, #tpu.memory_space<vmem>>, vector<1x64xf32>
    tpu.vector_store %arg14[%144, %c0_31], %117 {strides = array<i32>} : memref<8x128xf32, #tpu.memory_space<vmem>>, vector<1x64xf32>,
    %c7_i32_32 = arith.constant 7 : i32
    %146 = arith.subi %c7_i32_32, %c1_i32 : i32
    %147 = arith.index_cast %146 : i32 to index
    %c64_33 = arith.constant 64 : index
    %148 = vector.load %arg14[%147, %c64_33] : memref<8x128xf32, #tpu.memory_space<vmem>>, vector<1x64xf32>
    tpu.vector_store %arg14[%147, %c64_33], %143 {strides = array<i32>} : memref<8x128xf32, #tpu.memory_space<vmem>>, vector<1x64xf32>,
    %149 = tpu.concatenate %117, %143 in 1 : vector<1x64xf32>, vector<1x64xf32> -> vector<1x128xf32>
    %150 = tpu.concatenate %115, %141 in 1 : vector<1x64xf32>, vector<1x64xf32> -> vector<1x128xf32>
    %c2_i32 = arith.constant 2 : i32
    %151 = arith.truncf %149 : vector<1x128xf32> to vector<1x128xbf16>
    %cst_34 = arith.constant dense<0.000000e+00> : vector<1x512xf32>
    %152 = tpu.matmul %151, %8, %cst_34 {dimension_numbers = #tpu.dot_dimension_numbers<[1], [0], [0], [1], [0, 0, 1, 1], [], []>} : vector<1x128xbf16>, vector<128x512xbf16>, vector<1x512xf32> -> vector<1x512xf32>
    %153 = arith.index_cast %c2_i32 : i32 to index
    %c0_35 = arith.constant 0 : index
    %154 = vector.load %arg15[%153, %c0_35] : memref<8x512xf32, #tpu.memory_space<vmem>>, vector<1x256xf32>
    %155 = vector.extract_strided_slice %152 {offsets = [0, 0], sizes = [1, 256], strides = [1, 1]} : vector<1x512xf32> to vector<1x256xf32>
    %156 = arith.addf %154, %155 : vector<1x256xf32>
    %c7_i32_36 = arith.constant 7 : i32
    %157 = arith.subi %c7_i32_36, %c2_i32 : i32
    %158 = arith.index_cast %157 : i32 to index
    %c256_37 = arith.constant 256 : index
    %159 = vector.load %arg15[%158, %c256_37] : memref<8x512xf32, #tpu.memory_space<vmem>>, vector<1x256xf32>
    %160 = vector.extract_strided_slice %152 {offsets = [0, 256], sizes = [1, 256], strides = [1, 1]} : vector<1x512xf32> to vector<1x256xf32>
    %161 = arith.addf %159, %160 : vector<1x256xf32>
    %162 = vector.extract_strided_slice %150 {offsets = [0, 0], sizes = [1, 64], strides = [1, 1]} : vector<1x128xf32> to vector<1x64xf32>
    %163 = vector.extract_strided_slice %156 {offsets = [0, 0], sizes = [1, 64], strides = [1, 1]} : vector<1x256xf32> to vector<1x64xf32>
    %164 = arith.negf %163 : vector<1x64xf32>
    %165 = math.exp %164 : vector<1x64xf32>
    %cst_38 = arith.constant 1.000000e+00 : f32
    %166 = vector.broadcast %cst_38 : f32 to vector<1x64xf32>
    %167 = arith.addf %166, %165 : vector<1x64xf32>
    %168 = arith.divf %166, %167 : vector<1x64xf32>
    %169 = vector.extract_strided_slice %156 {offsets = [0, 64], sizes = [1, 64], strides = [1, 1]} : vector<1x256xf32> to vector<1x64xf32>
    %170 = arith.negf %169 : vector<1x64xf32>
    %171 = math.exp %170 : vector<1x64xf32>
    %cst_39 = arith.constant 1.000000e+00 : f32
    %172 = vector.broadcast %cst_39 : f32 to vector<1x64xf32>
    %173 = arith.addf %172, %171 : vector<1x64xf32>
    %174 = arith.divf %172, %173 : vector<1x64xf32>
    %175 = vector.extract_strided_slice %156 {offsets = [0, 128], sizes = [1, 64], strides = [1, 1]} : vector<1x256xf32> to vector<1x64xf32>
    %176 = math.tanh %175 : vector<1x64xf32>
    %177 = vector.extract_strided_slice %156 {offsets = [0, 192], sizes = [1, 64], strides = [1, 1]} : vector<1x256xf32> to vector<1x64xf32>
    %178 = arith.negf %177 : vector<1x64xf32>
    %179 = math.exp %178 : vector<1x64xf32>
    %cst_40 = arith.constant 1.000000e+00 : f32
    %180 = vector.broadcast %cst_40 : f32 to vector<1x64xf32>
    %181 = arith.addf %180, %179 : vector<1x64xf32>
    %182 = arith.divf %180, %181 : vector<1x64xf32>
    %183 = arith.mulf %174, %162 : vector<1x64xf32>
    %184 = arith.mulf %168, %176 : vector<1x64xf32>
    %185 = arith.addf %183, %184 : vector<1x64xf32>
    %186 = math.tanh %185 : vector<1x64xf32>
    %187 = arith.mulf %182, %186 : vector<1x64xf32>
    %188 = vector.extract_strided_slice %150 {offsets = [0, 64], sizes = [1, 64], strides = [1, 1]} : vector<1x128xf32> to vector<1x64xf32>
    %189 = vector.extract_strided_slice %161 {offsets = [0, 0], sizes = [1, 64], strides = [1, 1]} : vector<1x256xf32> to vector<1x64xf32>
    %190 = arith.negf %189 : vector<1x64xf32>
    %191 = math.exp %190 : vector<1x64xf32>
    %cst_41 = arith.constant 1.000000e+00 : f32
    %192 = vector.broadcast %cst_41 : f32 to vector<1x64xf32>
    %193 = arith.addf %192, %191 : vector<1x64xf32>
    %194 = arith.divf %192, %193 : vector<1x64xf32>
    %195 = vector.extract_strided_slice %161 {offsets = [0, 64], sizes = [1, 64], strides = [1, 1]} : vector<1x256xf32> to vector<1x64xf32>
    %196 = arith.negf %195 : vector<1x64xf32>
    %197 = math.exp %196 : vector<1x64xf32>
    %cst_42 = arith.constant 1.000000e+00 : f32
    %198 = vector.broadcast %cst_42 : f32 to vector<1x64xf32>
    %199 = arith.addf %198, %197 : vector<1x64xf32>
    %200 = arith.divf %198, %199 : vector<1x64xf32>
    %201 = vector.extract_strided_slice %161 {offsets = [0, 128], sizes = [1, 64], strides = [1, 1]} : vector<1x256xf32> to vector<1x64xf32>
    %202 = math.tanh %201 : vector<1x64xf32>
    %203 = vector.extract_strided_slice %161 {offsets = [0, 192], sizes = [1, 64], strides = [1, 1]} : vector<1x256xf32> to vector<1x64xf32>
    %204 = arith.negf %203 : vector<1x64xf32>
    %205 = math.exp %204 : vector<1x64xf32>
    %cst_43 = arith.constant 1.000000e+00 : f32
    %206 = vector.broadcast %cst_43 : f32 to vector<1x64xf32>
    %207 = arith.addf %206, %205 : vector<1x64xf32>
    %208 = arith.divf %206, %207 : vector<1x64xf32>
    %209 = arith.mulf %200, %188 : vector<1x64xf32>
    %210 = arith.mulf %194, %202 : vector<1x64xf32>
    %211 = arith.addf %209, %210 : vector<1x64xf32>
    %212 = math.tanh %211 : vector<1x64xf32>
    %213 = arith.mulf %208, %212 : vector<1x64xf32>
    %214 = arith.index_cast %c2_i32 : i32 to index
    %c0_44 = arith.constant 0 : index
    %215 = vector.load %arg14[%214, %c0_44] : memref<8x128xf32, #tpu.memory_space<vmem>>, vector<1x64xf32>
    tpu.vector_store %arg14[%214, %c0_44], %187 {strides = array<i32>} : memref<8x128xf32, #tpu.memory_space<vmem>>, vector<1x64xf32>,
    %c7_i32_45 = arith.constant 7 : i32
    %216 = arith.subi %c7_i32_45, %c2_i32 : i32
    %217 = arith.index_cast %216 : i32 to index
    %c64_46 = arith.constant 64 : index
    %218 = vector.load %arg14[%217, %c64_46] : memref<8x128xf32, #tpu.memory_space<vmem>>, vector<1x64xf32>
    tpu.vector_store %arg14[%217, %c64_46], %213 {strides = array<i32>} : memref<8x128xf32, #tpu.memory_space<vmem>>, vector<1x64xf32>,
    %219 = tpu.concatenate %187, %213 in 1 : vector<1x64xf32>, vector<1x64xf32> -> vector<1x128xf32>
    %220 = tpu.concatenate %185, %211 in 1 : vector<1x64xf32>, vector<1x64xf32> -> vector<1x128xf32>
    %c3_i32 = arith.constant 3 : i32
    %221 = arith.truncf %219 : vector<1x128xf32> to vector<1x128xbf16>
    %cst_47 = arith.constant dense<0.000000e+00> : vector<1x512xf32>
    %222 = tpu.matmul %221, %8, %cst_47 {dimension_numbers = #tpu.dot_dimension_numbers<[1], [0], [0], [1], [0, 0, 1, 1], [], []>} : vector<1x128xbf16>, vector<128x512xbf16>, vector<1x512xf32> -> vector<1x512xf32>
    %223 = arith.index_cast %c3_i32 : i32 to index
    %c0_48 = arith.constant 0 : index
    %224 = vector.load %arg15[%223, %c0_48] : memref<8x512xf32, #tpu.memory_space<vmem>>, vector<1x256xf32>
    %225 = vector.extract_strided_slice %222 {offsets = [0, 0], sizes = [1, 256], strides = [1, 1]} : vector<1x512xf32> to vector<1x256xf32>
    %226 = arith.addf %224, %225 : vector<1x256xf32>
    %c7_i32_49 = arith.constant 7 : i32
    %227 = arith.subi %c7_i32_49, %c3_i32 : i32
    %228 = arith.index_cast %227 : i32 to index
    %c256_50 = arith.constant 256 : index
    %229 = vector.load %arg15[%228, %c256_50] : memref<8x512xf32, #tpu.memory_space<vmem>>, vector<1x256xf32>
    %230 = vector.extract_strided_slice %222 {offsets = [0, 256], sizes = [1, 256], strides = [1, 1]} : vector<1x512xf32> to vector<1x256xf32>
    %231 = arith.addf %229, %230 : vector<1x256xf32>
    %232 = vector.extract_strided_slice %220 {offsets = [0, 0], sizes = [1, 64], strides = [1, 1]} : vector<1x128xf32> to vector<1x64xf32>
    %233 = vector.extract_strided_slice %226 {offsets = [0, 0], sizes = [1, 64], strides = [1, 1]} : vector<1x256xf32> to vector<1x64xf32>
    %234 = arith.negf %233 : vector<1x64xf32>
    %235 = math.exp %234 : vector<1x64xf32>
    %cst_51 = arith.constant 1.000000e+00 : f32
    %236 = vector.broadcast %cst_51 : f32 to vector<1x64xf32>
    %237 = arith.addf %236, %235 : vector<1x64xf32>
    %238 = arith.divf %236, %237 : vector<1x64xf32>
    %239 = vector.extract_strided_slice %226 {offsets = [0, 64], sizes = [1, 64], strides = [1, 1]} : vector<1x256xf32> to vector<1x64xf32>
    %240 = arith.negf %239 : vector<1x64xf32>
    %241 = math.exp %240 : vector<1x64xf32>
    %cst_52 = arith.constant 1.000000e+00 : f32
    %242 = vector.broadcast %cst_52 : f32 to vector<1x64xf32>
    %243 = arith.addf %242, %241 : vector<1x64xf32>
    %244 = arith.divf %242, %243 : vector<1x64xf32>
    %245 = vector.extract_strided_slice %226 {offsets = [0, 128], sizes = [1, 64], strides = [1, 1]} : vector<1x256xf32> to vector<1x64xf32>
    %246 = math.tanh %245 : vector<1x64xf32>
    %247 = vector.extract_strided_slice %226 {offsets = [0, 192], sizes = [1, 64], strides = [1, 1]} : vector<1x256xf32> to vector<1x64xf32>
    %248 = arith.negf %247 : vector<1x64xf32>
    %249 = math.exp %248 : vector<1x64xf32>
    %cst_53 = arith.constant 1.000000e+00 : f32
    %250 = vector.broadcast %cst_53 : f32 to vector<1x64xf32>
    %251 = arith.addf %250, %249 : vector<1x64xf32>
    %252 = arith.divf %250, %251 : vector<1x64xf32>
    %253 = arith.mulf %244, %232 : vector<1x64xf32>
    %254 = arith.mulf %238, %246 : vector<1x64xf32>
    %255 = arith.addf %253, %254 : vector<1x64xf32>
    %256 = math.tanh %255 : vector<1x64xf32>
    %257 = arith.mulf %252, %256 : vector<1x64xf32>
    %258 = vector.extract_strided_slice %220 {offsets = [0, 64], sizes = [1, 64], strides = [1, 1]} : vector<1x128xf32> to vector<1x64xf32>
    %259 = vector.extract_strided_slice %231 {offsets = [0, 0], sizes = [1, 64], strides = [1, 1]} : vector<1x256xf32> to vector<1x64xf32>
    %260 = arith.negf %259 : vector<1x64xf32>
    %261 = math.exp %260 : vector<1x64xf32>
    %cst_54 = arith.constant 1.000000e+00 : f32
    %262 = vector.broadcast %cst_54 : f32 to vector<1x64xf32>
    %263 = arith.addf %262, %261 : vector<1x64xf32>
    %264 = arith.divf %262, %263 : vector<1x64xf32>
    %265 = vector.extract_strided_slice %231 {offsets = [0, 64], sizes = [1, 64], strides = [1, 1]} : vector<1x256xf32> to vector<1x64xf32>
    %266 = arith.negf %265 : vector<1x64xf32>
    %267 = math.exp %266 : vector<1x64xf32>
    %cst_55 = arith.constant 1.000000e+00 : f32
    %268 = vector.broadcast %cst_55 : f32 to vector<1x64xf32>
    %269 = arith.addf %268, %267 : vector<1x64xf32>
    %270 = arith.divf %268, %269 : vector<1x64xf32>
    %271 = vector.extract_strided_slice %231 {offsets = [0, 128], sizes = [1, 64], strides = [1, 1]} : vector<1x256xf32> to vector<1x64xf32>
    %272 = math.tanh %271 : vector<1x64xf32>
    %273 = vector.extract_strided_slice %231 {offsets = [0, 192], sizes = [1, 64], strides = [1, 1]} : vector<1x256xf32> to vector<1x64xf32>
    %274 = arith.negf %273 : vector<1x64xf32>
    %275 = math.exp %274 : vector<1x64xf32>
    %cst_56 = arith.constant 1.000000e+00 : f32
    %276 = vector.broadcast %cst_56 : f32 to vector<1x64xf32>
    %277 = arith.addf %276, %275 : vector<1x64xf32>
    %278 = arith.divf %276, %277 : vector<1x64xf32>
    %279 = arith.mulf %270, %258 : vector<1x64xf32>
    %280 = arith.mulf %264, %272 : vector<1x64xf32>
    %281 = arith.addf %279, %280 : vector<1x64xf32>
    %282 = math.tanh %281 : vector<1x64xf32>
    %283 = arith.mulf %278, %282 : vector<1x64xf32>
    %284 = arith.index_cast %c3_i32 : i32 to index
    %c0_57 = arith.constant 0 : index
    %285 = vector.load %arg14[%284, %c0_57] : memref<8x128xf32, #tpu.memory_space<vmem>>, vector<1x64xf32>
    tpu.vector_store %arg14[%284, %c0_57], %257 {strides = array<i32>} : memref<8x128xf32, #tpu.memory_space<vmem>>, vector<1x64xf32>,
    %c7_i32_58 = arith.constant 7 : i32
    %286 = arith.subi %c7_i32_58, %c3_i32 : i32
    %287 = arith.index_cast %286 : i32 to index
    %c64_59 = arith.constant 64 : index
    %288 = vector.load %arg14[%287, %c64_59] : memref<8x128xf32, #tpu.memory_space<vmem>>, vector<1x64xf32>
    tpu.vector_store %arg14[%287, %c64_59], %283 {strides = array<i32>} : memref<8x128xf32, #tpu.memory_space<vmem>>, vector<1x64xf32>,
    %289 = tpu.concatenate %257, %283 in 1 : vector<1x64xf32>, vector<1x64xf32> -> vector<1x128xf32>
    %290 = tpu.concatenate %255, %281 in 1 : vector<1x64xf32>, vector<1x64xf32> -> vector<1x128xf32>
    %c4_i32 = arith.constant 4 : i32
    %291 = arith.truncf %289 : vector<1x128xf32> to vector<1x128xbf16>
    %cst_60 = arith.constant dense<0.000000e+00> : vector<1x512xf32>
    %292 = tpu.matmul %291, %8, %cst_60 {dimension_numbers = #tpu.dot_dimension_numbers<[1], [0], [0], [1], [0, 0, 1, 1], [], []>} : vector<1x128xbf16>, vector<128x512xbf16>, vector<1x512xf32> -> vector<1x512xf32>
    %293 = arith.index_cast %c4_i32 : i32 to index
    %c0_61 = arith.constant 0 : index
    %294 = vector.load %arg15[%293, %c0_61] : memref<8x512xf32, #tpu.memory_space<vmem>>, vector<1x256xf32>
    %295 = vector.extract_strided_slice %292 {offsets = [0, 0], sizes = [1, 256], strides = [1, 1]} : vector<1x512xf32> to vector<1x256xf32>
    %296 = arith.addf %294, %295 : vector<1x256xf32>
    %c7_i32_62 = arith.constant 7 : i32
    %297 = arith.subi %c7_i32_62, %c4_i32 : i32
    %298 = arith.index_cast %297 : i32 to index
    %c256_63 = arith.constant 256 : index
    %299 = vector.load %arg15[%298, %c256_63] : memref<8x512xf32, #tpu.memory_space<vmem>>, vector<1x256xf32>
    %300 = vector.extract_strided_slice %292 {offsets = [0, 256], sizes = [1, 256], strides = [1, 1]} : vector<1x512xf32> to vector<1x256xf32>
    %301 = arith.addf %299, %300 : vector<1x256xf32>
    %302 = vector.extract_strided_slice %290 {offsets = [0, 0], sizes = [1, 64], strides = [1, 1]} : vector<1x128xf32> to vector<1x64xf32>
    %303 = vector.extract_strided_slice %296 {offsets = [0, 0], sizes = [1, 64], strides = [1, 1]} : vector<1x256xf32> to vector<1x64xf32>
    %304 = arith.negf %303 : vector<1x64xf32>
    %305 = math.exp %304 : vector<1x64xf32>
    %cst_64 = arith.constant 1.000000e+00 : f32
    %306 = vector.broadcast %cst_64 : f32 to vector<1x64xf32>
    %307 = arith.addf %306, %305 : vector<1x64xf32>
    %308 = arith.divf %306, %307 : vector<1x64xf32>
    %309 = vector.extract_strided_slice %296 {offsets = [0, 64], sizes = [1, 64], strides = [1, 1]} : vector<1x256xf32> to vector<1x64xf32>
    %310 = arith.negf %309 : vector<1x64xf32>
    %311 = math.exp %310 : vector<1x64xf32>
    %cst_65 = arith.constant 1.000000e+00 : f32
    %312 = vector.broadcast %cst_65 : f32 to vector<1x64xf32>
    %313 = arith.addf %312, %311 : vector<1x64xf32>
    %314 = arith.divf %312, %313 : vector<1x64xf32>
    %315 = vector.extract_strided_slice %296 {offsets = [0, 128], sizes = [1, 64], strides = [1, 1]} : vector<1x256xf32> to vector<1x64xf32>
    %316 = math.tanh %315 : vector<1x64xf32>
    %317 = vector.extract_strided_slice %296 {offsets = [0, 192], sizes = [1, 64], strides = [1, 1]} : vector<1x256xf32> to vector<1x64xf32>
    %318 = arith.negf %317 : vector<1x64xf32>
    %319 = math.exp %318 : vector<1x64xf32>
    %cst_66 = arith.constant 1.000000e+00 : f32
    %320 = vector.broadcast %cst_66 : f32 to vector<1x64xf32>
    %321 = arith.addf %320, %319 : vector<1x64xf32>
    %322 = arith.divf %320, %321 : vector<1x64xf32>
    %323 = arith.mulf %314, %302 : vector<1x64xf32>
    %324 = arith.mulf %308, %316 : vector<1x64xf32>
    %325 = arith.addf %323, %324 : vector<1x64xf32>
    %326 = math.tanh %325 : vector<1x64xf32>
    %327 = arith.mulf %322, %326 : vector<1x64xf32>
    %328 = vector.extract_strided_slice %290 {offsets = [0, 64], sizes = [1, 64], strides = [1, 1]} : vector<1x128xf32> to vector<1x64xf32>
    %329 = vector.extract_strided_slice %301 {offsets = [0, 0], sizes = [1, 64], strides = [1, 1]} : vector<1x256xf32> to vector<1x64xf32>
    %330 = arith.negf %329 : vector<1x64xf32>
    %331 = math.exp %330 : vector<1x64xf32>
    %cst_67 = arith.constant 1.000000e+00 : f32
    %332 = vector.broadcast %cst_67 : f32 to vector<1x64xf32>
    %333 = arith.addf %332, %331 : vector<1x64xf32>
    %334 = arith.divf %332, %333 : vector<1x64xf32>
    %335 = vector.extract_strided_slice %301 {offsets = [0, 64], sizes = [1, 64], strides = [1, 1]} : vector<1x256xf32> to vector<1x64xf32>
    %336 = arith.negf %335 : vector<1x64xf32>
    %337 = math.exp %336 : vector<1x64xf32>
    %cst_68 = arith.constant 1.000000e+00 : f32
    %338 = vector.broadcast %cst_68 : f32 to vector<1x64xf32>
    %339 = arith.addf %338, %337 : vector<1x64xf32>
    %340 = arith.divf %338, %339 : vector<1x64xf32>
    %341 = vector.extract_strided_slice %301 {offsets = [0, 128], sizes = [1, 64], strides = [1, 1]} : vector<1x256xf32> to vector<1x64xf32>
    %342 = math.tanh %341 : vector<1x64xf32>
    %343 = vector.extract_strided_slice %301 {offsets = [0, 192], sizes = [1, 64], strides = [1, 1]} : vector<1x256xf32> to vector<1x64xf32>
    %344 = arith.negf %343 : vector<1x64xf32>
    %345 = math.exp %344 : vector<1x64xf32>
    %cst_69 = arith.constant 1.000000e+00 : f32
    %346 = vector.broadcast %cst_69 : f32 to vector<1x64xf32>
    %347 = arith.addf %346, %345 : vector<1x64xf32>
    %348 = arith.divf %346, %347 : vector<1x64xf32>
    %349 = arith.mulf %340, %328 : vector<1x64xf32>
    %350 = arith.mulf %334, %342 : vector<1x64xf32>
    %351 = arith.addf %349, %350 : vector<1x64xf32>
    %352 = math.tanh %351 : vector<1x64xf32>
    %353 = arith.mulf %348, %352 : vector<1x64xf32>
    %354 = arith.index_cast %c4_i32 : i32 to index
    %c0_70 = arith.constant 0 : index
    %355 = vector.load %arg14[%354, %c0_70] : memref<8x128xf32, #tpu.memory_space<vmem>>, vector<1x64xf32>
    tpu.vector_store %arg14[%354, %c0_70], %327 {strides = array<i32>} : memref<8x128xf32, #tpu.memory_space<vmem>>, vector<1x64xf32>,
    %c7_i32_71 = arith.constant 7 : i32
    %356 = arith.subi %c7_i32_71, %c4_i32 : i32
    %357 = arith.index_cast %356 : i32 to index
    %c64_72 = arith.constant 64 : index
    %358 = vector.load %arg14[%357, %c64_72] : memref<8x128xf32, #tpu.memory_space<vmem>>, vector<1x64xf32>
    tpu.vector_store %arg14[%357, %c64_72], %353 {strides = array<i32>} : memref<8x128xf32, #tpu.memory_space<vmem>>, vector<1x64xf32>,
    %359 = tpu.concatenate %327, %353 in 1 : vector<1x64xf32>, vector<1x64xf32> -> vector<1x128xf32>
    %360 = tpu.concatenate %325, %351 in 1 : vector<1x64xf32>, vector<1x64xf32> -> vector<1x128xf32>
    %c5_i32 = arith.constant 5 : i32
    %361 = arith.truncf %359 : vector<1x128xf32> to vector<1x128xbf16>
    %cst_73 = arith.constant dense<0.000000e+00> : vector<1x512xf32>
    %362 = tpu.matmul %361, %8, %cst_73 {dimension_numbers = #tpu.dot_dimension_numbers<[1], [0], [0], [1], [0, 0, 1, 1], [], []>} : vector<1x128xbf16>, vector<128x512xbf16>, vector<1x512xf32> -> vector<1x512xf32>
    %363 = arith.index_cast %c5_i32 : i32 to index
    %c0_74 = arith.constant 0 : index
    %364 = vector.load %arg15[%363, %c0_74] : memref<8x512xf32, #tpu.memory_space<vmem>>, vector<1x256xf32>
    %365 = vector.extract_strided_slice %362 {offsets = [0, 0], sizes = [1, 256], strides = [1, 1]} : vector<1x512xf32> to vector<1x256xf32>
    %366 = arith.addf %364, %365 : vector<1x256xf32>
    %c7_i32_75 = arith.constant 7 : i32
    %367 = arith.subi %c7_i32_75, %c5_i32 : i32
    %368 = arith.index_cast %367 : i32 to index
    %c256_76 = arith.constant 256 : index
    %369 = vector.load %arg15[%368, %c256_76] : memref<8x512xf32, #tpu.memory_space<vmem>>, vector<1x256xf32>
    %370 = vector.extract_strided_slice %362 {offsets = [0, 256], sizes = [1, 256], strides = [1, 1]} : vector<1x512xf32> to vector<1x256xf32>
    %371 = arith.addf %369, %370 : vector<1x256xf32>
    %372 = vector.extract_strided_slice %360 {offsets = [0, 0], sizes = [1, 64], strides = [1, 1]} : vector<1x128xf32> to vector<1x64xf32>
    %373 = vector.extract_strided_slice %366 {offsets = [0, 0], sizes = [1, 64], strides = [1, 1]} : vector<1x256xf32> to vector<1x64xf32>
    %374 = arith.negf %373 : vector<1x64xf32>
    %375 = math.exp %374 : vector<1x64xf32>
    %cst_77 = arith.constant 1.000000e+00 : f32
    %376 = vector.broadcast %cst_77 : f32 to vector<1x64xf32>
    %377 = arith.addf %376, %375 : vector<1x64xf32>
    %378 = arith.divf %376, %377 : vector<1x64xf32>
    %379 = vector.extract_strided_slice %366 {offsets = [0, 64], sizes = [1, 64], strides = [1, 1]} : vector<1x256xf32> to vector<1x64xf32>
    %380 = arith.negf %379 : vector<1x64xf32>
    %381 = math.exp %380 : vector<1x64xf32>
    %cst_78 = arith.constant 1.000000e+00 : f32
    %382 = vector.broadcast %cst_78 : f32 to vector<1x64xf32>
    %383 = arith.addf %382, %381 : vector<1x64xf32>
    %384 = arith.divf %382, %383 : vector<1x64xf32>
    %385 = vector.extract_strided_slice %366 {offsets = [0, 128], sizes = [1, 64], strides = [1, 1]} : vector<1x256xf32> to vector<1x64xf32>
    %386 = math.tanh %385 : vector<1x64xf32>
    %387 = vector.extract_strided_slice %366 {offsets = [0, 192], sizes = [1, 64], strides = [1, 1]} : vector<1x256xf32> to vector<1x64xf32>
    %388 = arith.negf %387 : vector<1x64xf32>
    %389 = math.exp %388 : vector<1x64xf32>
    %cst_79 = arith.constant 1.000000e+00 : f32
    %390 = vector.broadcast %cst_79 : f32 to vector<1x64xf32>
    %391 = arith.addf %390, %389 : vector<1x64xf32>
    %392 = arith.divf %390, %391 : vector<1x64xf32>
    %393 = arith.mulf %384, %372 : vector<1x64xf32>
    %394 = arith.mulf %378, %386 : vector<1x64xf32>
    %395 = arith.addf %393, %394 : vector<1x64xf32>
    %396 = math.tanh %395 : vector<1x64xf32>
    %397 = arith.mulf %392, %396 : vector<1x64xf32>
    %398 = vector.extract_strided_slice %360 {offsets = [0, 64], sizes = [1, 64], strides = [1, 1]} : vector<1x128xf32> to vector<1x64xf32>
    %399 = vector.extract_strided_slice %371 {offsets = [0, 0], sizes = [1, 64], strides = [1, 1]} : vector<1x256xf32> to vector<1x64xf32>
    %400 = arith.negf %399 : vector<1x64xf32>
    %401 = math.exp %400 : vector<1x64xf32>
    %cst_80 = arith.constant 1.000000e+00 : f32
    %402 = vector.broadcast %cst_80 : f32 to vector<1x64xf32>
    %403 = arith.addf %402, %401 : vector<1x64xf32>
    %404 = arith.divf %402, %403 : vector<1x64xf32>
    %405 = vector.extract_strided_slice %371 {offsets = [0, 64], sizes = [1, 64], strides = [1, 1]} : vector<1x256xf32> to vector<1x64xf32>
    %406 = arith.negf %405 : vector<1x64xf32>
    %407 = math.exp %406 : vector<1x64xf32>
    %cst_81 = arith.constant 1.000000e+00 : f32
    %408 = vector.broadcast %cst_81 : f32 to vector<1x64xf32>
    %409 = arith.addf %408, %407 : vector<1x64xf32>
    %410 = arith.divf %408, %409 : vector<1x64xf32>
    %411 = vector.extract_strided_slice %371 {offsets = [0, 128], sizes = [1, 64], strides = [1, 1]} : vector<1x256xf32> to vector<1x64xf32>
    %412 = math.tanh %411 : vector<1x64xf32>
    %413 = vector.extract_strided_slice %371 {offsets = [0, 192], sizes = [1, 64], strides = [1, 1]} : vector<1x256xf32> to vector<1x64xf32>
    %414 = arith.negf %413 : vector<1x64xf32>
    %415 = math.exp %414 : vector<1x64xf32>
    %cst_82 = arith.constant 1.000000e+00 : f32
    %416 = vector.broadcast %cst_82 : f32 to vector<1x64xf32>
    %417 = arith.addf %416, %415 : vector<1x64xf32>
    %418 = arith.divf %416, %417 : vector<1x64xf32>
    %419 = arith.mulf %410, %398 : vector<1x64xf32>
    %420 = arith.mulf %404, %412 : vector<1x64xf32>
    %421 = arith.addf %419, %420 : vector<1x64xf32>
    %422 = math.tanh %421 : vector<1x64xf32>
    %423 = arith.mulf %418, %422 : vector<1x64xf32>
    %424 = arith.index_cast %c5_i32 : i32 to index
    %c0_83 = arith.constant 0 : index
    %425 = vector.load %arg14[%424, %c0_83] : memref<8x128xf32, #tpu.memory_space<vmem>>, vector<1x64xf32>
    tpu.vector_store %arg14[%424, %c0_83], %397 {strides = array<i32>} : memref<8x128xf32, #tpu.memory_space<vmem>>, vector<1x64xf32>,
    %c7_i32_84 = arith.constant 7 : i32
    %426 = arith.subi %c7_i32_84, %c5_i32 : i32
    %427 = arith.index_cast %426 : i32 to index
    %c64_85 = arith.constant 64 : index
    %428 = vector.load %arg14[%427, %c64_85] : memref<8x128xf32, #tpu.memory_space<vmem>>, vector<1x64xf32>
    tpu.vector_store %arg14[%427, %c64_85], %423 {strides = array<i32>} : memref<8x128xf32, #tpu.memory_space<vmem>>, vector<1x64xf32>,
    %429 = tpu.concatenate %397, %423 in 1 : vector<1x64xf32>, vector<1x64xf32> -> vector<1x128xf32>
    %430 = tpu.concatenate %395, %421 in 1 : vector<1x64xf32>, vector<1x64xf32> -> vector<1x128xf32>
    %c6_i32 = arith.constant 6 : i32
    %431 = arith.truncf %429 : vector<1x128xf32> to vector<1x128xbf16>
    %cst_86 = arith.constant dense<0.000000e+00> : vector<1x512xf32>
    %432 = tpu.matmul %431, %8, %cst_86 {dimension_numbers = #tpu.dot_dimension_numbers<[1], [0], [0], [1], [0, 0, 1, 1], [], []>} : vector<1x128xbf16>, vector<128x512xbf16>, vector<1x512xf32> -> vector<1x512xf32>
    %433 = arith.index_cast %c6_i32 : i32 to index
    %c0_87 = arith.constant 0 : index
    %434 = vector.load %arg15[%433, %c0_87] : memref<8x512xf32, #tpu.memory_space<vmem>>, vector<1x256xf32>
    %435 = vector.extract_strided_slice %432 {offsets = [0, 0], sizes = [1, 256], strides = [1, 1]} : vector<1x512xf32> to vector<1x256xf32>
    %436 = arith.addf %434, %435 : vector<1x256xf32>
    %c7_i32_88 = arith.constant 7 : i32
    %437 = arith.subi %c7_i32_88, %c6_i32 : i32
    %438 = arith.index_cast %437 : i32 to index
    %c256_89 = arith.constant 256 : index
    %439 = vector.load %arg15[%438, %c256_89] : memref<8x512xf32, #tpu.memory_space<vmem>>, vector<1x256xf32>
    %440 = vector.extract_strided_slice %432 {offsets = [0, 256], sizes = [1, 256], strides = [1, 1]} : vector<1x512xf32> to vector<1x256xf32>
    %441 = arith.addf %439, %440 : vector<1x256xf32>
    %442 = vector.extract_strided_slice %430 {offsets = [0, 0], sizes = [1, 64], strides = [1, 1]} : vector<1x128xf32> to vector<1x64xf32>
    %443 = vector.extract_strided_slice %436 {offsets = [0, 0], sizes = [1, 64], strides = [1, 1]} : vector<1x256xf32> to vector<1x64xf32>
    %444 = arith.negf %443 : vector<1x64xf32>
    %445 = math.exp %444 : vector<1x64xf32>
    %cst_90 = arith.constant 1.000000e+00 : f32
    %446 = vector.broadcast %cst_90 : f32 to vector<1x64xf32>
    %447 = arith.addf %446, %445 : vector<1x64xf32>
    %448 = arith.divf %446, %447 : vector<1x64xf32>
    %449 = vector.extract_strided_slice %436 {offsets = [0, 64], sizes = [1, 64], strides = [1, 1]} : vector<1x256xf32> to vector<1x64xf32>
    %450 = arith.negf %449 : vector<1x64xf32>
    %451 = math.exp %450 : vector<1x64xf32>
    %cst_91 = arith.constant 1.000000e+00 : f32
    %452 = vector.broadcast %cst_91 : f32 to vector<1x64xf32>
    %453 = arith.addf %452, %451 : vector<1x64xf32>
    %454 = arith.divf %452, %453 : vector<1x64xf32>
    %455 = vector.extract_strided_slice %436 {offsets = [0, 128], sizes = [1, 64], strides = [1, 1]} : vector<1x256xf32> to vector<1x64xf32>
    %456 = math.tanh %455 : vector<1x64xf32>
    %457 = vector.extract_strided_slice %436 {offsets = [0, 192], sizes = [1, 64], strides = [1, 1]} : vector<1x256xf32> to vector<1x64xf32>
    %458 = arith.negf %457 : vector<1x64xf32>
    %459 = math.exp %458 : vector<1x64xf32>
    %cst_92 = arith.constant 1.000000e+00 : f32
    %460 = vector.broadcast %cst_92 : f32 to vector<1x64xf32>
    %461 = arith.addf %460, %459 : vector<1x64xf32>
    %462 = arith.divf %460, %461 : vector<1x64xf32>
    %463 = arith.mulf %454, %442 : vector<1x64xf32>
    %464 = arith.mulf %448, %456 : vector<1x64xf32>
    %465 = arith.addf %463, %464 : vector<1x64xf32>
    %466 = math.tanh %465 : vector<1x64xf32>
    %467 = arith.mulf %462, %466 : vector<1x64xf32>
    %468 = vector.extract_strided_slice %430 {offsets = [0, 64], sizes = [1, 64], strides = [1, 1]} : vector<1x128xf32> to vector<1x64xf32>
    %469 = vector.extract_strided_slice %441 {offsets = [0, 0], sizes = [1, 64], strides = [1, 1]} : vector<1x256xf32> to vector<1x64xf32>
    %470 = arith.negf %469 : vector<1x64xf32>
    %471 = math.exp %470 : vector<1x64xf32>
    %cst_93 = arith.constant 1.000000e+00 : f32
    %472 = vector.broadcast %cst_93 : f32 to vector<1x64xf32>
    %473 = arith.addf %472, %471 : vector<1x64xf32>
    %474 = arith.divf %472, %473 : vector<1x64xf32>
    %475 = vector.extract_strided_slice %441 {offsets = [0, 64], sizes = [1, 64], strides = [1, 1]} : vector<1x256xf32> to vector<1x64xf32>
    %476 = arith.negf %475 : vector<1x64xf32>
    %477 = math.exp %476 : vector<1x64xf32>
    %cst_94 = arith.constant 1.000000e+00 : f32
    %478 = vector.broadcast %cst_94 : f32 to vector<1x64xf32>
    %479 = arith.addf %478, %477 : vector<1x64xf32>
    %480 = arith.divf %478, %479 : vector<1x64xf32>
    %481 = vector.extract_strided_slice %441 {offsets = [0, 128], sizes = [1, 64], strides = [1, 1]} : vector<1x256xf32> to vector<1x64xf32>
    %482 = math.tanh %481 : vector<1x64xf32>
    %483 = vector.extract_strided_slice %441 {offsets = [0, 192], sizes = [1, 64], strides = [1, 1]} : vector<1x256xf32> to vector<1x64xf32>
    %484 = arith.negf %483 : vector<1x64xf32>
    %485 = math.exp %484 : vector<1x64xf32>
    %cst_95 = arith.constant 1.000000e+00 : f32
    %486 = vector.broadcast %cst_95 : f32 to vector<1x64xf32>
    %487 = arith.addf %486, %485 : vector<1x64xf32>
    %488 = arith.divf %486, %487 : vector<1x64xf32>
    %489 = arith.mulf %480, %468 : vector<1x64xf32>
    %490 = arith.mulf %474, %482 : vector<1x64xf32>
    %491 = arith.addf %489, %490 : vector<1x64xf32>
    %492 = math.tanh %491 : vector<1x64xf32>
    %493 = arith.mulf %488, %492 : vector<1x64xf32>
    %494 = arith.index_cast %c6_i32 : i32 to index
    %c0_96 = arith.constant 0 : index
    %495 = vector.load %arg14[%494, %c0_96] : memref<8x128xf32, #tpu.memory_space<vmem>>, vector<1x64xf32>
    tpu.vector_store %arg14[%494, %c0_96], %467 {strides = array<i32>} : memref<8x128xf32, #tpu.memory_space<vmem>>, vector<1x64xf32>,
    %c7_i32_97 = arith.constant 7 : i32
    %496 = arith.subi %c7_i32_97, %c6_i32 : i32
    %497 = arith.index_cast %496 : i32 to index
    %c64_98 = arith.constant 64 : index
    %498 = vector.load %arg14[%497, %c64_98] : memref<8x128xf32, #tpu.memory_space<vmem>>, vector<1x64xf32>
    tpu.vector_store %arg14[%497, %c64_98], %493 {strides = array<i32>} : memref<8x128xf32, #tpu.memory_space<vmem>>, vector<1x64xf32>,
    %499 = tpu.concatenate %467, %493 in 1 : vector<1x64xf32>, vector<1x64xf32> -> vector<1x128xf32>
    %500 = tpu.concatenate %465, %491 in 1 : vector<1x64xf32>, vector<1x64xf32> -> vector<1x128xf32>
    %c7_i32_99 = arith.constant 7 : i32
    %501 = arith.truncf %499 : vector<1x128xf32> to vector<1x128xbf16>
    %cst_100 = arith.constant dense<0.000000e+00> : vector<1x512xf32>
    %502 = tpu.matmul %501, %8, %cst_100 {dimension_numbers = #tpu.dot_dimension_numbers<[1], [0], [0], [1], [0, 0, 1, 1], [], []>} : vector<1x128xbf16>, vector<128x512xbf16>, vector<1x512xf32> -> vector<1x512xf32>
    %503 = arith.index_cast %c7_i32_99 : i32 to index
    %c0_101 = arith.constant 0 : index
    %504 = vector.load %arg15[%503, %c0_101] : memref<8x512xf32, #tpu.memory_space<vmem>>, vector<1x256xf32>
    %505 = vector.extract_strided_slice %502 {offsets = [0, 0], sizes = [1, 256], strides = [1, 1]} : vector<1x512xf32> to vector<1x256xf32>
    %506 = arith.addf %504, %505 : vector<1x256xf32>
    %c7_i32_102 = arith.constant 7 : i32
    %507 = arith.subi %c7_i32_102, %c7_i32_99 : i32
    %508 = arith.index_cast %507 : i32 to index
    %c256_103 = arith.constant 256 : index
    %509 = vector.load %arg15[%508, %c256_103] : memref<8x512xf32, #tpu.memory_space<vmem>>, vector<1x256xf32>
    %510 = vector.extract_strided_slice %502 {offsets = [0, 256], sizes = [1, 256], strides = [1, 1]} : vector<1x512xf32> to vector<1x256xf32>
    %511 = arith.addf %509, %510 : vector<1x256xf32>
    %512 = vector.extract_strided_slice %500 {offsets = [0, 0], sizes = [1, 64], strides = [1, 1]} : vector<1x128xf32> to vector<1x64xf32>
    %513 = vector.extract_strided_slice %506 {offsets = [0, 0], sizes = [1, 64], strides = [1, 1]} : vector<1x256xf32> to vector<1x64xf32>
    %514 = arith.negf %513 : vector<1x64xf32>
    %515 = math.exp %514 : vector<1x64xf32>
    %cst_104 = arith.constant 1.000000e+00 : f32
    %516 = vector.broadcast %cst_104 : f32 to vector<1x64xf32>
    %517 = arith.addf %516, %515 : vector<1x64xf32>
    %518 = arith.divf %516, %517 : vector<1x64xf32>
    %519 = vector.extract_strided_slice %506 {offsets = [0, 64], sizes = [1, 64], strides = [1, 1]} : vector<1x256xf32> to vector<1x64xf32>
    %520 = arith.negf %519 : vector<1x64xf32>
    %521 = math.exp %520 : vector<1x64xf32>
    %cst_105 = arith.constant 1.000000e+00 : f32
    %522 = vector.broadcast %cst_105 : f32 to vector<1x64xf32>
    %523 = arith.addf %522, %521 : vector<1x64xf32>
    %524 = arith.divf %522, %523 : vector<1x64xf32>
    %525 = vector.extract_strided_slice %506 {offsets = [0, 128], sizes = [1, 64], strides = [1, 1]} : vector<1x256xf32> to vector<1x64xf32>
    %526 = math.tanh %525 : vector<1x64xf32>
    %527 = vector.extract_strided_slice %506 {offsets = [0, 192], sizes = [1, 64], strides = [1, 1]} : vector<1x256xf32> to vector<1x64xf32>
    %528 = arith.negf %527 : vector<1x64xf32>
    %529 = math.exp %528 : vector<1x64xf32>
    %cst_106 = arith.constant 1.000000e+00 : f32
    %530 = vector.broadcast %cst_106 : f32 to vector<1x64xf32>
    %531 = arith.addf %530, %529 : vector<1x64xf32>
    %532 = arith.divf %530, %531 : vector<1x64xf32>
    %533 = arith.mulf %524, %512 : vector<1x64xf32>
    %534 = arith.mulf %518, %526 : vector<1x64xf32>
    %535 = arith.addf %533, %534 : vector<1x64xf32>
    %536 = math.tanh %535 : vector<1x64xf32>
    %537 = arith.mulf %532, %536 : vector<1x64xf32>
    %538 = vector.extract_strided_slice %500 {offsets = [0, 64], sizes = [1, 64], strides = [1, 1]} : vector<1x128xf32> to vector<1x64xf32>
    %539 = vector.extract_strided_slice %511 {offsets = [0, 0], sizes = [1, 64], strides = [1, 1]} : vector<1x256xf32> to vector<1x64xf32>
    %540 = arith.negf %539 : vector<1x64xf32>
    %541 = math.exp %540 : vector<1x64xf32>
    %cst_107 = arith.constant 1.000000e+00 : f32
    %542 = vector.broadcast %cst_107 : f32 to vector<1x64xf32>
    %543 = arith.addf %542, %541 : vector<1x64xf32>
    %544 = arith.divf %542, %543 : vector<1x64xf32>
    %545 = vector.extract_strided_slice %511 {offsets = [0, 64], sizes = [1, 64], strides = [1, 1]} : vector<1x256xf32> to vector<1x64xf32>
    %546 = arith.negf %545 : vector<1x64xf32>
    %547 = math.exp %546 : vector<1x64xf32>
    %cst_108 = arith.constant 1.000000e+00 : f32
    %548 = vector.broadcast %cst_108 : f32 to vector<1x64xf32>
    %549 = arith.addf %548, %547 : vector<1x64xf32>
    %550 = arith.divf %548, %549 : vector<1x64xf32>
    %551 = vector.extract_strided_slice %511 {offsets = [0, 128], sizes = [1, 64], strides = [1, 1]} : vector<1x256xf32> to vector<1x64xf32>
    %552 = math.tanh %551 : vector<1x64xf32>
    %553 = vector.extract_strided_slice %511 {offsets = [0, 192], sizes = [1, 64], strides = [1, 1]} : vector<1x256xf32> to vector<1x64xf32>
    %554 = arith.negf %553 : vector<1x64xf32>
    %555 = math.exp %554 : vector<1x64xf32>
    %cst_109 = arith.constant 1.000000e+00 : f32
    %556 = vector.broadcast %cst_109 : f32 to vector<1x64xf32>
    %557 = arith.addf %556, %555 : vector<1x64xf32>
    %558 = arith.divf %556, %557 : vector<1x64xf32>
    %559 = arith.mulf %550, %538 : vector<1x64xf32>
    %560 = arith.mulf %544, %552 : vector<1x64xf32>
    %561 = arith.addf %559, %560 : vector<1x64xf32>
    %562 = math.tanh %561 : vector<1x64xf32>
    %563 = arith.mulf %558, %562 : vector<1x64xf32>
    %564 = arith.index_cast %c7_i32_99 : i32 to index
    %c0_110 = arith.constant 0 : index
    %565 = vector.load %arg14[%564, %c0_110] : memref<8x128xf32, #tpu.memory_space<vmem>>, vector<1x64xf32>
    tpu.vector_store %arg14[%564, %c0_110], %537 {strides = array<i32>} : memref<8x128xf32, #tpu.memory_space<vmem>>, vector<1x64xf32>,
    %c7_i32_111 = arith.constant 7 : i32
    %566 = arith.subi %c7_i32_111, %c7_i32_99 : i32
    %567 = arith.index_cast %566 : i32 to index
    %c64_112 = arith.constant 64 : index
    %568 = vector.load %arg14[%567, %c64_112] : memref<8x128xf32, #tpu.memory_space<vmem>>, vector<1x64xf32>
    tpu.vector_store %arg14[%567, %c64_112], %563 {strides = array<i32>} : memref<8x128xf32, #tpu.memory_space<vmem>>, vector<1x64xf32>,
    %569 = tpu.concatenate %537, %563 in 1 : vector<1x64xf32>, vector<1x64xf32> -> vector<1x128xf32>
    %570 = tpu.concatenate %535, %561 in 1 : vector<1x64xf32>, vector<1x64xf32> -> vector<1x128xf32>
    %c8_i32 = arith.constant 8 : i32
    %c0_113 = arith.constant 0 : index
    %c0_114 = arith.constant 0 : index
    %571 = vector.load %arg14[%c0_113, %c0_114] : memref<8x128xf32, #tpu.memory_space<vmem>>, vector<8x128xf32>
    %572 = arith.truncf %571 : vector<8x128xf32> to vector<8x128xbf16>
    %c0_115 = arith.constant 0 : index
    %c0_116 = arith.constant 0 : index
    %573 = vector.load %arg5[%c0_115, %c0_116] : memref<128x512xbf16, #tpu.memory_space<vmem>>, vector<128x512xbf16>
    %cst_117 = arith.constant dense<0.000000e+00> : vector<8x512xf32>
    %574 = tpu.matmul %572, %573, %cst_117 {dimension_numbers = #tpu.dot_dimension_numbers<[1], [0], [0], [1], [0, 0, 1, 1], [], []>} : vector<8x128xbf16>, vector<128x512xbf16>, vector<8x512xf32> -> vector<8x512xf32>
    %c0_118 = arith.constant 0 : index
    %c0_119 = arith.constant 0 : index
    %575 = vector.load %arg7[%c0_118, %c0_119] : memref<1x512xf32, #tpu.memory_space<vmem>>, vector<1x512xf32>
    %576 = vector.broadcast %575 : vector<1x512xf32> to vector<8x512xf32>
    %577 = arith.addf %574, %576 : vector<8x512xf32>
    %c0_120 = arith.constant 0 : index
    %c0_121 = arith.constant 0 : index
    %578 = vector.load %arg15[%c0_120, %c0_121] : memref<8x512xf32, #tpu.memory_space<vmem>>, vector<8x512xf32>
    tpu.vector_store %arg15[%c0_120, %c0_121], %577 {strides = array<i32>} : memref<8x512xf32, #tpu.memory_space<vmem>>, vector<8x512xf32>,
    %c0_122 = arith.constant 0 : index
    %c0_123 = arith.constant 0 : index
    %579 = vector.load %arg6[%c0_122, %c0_123] : memref<128x512xbf16, #tpu.memory_space<vmem>>, vector<128x512xbf16>
    %cst_124 = arith.constant 0.000000e+00 : f32
    %580 = vector.broadcast %cst_124 : f32 to vector<1x128xf32>
    %cst_125 = arith.constant 0.000000e+00 : f32
    %581 = vector.broadcast %cst_125 : f32 to vector<1x128xf32>
    %c0_i32_126 = arith.constant 0 : i32
    %582 = arith.truncf %580 : vector<1x128xf32> to vector<1x128xbf16>
    %cst_127 = arith.constant dense<0.000000e+00> : vector<1x512xf32>
    %583 = tpu.matmul %582, %579, %cst_127 {dimension_numbers = #tpu.dot_dimension_numbers<[1], [0], [0], [1], [0, 0, 1, 1], [], []>} : vector<1x128xbf16>, vector<128x512xbf16>, vector<1x512xf32> -> vector<1x512xf32>
    %584 = arith.index_cast %c0_i32_126 : i32 to index
    %c0_128 = arith.constant 0 : index
    %585 = vector.load %arg15[%584, %c0_128] : memref<8x512xf32, #tpu.memory_space<vmem>>, vector<1x256xf32>
    %586 = vector.extract_strided_slice %583 {offsets = [0, 0], sizes = [1, 256], strides = [1, 1]} : vector<1x512xf32> to vector<1x256xf32>
    %587 = arith.addf %585, %586 : vector<1x256xf32>
    %c7_i32_129 = arith.constant 7 : i32
    %588 = arith.subi %c7_i32_129, %c0_i32_126 : i32
    %589 = arith.index_cast %588 : i32 to index
    %c256_130 = arith.constant 256 : index
    %590 = vector.load %arg15[%589, %c256_130] : memref<8x512xf32, #tpu.memory_space<vmem>>, vector<1x256xf32>
    %591 = vector.extract_strided_slice %583 {offsets = [0, 256], sizes = [1, 256], strides = [1, 1]} : vector<1x512xf32> to vector<1x256xf32>
    %592 = arith.addf %590, %591 : vector<1x256xf32>
    %593 = vector.extract_strided_slice %581 {offsets = [0, 0], sizes = [1, 64], strides = [1, 1]} : vector<1x128xf32> to vector<1x64xf32>
    %594 = vector.extract_strided_slice %587 {offsets = [0, 0], sizes = [1, 64], strides = [1, 1]} : vector<1x256xf32> to vector<1x64xf32>
    %595 = arith.negf %594 : vector<1x64xf32>
    %596 = math.exp %595 : vector<1x64xf32>
    %cst_131 = arith.constant 1.000000e+00 : f32
    %597 = vector.broadcast %cst_131 : f32 to vector<1x64xf32>
    %598 = arith.addf %597, %596 : vector<1x64xf32>
    %599 = arith.divf %597, %598 : vector<1x64xf32>
    %600 = vector.extract_strided_slice %587 {offsets = [0, 64], sizes = [1, 64], strides = [1, 1]} : vector<1x256xf32> to vector<1x64xf32>
    %601 = arith.negf %600 : vector<1x64xf32>
    %602 = math.exp %601 : vector<1x64xf32>
    %cst_132 = arith.constant 1.000000e+00 : f32
    %603 = vector.broadcast %cst_132 : f32 to vector<1x64xf32>
    %604 = arith.addf %603, %602 : vector<1x64xf32>
    %605 = arith.divf %603, %604 : vector<1x64xf32>
    %606 = vector.extract_strided_slice %587 {offsets = [0, 128], sizes = [1, 64], strides = [1, 1]} : vector<1x256xf32> to vector<1x64xf32>
    %607 = math.tanh %606 : vector<1x64xf32>
    %608 = vector.extract_strided_slice %587 {offsets = [0, 192], sizes = [1, 64], strides = [1, 1]} : vector<1x256xf32> to vector<1x64xf32>
    %609 = arith.negf %608 : vector<1x64xf32>
    %610 = math.exp %609 : vector<1x64xf32>
    %cst_133 = arith.constant 1.000000e+00 : f32
    %611 = vector.broadcast %cst_133 : f32 to vector<1x64xf32>
    %612 = arith.addf %611, %610 : vector<1x64xf32>
    %613 = arith.divf %611, %612 : vector<1x64xf32>
    %614 = arith.mulf %605, %593 : vector<1x64xf32>
    %615 = arith.mulf %599, %607 : vector<1x64xf32>
    %616 = arith.addf %614, %615 : vector<1x64xf32>
    %617 = math.tanh %616 : vector<1x64xf32>
    %618 = arith.mulf %613, %617 : vector<1x64xf32>
    %619 = vector.extract_strided_slice %581 {offsets = [0, 64], sizes = [1, 64], strides = [1, 1]} : vector<1x128xf32> to vector<1x64xf32>
    %620 = vector.extract_strided_slice %592 {offsets = [0, 0], sizes = [1, 64], strides = [1, 1]} : vector<1x256xf32> to vector<1x64xf32>
    %621 = arith.negf %620 : vector<1x64xf32>
    %622 = math.exp %621 : vector<1x64xf32>
    %cst_134 = arith.constant 1.000000e+00 : f32
    %623 = vector.broadcast %cst_134 : f32 to vector<1x64xf32>
    %624 = arith.addf %623, %622 : vector<1x64xf32>
    %625 = arith.divf %623, %624 : vector<1x64xf32>
    %626 = vector.extract_strided_slice %592 {offsets = [0, 64], sizes = [1, 64], strides = [1, 1]} : vector<1x256xf32> to vector<1x64xf32>
    %627 = arith.negf %626 : vector<1x64xf32>
    %628 = math.exp %627 : vector<1x64xf32>
    %cst_135 = arith.constant 1.000000e+00 : f32
    %629 = vector.broadcast %cst_135 : f32 to vector<1x64xf32>
    %630 = arith.addf %629, %628 : vector<1x64xf32>
    %631 = arith.divf %629, %630 : vector<1x64xf32>
    %632 = vector.extract_strided_slice %592 {offsets = [0, 128], sizes = [1, 64], strides = [1, 1]} : vector<1x256xf32> to vector<1x64xf32>
    %633 = math.tanh %632 : vector<1x64xf32>
    %634 = vector.extract_strided_slice %592 {offsets = [0, 192], sizes = [1, 64], strides = [1, 1]} : vector<1x256xf32> to vector<1x64xf32>
    %635 = arith.negf %634 : vector<1x64xf32>
    %636 = math.exp %635 : vector<1x64xf32>
    %cst_136 = arith.constant 1.000000e+00 : f32
    %637 = vector.broadcast %cst_136 : f32 to vector<1x64xf32>
    %638 = arith.addf %637, %636 : vector<1x64xf32>
    %639 = arith.divf %637, %638 : vector<1x64xf32>
    %640 = arith.mulf %631, %619 : vector<1x64xf32>
    %641 = arith.mulf %625, %633 : vector<1x64xf32>
    %642 = arith.addf %640, %641 : vector<1x64xf32>
    %643 = math.tanh %642 : vector<1x64xf32>
    %644 = arith.mulf %639, %643 : vector<1x64xf32>
    %645 = arith.index_cast %c0_i32_126 : i32 to index
    %c0_137 = arith.constant 0 : index
    %646 = vector.load %arg14[%645, %c0_137] : memref<8x128xf32, #tpu.memory_space<vmem>>, vector<1x64xf32>
    tpu.vector_store %arg14[%645, %c0_137], %618 {strides = array<i32>} : memref<8x128xf32, #tpu.memory_space<vmem>>, vector<1x64xf32>,
    %c7_i32_138 = arith.constant 7 : i32
    %647 = arith.subi %c7_i32_138, %c0_i32_126 : i32
    %648 = arith.index_cast %647 : i32 to index
    %c64_139 = arith.constant 64 : index
    %649 = vector.load %arg14[%648, %c64_139] : memref<8x128xf32, #tpu.memory_space<vmem>>, vector<1x64xf32>
    tpu.vector_store %arg14[%648, %c64_139], %644 {strides = array<i32>} : memref<8x128xf32, #tpu.memory_space<vmem>>, vector<1x64xf32>,
    %650 = tpu.concatenate %618, %644 in 1 : vector<1x64xf32>, vector<1x64xf32> -> vector<1x128xf32>
    %651 = tpu.concatenate %616, %642 in 1 : vector<1x64xf32>, vector<1x64xf32> -> vector<1x128xf32>
    %c1_i32_140 = arith.constant 1 : i32
    %652 = arith.truncf %650 : vector<1x128xf32> to vector<1x128xbf16>
    %cst_141 = arith.constant dense<0.000000e+00> : vector<1x512xf32>
    %653 = tpu.matmul %652, %579, %cst_141 {dimension_numbers = #tpu.dot_dimension_numbers<[1], [0], [0], [1], [0, 0, 1, 1], [], []>} : vector<1x128xbf16>, vector<128x512xbf16>, vector<1x512xf32> -> vector<1x512xf32>
    %654 = arith.index_cast %c1_i32_140 : i32 to index
    %c0_142 = arith.constant 0 : index
    %655 = vector.load %arg15[%654, %c0_142] : memref<8x512xf32, #tpu.memory_space<vmem>>, vector<1x256xf32>
    %656 = vector.extract_strided_slice %653 {offsets = [0, 0], sizes = [1, 256], strides = [1, 1]} : vector<1x512xf32> to vector<1x256xf32>
    %657 = arith.addf %655, %656 : vector<1x256xf32>
    %c7_i32_143 = arith.constant 7 : i32
    %658 = arith.subi %c7_i32_143, %c1_i32_140 : i32
    %659 = arith.index_cast %658 : i32 to index
    %c256_144 = arith.constant 256 : index
    %660 = vector.load %arg15[%659, %c256_144] : memref<8x512xf32, #tpu.memory_space<vmem>>, vector<1x256xf32>
    %661 = vector.extract_strided_slice %653 {offsets = [0, 256], sizes = [1, 256], strides = [1, 1]} : vector<1x512xf32> to vector<1x256xf32>
    %662 = arith.addf %660, %661 : vector<1x256xf32>
    %663 = vector.extract_strided_slice %651 {offsets = [0, 0], sizes = [1, 64], strides = [1, 1]} : vector<1x128xf32> to vector<1x64xf32>
    %664 = vector.extract_strided_slice %657 {offsets = [0, 0], sizes = [1, 64], strides = [1, 1]} : vector<1x256xf32> to vector<1x64xf32>
    %665 = arith.negf %664 : vector<1x64xf32>
    %666 = math.exp %665 : vector<1x64xf32>
    %cst_145 = arith.constant 1.000000e+00 : f32
    %667 = vector.broadcast %cst_145 : f32 to vector<1x64xf32>
    %668 = arith.addf %667, %666 : vector<1x64xf32>
    %669 = arith.divf %667, %668 : vector<1x64xf32>
    %670 = vector.extract_strided_slice %657 {offsets = [0, 64], sizes = [1, 64], strides = [1, 1]} : vector<1x256xf32> to vector<1x64xf32>
    %671 = arith.negf %670 : vector<1x64xf32>
    %672 = math.exp %671 : vector<1x64xf32>
    %cst_146 = arith.constant 1.000000e+00 : f32
    %673 = vector.broadcast %cst_146 : f32 to vector<1x64xf32>
    %674 = arith.addf %673, %672 : vector<1x64xf32>
    %675 = arith.divf %673, %674 : vector<1x64xf32>
    %676 = vector.extract_strided_slice %657 {offsets = [0, 128], sizes = [1, 64], strides = [1, 1]} : vector<1x256xf32> to vector<1x64xf32>
    %677 = math.tanh %676 : vector<1x64xf32>
    %678 = vector.extract_strided_slice %657 {offsets = [0, 192], sizes = [1, 64], strides = [1, 1]} : vector<1x256xf32> to vector<1x64xf32>
    %679 = arith.negf %678 : vector<1x64xf32>
    %680 = math.exp %679 : vector<1x64xf32>
    %cst_147 = arith.constant 1.000000e+00 : f32
    %681 = vector.broadcast %cst_147 : f32 to vector<1x64xf32>
    %682 = arith.addf %681, %680 : vector<1x64xf32>
    %683 = arith.divf %681, %682 : vector<1x64xf32>
    %684 = arith.mulf %675, %663 : vector<1x64xf32>
    %685 = arith.mulf %669, %677 : vector<1x64xf32>
    %686 = arith.addf %684, %685 : vector<1x64xf32>
    %687 = math.tanh %686 : vector<1x64xf32>
    %688 = arith.mulf %683, %687 : vector<1x64xf32>
    %689 = vector.extract_strided_slice %651 {offsets = [0, 64], sizes = [1, 64], strides = [1, 1]} : vector<1x128xf32> to vector<1x64xf32>
    %690 = vector.extract_strided_slice %662 {offsets = [0, 0], sizes = [1, 64], strides = [1, 1]} : vector<1x256xf32> to vector<1x64xf32>
    %691 = arith.negf %690 : vector<1x64xf32>
    %692 = math.exp %691 : vector<1x64xf32>
    %cst_148 = arith.constant 1.000000e+00 : f32
    %693 = vector.broadcast %cst_148 : f32 to vector<1x64xf32>
    %694 = arith.addf %693, %692 : vector<1x64xf32>
    %695 = arith.divf %693, %694 : vector<1x64xf32>
    %696 = vector.extract_strided_slice %662 {offsets = [0, 64], sizes = [1, 64], strides = [1, 1]} : vector<1x256xf32> to vector<1x64xf32>
    %697 = arith.negf %696 : vector<1x64xf32>
    %698 = math.exp %697 : vector<1x64xf32>
    %cst_149 = arith.constant 1.000000e+00 : f32
    %699 = vector.broadcast %cst_149 : f32 to vector<1x64xf32>
    %700 = arith.addf %699, %698 : vector<1x64xf32>
    %701 = arith.divf %699, %700 : vector<1x64xf32>
    %702 = vector.extract_strided_slice %662 {offsets = [0, 128], sizes = [1, 64], strides = [1, 1]} : vector<1x256xf32> to vector<1x64xf32>
    %703 = math.tanh %702 : vector<1x64xf32>
    %704 = vector.extract_strided_slice %662 {offsets = [0, 192], sizes = [1, 64], strides = [1, 1]} : vector<1x256xf32> to vector<1x64xf32>
    %705 = arith.negf %704 : vector<1x64xf32>
    %706 = math.exp %705 : vector<1x64xf32>
    %cst_150 = arith.constant 1.000000e+00 : f32
    %707 = vector.broadcast %cst_150 : f32 to vector<1x64xf32>
    %708 = arith.addf %707, %706 : vector<1x64xf32>
    %709 = arith.divf %707, %708 : vector<1x64xf32>
    %710 = arith.mulf %701, %689 : vector<1x64xf32>
    %711 = arith.mulf %695, %703 : vector<1x64xf32>
    %712 = arith.addf %710, %711 : vector<1x64xf32>
    %713 = math.tanh %712 : vector<1x64xf32>
    %714 = arith.mulf %709, %713 : vector<1x64xf32>
    %715 = arith.index_cast %c1_i32_140 : i32 to index
    %c0_151 = arith.constant 0 : index
    %716 = vector.load %arg14[%715, %c0_151] : memref<8x128xf32, #tpu.memory_space<vmem>>, vector<1x64xf32>
    tpu.vector_store %arg14[%715, %c0_151], %688 {strides = array<i32>} : memref<8x128xf32, #tpu.memory_space<vmem>>, vector<1x64xf32>,
    %c7_i32_152 = arith.constant 7 : i32
    %717 = arith.subi %c7_i32_152, %c1_i32_140 : i32
    %718 = arith.index_cast %717 : i32 to index
    %c64_153 = arith.constant 64 : index
    %719 = vector.load %arg14[%718, %c64_153] : memref<8x128xf32, #tpu.memory_space<vmem>>, vector<1x64xf32>
    tpu.vector_store %arg14[%718, %c64_153], %714 {strides = array<i32>} : memref<8x128xf32, #tpu.memory_space<vmem>>, vector<1x64xf32>,
    %720 = tpu.concatenate %688, %714 in 1 : vector<1x64xf32>, vector<1x64xf32> -> vector<1x128xf32>
    %721 = tpu.concatenate %686, %712 in 1 : vector<1x64xf32>, vector<1x64xf32> -> vector<1x128xf32>
    %c2_i32_154 = arith.constant 2 : i32
    %722 = arith.truncf %720 : vector<1x128xf32> to vector<1x128xbf16>
    %cst_155 = arith.constant dense<0.000000e+00> : vector<1x512xf32>
    %723 = tpu.matmul %722, %579, %cst_155 {dimension_numbers = #tpu.dot_dimension_numbers<[1], [0], [0], [1], [0, 0, 1, 1], [], []>} : vector<1x128xbf16>, vector<128x512xbf16>, vector<1x512xf32> -> vector<1x512xf32>
    %724 = arith.index_cast %c2_i32_154 : i32 to index
    %c0_156 = arith.constant 0 : index
    %725 = vector.load %arg15[%724, %c0_156] : memref<8x512xf32, #tpu.memory_space<vmem>>, vector<1x256xf32>
    %726 = vector.extract_strided_slice %723 {offsets = [0, 0], sizes = [1, 256], strides = [1, 1]} : vector<1x512xf32> to vector<1x256xf32>
    %727 = arith.addf %725, %726 : vector<1x256xf32>
    %c7_i32_157 = arith.constant 7 : i32
    %728 = arith.subi %c7_i32_157, %c2_i32_154 : i32
    %729 = arith.index_cast %728 : i32 to index
    %c256_158 = arith.constant 256 : index
    %730 = vector.load %arg15[%729, %c256_158] : memref<8x512xf32, #tpu.memory_space<vmem>>, vector<1x256xf32>
    %731 = vector.extract_strided_slice %723 {offsets = [0, 256], sizes = [1, 256], strides = [1, 1]} : vector<1x512xf32> to vector<1x256xf32>
    %732 = arith.addf %730, %731 : vector<1x256xf32>
    %733 = vector.extract_strided_slice %721 {offsets = [0, 0], sizes = [1, 64], strides = [1, 1]} : vector<1x128xf32> to vector<1x64xf32>
    %734 = vector.extract_strided_slice %727 {offsets = [0, 0], sizes = [1, 64], strides = [1, 1]} : vector<1x256xf32> to vector<1x64xf32>
    %735 = arith.negf %734 : vector<1x64xf32>
    %736 = math.exp %735 : vector<1x64xf32>
    %cst_159 = arith.constant 1.000000e+00 : f32
    %737 = vector.broadcast %cst_159 : f32 to vector<1x64xf32>
    %738 = arith.addf %737, %736 : vector<1x64xf32>
    %739 = arith.divf %737, %738 : vector<1x64xf32>
    %740 = vector.extract_strided_slice %727 {offsets = [0, 64], sizes = [1, 64], strides = [1, 1]} : vector<1x256xf32> to vector<1x64xf32>
    %741 = arith.negf %740 : vector<1x64xf32>
    %742 = math.exp %741 : vector<1x64xf32>
    %cst_160 = arith.constant 1.000000e+00 : f32
    %743 = vector.broadcast %cst_160 : f32 to vector<1x64xf32>
    %744 = arith.addf %743, %742 : vector<1x64xf32>
    %745 = arith.divf %743, %744 : vector<1x64xf32>
    %746 = vector.extract_strided_slice %727 {offsets = [0, 128], sizes = [1, 64], strides = [1, 1]} : vector<1x256xf32> to vector<1x64xf32>
    %747 = math.tanh %746 : vector<1x64xf32>
    %748 = vector.extract_strided_slice %727 {offsets = [0, 192], sizes = [1, 64], strides = [1, 1]} : vector<1x256xf32> to vector<1x64xf32>
    %749 = arith.negf %748 : vector<1x64xf32>
    %750 = math.exp %749 : vector<1x64xf32>
    %cst_161 = arith.constant 1.000000e+00 : f32
    %751 = vector.broadcast %cst_161 : f32 to vector<1x64xf32>
    %752 = arith.addf %751, %750 : vector<1x64xf32>
    %753 = arith.divf %751, %752 : vector<1x64xf32>
    %754 = arith.mulf %745, %733 : vector<1x64xf32>
    %755 = arith.mulf %739, %747 : vector<1x64xf32>
    %756 = arith.addf %754, %755 : vector<1x64xf32>
    %757 = math.tanh %756 : vector<1x64xf32>
    %758 = arith.mulf %753, %757 : vector<1x64xf32>
    %759 = vector.extract_strided_slice %721 {offsets = [0, 64], sizes = [1, 64], strides = [1, 1]} : vector<1x128xf32> to vector<1x64xf32>
    %760 = vector.extract_strided_slice %732 {offsets = [0, 0], sizes = [1, 64], strides = [1, 1]} : vector<1x256xf32> to vector<1x64xf32>
    %761 = arith.negf %760 : vector<1x64xf32>
    %762 = math.exp %761 : vector<1x64xf32>
    %cst_162 = arith.constant 1.000000e+00 : f32
    %763 = vector.broadcast %cst_162 : f32 to vector<1x64xf32>
    %764 = arith.addf %763, %762 : vector<1x64xf32>
    %765 = arith.divf %763, %764 : vector<1x64xf32>
    %766 = vector.extract_strided_slice %732 {offsets = [0, 64], sizes = [1, 64], strides = [1, 1]} : vector<1x256xf32> to vector<1x64xf32>
    %767 = arith.negf %766 : vector<1x64xf32>
    %768 = math.exp %767 : vector<1x64xf32>
    %cst_163 = arith.constant 1.000000e+00 : f32
    %769 = vector.broadcast %cst_163 : f32 to vector<1x64xf32>
    %770 = arith.addf %769, %768 : vector<1x64xf32>
    %771 = arith.divf %769, %770 : vector<1x64xf32>
    %772 = vector.extract_strided_slice %732 {offsets = [0, 128], sizes = [1, 64], strides = [1, 1]} : vector<1x256xf32> to vector<1x64xf32>
    %773 = math.tanh %772 : vector<1x64xf32>
    %774 = vector.extract_strided_slice %732 {offsets = [0, 192], sizes = [1, 64], strides = [1, 1]} : vector<1x256xf32> to vector<1x64xf32>
    %775 = arith.negf %774 : vector<1x64xf32>
    %776 = math.exp %775 : vector<1x64xf32>
    %cst_164 = arith.constant 1.000000e+00 : f32
    %777 = vector.broadcast %cst_164 : f32 to vector<1x64xf32>
    %778 = arith.addf %777, %776 : vector<1x64xf32>
    %779 = arith.divf %777, %778 : vector<1x64xf32>
    %780 = arith.mulf %771, %759 : vector<1x64xf32>
    %781 = arith.mulf %765, %773 : vector<1x64xf32>
    %782 = arith.addf %780, %781 : vector<1x64xf32>
    %783 = math.tanh %782 : vector<1x64xf32>
    %784 = arith.mulf %779, %783 : vector<1x64xf32>
    %785 = arith.index_cast %c2_i32_154 : i32 to index
    %c0_165 = arith.constant 0 : index
    %786 = vector.load %arg14[%785, %c0_165] : memref<8x128xf32, #tpu.memory_space<vmem>>, vector<1x64xf32>
    tpu.vector_store %arg14[%785, %c0_165], %758 {strides = array<i32>} : memref<8x128xf32, #tpu.memory_space<vmem>>, vector<1x64xf32>,
    %c7_i32_166 = arith.constant 7 : i32
    %787 = arith.subi %c7_i32_166, %c2_i32_154 : i32
    %788 = arith.index_cast %787 : i32 to index
    %c64_167 = arith.constant 64 : index
    %789 = vector.load %arg14[%788, %c64_167] : memref<8x128xf32, #tpu.memory_space<vmem>>, vector<1x64xf32>
    tpu.vector_store %arg14[%788, %c64_167], %784 {strides = array<i32>} : memref<8x128xf32, #tpu.memory_space<vmem>>, vector<1x64xf32>,
    %790 = tpu.concatenate %758, %784 in 1 : vector<1x64xf32>, vector<1x64xf32> -> vector<1x128xf32>
    %791 = tpu.concatenate %756, %782 in 1 : vector<1x64xf32>, vector<1x64xf32> -> vector<1x128xf32>
    %c3_i32_168 = arith.constant 3 : i32
    %792 = arith.truncf %790 : vector<1x128xf32> to vector<1x128xbf16>
    %cst_169 = arith.constant dense<0.000000e+00> : vector<1x512xf32>
    %793 = tpu.matmul %792, %579, %cst_169 {dimension_numbers = #tpu.dot_dimension_numbers<[1], [0], [0], [1], [0, 0, 1, 1], [], []>} : vector<1x128xbf16>, vector<128x512xbf16>, vector<1x512xf32> -> vector<1x512xf32>
    %794 = arith.index_cast %c3_i32_168 : i32 to index
    %c0_170 = arith.constant 0 : index
    %795 = vector.load %arg15[%794, %c0_170] : memref<8x512xf32, #tpu.memory_space<vmem>>, vector<1x256xf32>
    %796 = vector.extract_strided_slice %793 {offsets = [0, 0], sizes = [1, 256], strides = [1, 1]} : vector<1x512xf32> to vector<1x256xf32>
    %797 = arith.addf %795, %796 : vector<1x256xf32>
    %c7_i32_171 = arith.constant 7 : i32
    %798 = arith.subi %c7_i32_171, %c3_i32_168 : i32
    %799 = arith.index_cast %798 : i32 to index
    %c256_172 = arith.constant 256 : index
    %800 = vector.load %arg15[%799, %c256_172] : memref<8x512xf32, #tpu.memory_space<vmem>>, vector<1x256xf32>
    %801 = vector.extract_strided_slice %793 {offsets = [0, 256], sizes = [1, 256], strides = [1, 1]} : vector<1x512xf32> to vector<1x256xf32>
    %802 = arith.addf %800, %801 : vector<1x256xf32>
    %803 = vector.extract_strided_slice %791 {offsets = [0, 0], sizes = [1, 64], strides = [1, 1]} : vector<1x128xf32> to vector<1x64xf32>
    %804 = vector.extract_strided_slice %797 {offsets = [0, 0], sizes = [1, 64], strides = [1, 1]} : vector<1x256xf32> to vector<1x64xf32>
    %805 = arith.negf %804 : vector<1x64xf32>
    %806 = math.exp %805 : vector<1x64xf32>
    %cst_173 = arith.constant 1.000000e+00 : f32
    %807 = vector.broadcast %cst_173 : f32 to vector<1x64xf32>
    %808 = arith.addf %807, %806 : vector<1x64xf32>
    %809 = arith.divf %807, %808 : vector<1x64xf32>
    %810 = vector.extract_strided_slice %797 {offsets = [0, 64], sizes = [1, 64], strides = [1, 1]} : vector<1x256xf32> to vector<1x64xf32>
    %811 = arith.negf %810 : vector<1x64xf32>
    %812 = math.exp %811 : vector<1x64xf32>
    %cst_174 = arith.constant 1.000000e+00 : f32
    %813 = vector.broadcast %cst_174 : f32 to vector<1x64xf32>
    %814 = arith.addf %813, %812 : vector<1x64xf32>
    %815 = arith.divf %813, %814 : vector<1x64xf32>
    %816 = vector.extract_strided_slice %797 {offsets = [0, 128], sizes = [1, 64], strides = [1, 1]} : vector<1x256xf32> to vector<1x64xf32>
    %817 = math.tanh %816 : vector<1x64xf32>
    %818 = vector.extract_strided_slice %797 {offsets = [0, 192], sizes = [1, 64], strides = [1, 1]} : vector<1x256xf32> to vector<1x64xf32>
    %819 = arith.negf %818 : vector<1x64xf32>
    %820 = math.exp %819 : vector<1x64xf32>
    %cst_175 = arith.constant 1.000000e+00 : f32
    %821 = vector.broadcast %cst_175 : f32 to vector<1x64xf32>
    %822 = arith.addf %821, %820 : vector<1x64xf32>
    %823 = arith.divf %821, %822 : vector<1x64xf32>
    %824 = arith.mulf %815, %803 : vector<1x64xf32>
    %825 = arith.mulf %809, %817 : vector<1x64xf32>
    %826 = arith.addf %824, %825 : vector<1x64xf32>
    %827 = math.tanh %826 : vector<1x64xf32>
    %828 = arith.mulf %823, %827 : vector<1x64xf32>
    %829 = vector.extract_strided_slice %791 {offsets = [0, 64], sizes = [1, 64], strides = [1, 1]} : vector<1x128xf32> to vector<1x64xf32>
    %830 = vector.extract_strided_slice %802 {offsets = [0, 0], sizes = [1, 64], strides = [1, 1]} : vector<1x256xf32> to vector<1x64xf32>
    %831 = arith.negf %830 : vector<1x64xf32>
    %832 = math.exp %831 : vector<1x64xf32>
    %cst_176 = arith.constant 1.000000e+00 : f32
    %833 = vector.broadcast %cst_176 : f32 to vector<1x64xf32>
    %834 = arith.addf %833, %832 : vector<1x64xf32>
    %835 = arith.divf %833, %834 : vector<1x64xf32>
    %836 = vector.extract_strided_slice %802 {offsets = [0, 64], sizes = [1, 64], strides = [1, 1]} : vector<1x256xf32> to vector<1x64xf32>
    %837 = arith.negf %836 : vector<1x64xf32>
    %838 = math.exp %837 : vector<1x64xf32>
    %cst_177 = arith.constant 1.000000e+00 : f32
    %839 = vector.broadcast %cst_177 : f32 to vector<1x64xf32>
    %840 = arith.addf %839, %838 : vector<1x64xf32>
    %841 = arith.divf %839, %840 : vector<1x64xf32>
    %842 = vector.extract_strided_slice %802 {offsets = [0, 128], sizes = [1, 64], strides = [1, 1]} : vector<1x256xf32> to vector<1x64xf32>
    %843 = math.tanh %842 : vector<1x64xf32>
    %844 = vector.extract_strided_slice %802 {offsets = [0, 192], sizes = [1, 64], strides = [1, 1]} : vector<1x256xf32> to vector<1x64xf32>
    %845 = arith.negf %844 : vector<1x64xf32>
    %846 = math.exp %845 : vector<1x64xf32>
    %cst_178 = arith.constant 1.000000e+00 : f32
    %847 = vector.broadcast %cst_178 : f32 to vector<1x64xf32>
    %848 = arith.addf %847, %846 : vector<1x64xf32>
    %849 = arith.divf %847, %848 : vector<1x64xf32>
    %850 = arith.mulf %841, %829 : vector<1x64xf32>
    %851 = arith.mulf %835, %843 : vector<1x64xf32>
    %852 = arith.addf %850, %851 : vector<1x64xf32>
    %853 = math.tanh %852 : vector<1x64xf32>
    %854 = arith.mulf %849, %853 : vector<1x64xf32>
    %855 = arith.index_cast %c3_i32_168 : i32 to index
    %c0_179 = arith.constant 0 : index
    %856 = vector.load %arg14[%855, %c0_179] : memref<8x128xf32, #tpu.memory_space<vmem>>, vector<1x64xf32>
    tpu.vector_store %arg14[%855, %c0_179], %828 {strides = array<i32>} : memref<8x128xf32, #tpu.memory_space<vmem>>, vector<1x64xf32>,
    %c7_i32_180 = arith.constant 7 : i32
    %857 = arith.subi %c7_i32_180, %c3_i32_168 : i32
    %858 = arith.index_cast %857 : i32 to index
    %c64_181 = arith.constant 64 : index
    %859 = vector.load %arg14[%858, %c64_181] : memref<8x128xf32, #tpu.memory_space<vmem>>, vector<1x64xf32>
    tpu.vector_store %arg14[%858, %c64_181], %854 {strides = array<i32>} : memref<8x128xf32, #tpu.memory_space<vmem>>, vector<1x64xf32>,
    %860 = tpu.concatenate %828, %854 in 1 : vector<1x64xf32>, vector<1x64xf32> -> vector<1x128xf32>
    %861 = tpu.concatenate %826, %852 in 1 : vector<1x64xf32>, vector<1x64xf32> -> vector<1x128xf32>
    %c4_i32_182 = arith.constant 4 : i32
    %862 = arith.truncf %860 : vector<1x128xf32> to vector<1x128xbf16>
    %cst_183 = arith.constant dense<0.000000e+00> : vector<1x512xf32>
    %863 = tpu.matmul %862, %579, %cst_183 {dimension_numbers = #tpu.dot_dimension_numbers<[1], [0], [0], [1], [0, 0, 1, 1], [], []>} : vector<1x128xbf16>, vector<128x512xbf16>, vector<1x512xf32> -> vector<1x512xf32>
    %864 = arith.index_cast %c4_i32_182 : i32 to index
    %c0_184 = arith.constant 0 : index
    %865 = vector.load %arg15[%864, %c0_184] : memref<8x512xf32, #tpu.memory_space<vmem>>, vector<1x256xf32>
    %866 = vector.extract_strided_slice %863 {offsets = [0, 0], sizes = [1, 256], strides = [1, 1]} : vector<1x512xf32> to vector<1x256xf32>
    %867 = arith.addf %865, %866 : vector<1x256xf32>
    %c7_i32_185 = arith.constant 7 : i32
    %868 = arith.subi %c7_i32_185, %c4_i32_182 : i32
    %869 = arith.index_cast %868 : i32 to index
    %c256_186 = arith.constant 256 : index
    %870 = vector.load %arg15[%869, %c256_186] : memref<8x512xf32, #tpu.memory_space<vmem>>, vector<1x256xf32>
    %871 = vector.extract_strided_slice %863 {offsets = [0, 256], sizes = [1, 256], strides = [1, 1]} : vector<1x512xf32> to vector<1x256xf32>
    %872 = arith.addf %870, %871 : vector<1x256xf32>
    %873 = vector.extract_strided_slice %861 {offsets = [0, 0], sizes = [1, 64], strides = [1, 1]} : vector<1x128xf32> to vector<1x64xf32>
    %874 = vector.extract_strided_slice %867 {offsets = [0, 0], sizes = [1, 64], strides = [1, 1]} : vector<1x256xf32> to vector<1x64xf32>
    %875 = arith.negf %874 : vector<1x64xf32>
    %876 = math.exp %875 : vector<1x64xf32>
    %cst_187 = arith.constant 1.000000e+00 : f32
    %877 = vector.broadcast %cst_187 : f32 to vector<1x64xf32>
    %878 = arith.addf %877, %876 : vector<1x64xf32>
    %879 = arith.divf %877, %878 : vector<1x64xf32>
    %880 = vector.extract_strided_slice %867 {offsets = [0, 64], sizes = [1, 64], strides = [1, 1]} : vector<1x256xf32> to vector<1x64xf32>
    %881 = arith.negf %880 : vector<1x64xf32>
    %882 = math.exp %881 : vector<1x64xf32>
    %cst_188 = arith.constant 1.000000e+00 : f32
    %883 = vector.broadcast %cst_188 : f32 to vector<1x64xf32>
    %884 = arith.addf %883, %882 : vector<1x64xf32>
    %885 = arith.divf %883, %884 : vector<1x64xf32>
    %886 = vector.extract_strided_slice %867 {offsets = [0, 128], sizes = [1, 64], strides = [1, 1]} : vector<1x256xf32> to vector<1x64xf32>
    %887 = math.tanh %886 : vector<1x64xf32>
    %888 = vector.extract_strided_slice %867 {offsets = [0, 192], sizes = [1, 64], strides = [1, 1]} : vector<1x256xf32> to vector<1x64xf32>
    %889 = arith.negf %888 : vector<1x64xf32>
    %890 = math.exp %889 : vector<1x64xf32>
    %cst_189 = arith.constant 1.000000e+00 : f32
    %891 = vector.broadcast %cst_189 : f32 to vector<1x64xf32>
    %892 = arith.addf %891, %890 : vector<1x64xf32>
    %893 = arith.divf %891, %892 : vector<1x64xf32>
    %894 = arith.mulf %885, %873 : vector<1x64xf32>
    %895 = arith.mulf %879, %887 : vector<1x64xf32>
    %896 = arith.addf %894, %895 : vector<1x64xf32>
    %897 = math.tanh %896 : vector<1x64xf32>
    %898 = arith.mulf %893, %897 : vector<1x64xf32>
    %899 = vector.extract_strided_slice %861 {offsets = [0, 64], sizes = [1, 64], strides = [1, 1]} : vector<1x128xf32> to vector<1x64xf32>
    %900 = vector.extract_strided_slice %872 {offsets = [0, 0], sizes = [1, 64], strides = [1, 1]} : vector<1x256xf32> to vector<1x64xf32>
    %901 = arith.negf %900 : vector<1x64xf32>
    %902 = math.exp %901 : vector<1x64xf32>
    %cst_190 = arith.constant 1.000000e+00 : f32
    %903 = vector.broadcast %cst_190 : f32 to vector<1x64xf32>
    %904 = arith.addf %903, %902 : vector<1x64xf32>
    %905 = arith.divf %903, %904 : vector<1x64xf32>
    %906 = vector.extract_strided_slice %872 {offsets = [0, 64], sizes = [1, 64], strides = [1, 1]} : vector<1x256xf32> to vector<1x64xf32>
    %907 = arith.negf %906 : vector<1x64xf32>
    %908 = math.exp %907 : vector<1x64xf32>
    %cst_191 = arith.constant 1.000000e+00 : f32
    %909 = vector.broadcast %cst_191 : f32 to vector<1x64xf32>
    %910 = arith.addf %909, %908 : vector<1x64xf32>
    %911 = arith.divf %909, %910 : vector<1x64xf32>
    %912 = vector.extract_strided_slice %872 {offsets = [0, 128], sizes = [1, 64], strides = [1, 1]} : vector<1x256xf32> to vector<1x64xf32>
    %913 = math.tanh %912 : vector<1x64xf32>
    %914 = vector.extract_strided_slice %872 {offsets = [0, 192], sizes = [1, 64], strides = [1, 1]} : vector<1x256xf32> to vector<1x64xf32>
    %915 = arith.negf %914 : vector<1x64xf32>
    %916 = math.exp %915 : vector<1x64xf32>
    %cst_192 = arith.constant 1.000000e+00 : f32
    %917 = vector.broadcast %cst_192 : f32 to vector<1x64xf32>
    %918 = arith.addf %917, %916 : vector<1x64xf32>
    %919 = arith.divf %917, %918 : vector<1x64xf32>
    %920 = arith.mulf %911, %899 : vector<1x64xf32>
    %921 = arith.mulf %905, %913 : vector<1x64xf32>
    %922 = arith.addf %920, %921 : vector<1x64xf32>
    %923 = math.tanh %922 : vector<1x64xf32>
    %924 = arith.mulf %919, %923 : vector<1x64xf32>
    %925 = arith.index_cast %c4_i32_182 : i32 to index
    %c0_193 = arith.constant 0 : index
    %926 = vector.load %arg14[%925, %c0_193] : memref<8x128xf32, #tpu.memory_space<vmem>>, vector<1x64xf32>
    tpu.vector_store %arg14[%925, %c0_193], %898 {strides = array<i32>} : memref<8x128xf32, #tpu.memory_space<vmem>>, vector<1x64xf32>,
    %c7_i32_194 = arith.constant 7 : i32
    %927 = arith.subi %c7_i32_194, %c4_i32_182 : i32
    %928 = arith.index_cast %927 : i32 to index
    %c64_195 = arith.constant 64 : index
    %929 = vector.load %arg14[%928, %c64_195] : memref<8x128xf32, #tpu.memory_space<vmem>>, vector<1x64xf32>
    tpu.vector_store %arg14[%928, %c64_195], %924 {strides = array<i32>} : memref<8x128xf32, #tpu.memory_space<vmem>>, vector<1x64xf32>,
    %930 = tpu.concatenate %898, %924 in 1 : vector<1x64xf32>, vector<1x64xf32> -> vector<1x128xf32>
    %931 = tpu.concatenate %896, %922 in 1 : vector<1x64xf32>, vector<1x64xf32> -> vector<1x128xf32>
    %c5_i32_196 = arith.constant 5 : i32
    %932 = arith.truncf %930 : vector<1x128xf32> to vector<1x128xbf16>
    %cst_197 = arith.constant dense<0.000000e+00> : vector<1x512xf32>
    %933 = tpu.matmul %932, %579, %cst_197 {dimension_numbers = #tpu.dot_dimension_numbers<[1], [0], [0], [1], [0, 0, 1, 1], [], []>} : vector<1x128xbf16>, vector<128x512xbf16>, vector<1x512xf32> -> vector<1x512xf32>
    %934 = arith.index_cast %c5_i32_196 : i32 to index
    %c0_198 = arith.constant 0 : index
    %935 = vector.load %arg15[%934, %c0_198] : memref<8x512xf32, #tpu.memory_space<vmem>>, vector<1x256xf32>
    %936 = vector.extract_strided_slice %933 {offsets = [0, 0], sizes = [1, 256], strides = [1, 1]} : vector<1x512xf32> to vector<1x256xf32>
    %937 = arith.addf %935, %936 : vector<1x256xf32>
    %c7_i32_199 = arith.constant 7 : i32
    %938 = arith.subi %c7_i32_199, %c5_i32_196 : i32
    %939 = arith.index_cast %938 : i32 to index
    %c256_200 = arith.constant 256 : index
    %940 = vector.load %arg15[%939, %c256_200] : memref<8x512xf32, #tpu.memory_space<vmem>>, vector<1x256xf32>
    %941 = vector.extract_strided_slice %933 {offsets = [0, 256], sizes = [1, 256], strides = [1, 1]} : vector<1x512xf32> to vector<1x256xf32>
    %942 = arith.addf %940, %941 : vector<1x256xf32>
    %943 = vector.extract_strided_slice %931 {offsets = [0, 0], sizes = [1, 64], strides = [1, 1]} : vector<1x128xf32> to vector<1x64xf32>
    %944 = vector.extract_strided_slice %937 {offsets = [0, 0], sizes = [1, 64], strides = [1, 1]} : vector<1x256xf32> to vector<1x64xf32>
    %945 = arith.negf %944 : vector<1x64xf32>
    %946 = math.exp %945 : vector<1x64xf32>
    %cst_201 = arith.constant 1.000000e+00 : f32
    %947 = vector.broadcast %cst_201 : f32 to vector<1x64xf32>
    %948 = arith.addf %947, %946 : vector<1x64xf32>
    %949 = arith.divf %947, %948 : vector<1x64xf32>
    %950 = vector.extract_strided_slice %937 {offsets = [0, 64], sizes = [1, 64], strides = [1, 1]} : vector<1x256xf32> to vector<1x64xf32>
    %951 = arith.negf %950 : vector<1x64xf32>
    %952 = math.exp %951 : vector<1x64xf32>
    %cst_202 = arith.constant 1.000000e+00 : f32
    %953 = vector.broadcast %cst_202 : f32 to vector<1x64xf32>
    %954 = arith.addf %953, %952 : vector<1x64xf32>
    %955 = arith.divf %953, %954 : vector<1x64xf32>
    %956 = vector.extract_strided_slice %937 {offsets = [0, 128], sizes = [1, 64], strides = [1, 1]} : vector<1x256xf32> to vector<1x64xf32>
    %957 = math.tanh %956 : vector<1x64xf32>
    %958 = vector.extract_strided_slice %937 {offsets = [0, 192], sizes = [1, 64], strides = [1, 1]} : vector<1x256xf32> to vector<1x64xf32>
    %959 = arith.negf %958 : vector<1x64xf32>
    %960 = math.exp %959 : vector<1x64xf32>
    %cst_203 = arith.constant 1.000000e+00 : f32
    %961 = vector.broadcast %cst_203 : f32 to vector<1x64xf32>
    %962 = arith.addf %961, %960 : vector<1x64xf32>
    %963 = arith.divf %961, %962 : vector<1x64xf32>
    %964 = arith.mulf %955, %943 : vector<1x64xf32>
    %965 = arith.mulf %949, %957 : vector<1x64xf32>
    %966 = arith.addf %964, %965 : vector<1x64xf32>
    %967 = math.tanh %966 : vector<1x64xf32>
    %968 = arith.mulf %963, %967 : vector<1x64xf32>
    %969 = vector.extract_strided_slice %931 {offsets = [0, 64], sizes = [1, 64], strides = [1, 1]} : vector<1x128xf32> to vector<1x64xf32>
    %970 = vector.extract_strided_slice %942 {offsets = [0, 0], sizes = [1, 64], strides = [1, 1]} : vector<1x256xf32> to vector<1x64xf32>
    %971 = arith.negf %970 : vector<1x64xf32>
    %972 = math.exp %971 : vector<1x64xf32>
    %cst_204 = arith.constant 1.000000e+00 : f32
    %973 = vector.broadcast %cst_204 : f32 to vector<1x64xf32>
    %974 = arith.addf %973, %972 : vector<1x64xf32>
    %975 = arith.divf %973, %974 : vector<1x64xf32>
    %976 = vector.extract_strided_slice %942 {offsets = [0, 64], sizes = [1, 64], strides = [1, 1]} : vector<1x256xf32> to vector<1x64xf32>
    %977 = arith.negf %976 : vector<1x64xf32>
    %978 = math.exp %977 : vector<1x64xf32>
    %cst_205 = arith.constant 1.000000e+00 : f32
    %979 = vector.broadcast %cst_205 : f32 to vector<1x64xf32>
    %980 = arith.addf %979, %978 : vector<1x64xf32>
    %981 = arith.divf %979, %980 : vector<1x64xf32>
    %982 = vector.extract_strided_slice %942 {offsets = [0, 128], sizes = [1, 64], strides = [1, 1]} : vector<1x256xf32> to vector<1x64xf32>
    %983 = math.tanh %982 : vector<1x64xf32>
    %984 = vector.extract_strided_slice %942 {offsets = [0, 192], sizes = [1, 64], strides = [1, 1]} : vector<1x256xf32> to vector<1x64xf32>
    %985 = arith.negf %984 : vector<1x64xf32>
    %986 = math.exp %985 : vector<1x64xf32>
    %cst_206 = arith.constant 1.000000e+00 : f32
    %987 = vector.broadcast %cst_206 : f32 to vector<1x64xf32>
    %988 = arith.addf %987, %986 : vector<1x64xf32>
    %989 = arith.divf %987, %988 : vector<1x64xf32>
    %990 = arith.mulf %981, %969 : vector<1x64xf32>
    %991 = arith.mulf %975, %983 : vector<1x64xf32>
    %992 = arith.addf %990, %991 : vector<1x64xf32>
    %993 = math.tanh %992 : vector<1x64xf32>
    %994 = arith.mulf %989, %993 : vector<1x64xf32>
    %995 = arith.index_cast %c5_i32_196 : i32 to index
    %c0_207 = arith.constant 0 : index
    %996 = vector.load %arg14[%995, %c0_207] : memref<8x128xf32, #tpu.memory_space<vmem>>, vector<1x64xf32>
    tpu.vector_store %arg14[%995, %c0_207], %968 {strides = array<i32>} : memref<8x128xf32, #tpu.memory_space<vmem>>, vector<1x64xf32>,
    %c7_i32_208 = arith.constant 7 : i32
    %997 = arith.subi %c7_i32_208, %c5_i32_196 : i32
    %998 = arith.index_cast %997 : i32 to index
    %c64_209 = arith.constant 64 : index
    %999 = vector.load %arg14[%998, %c64_209] : memref<8x128xf32, #tpu.memory_space<vmem>>, vector<1x64xf32>
    tpu.vector_store %arg14[%998, %c64_209], %994 {strides = array<i32>} : memref<8x128xf32, #tpu.memory_space<vmem>>, vector<1x64xf32>,
    %1000 = tpu.concatenate %968, %994 in 1 : vector<1x64xf32>, vector<1x64xf32> -> vector<1x128xf32>
    %1001 = tpu.concatenate %966, %992 in 1 : vector<1x64xf32>, vector<1x64xf32> -> vector<1x128xf32>
    %c6_i32_210 = arith.constant 6 : i32
    %1002 = arith.truncf %1000 : vector<1x128xf32> to vector<1x128xbf16>
    %cst_211 = arith.constant dense<0.000000e+00> : vector<1x512xf32>
    %1003 = tpu.matmul %1002, %579, %cst_211 {dimension_numbers = #tpu.dot_dimension_numbers<[1], [0], [0], [1], [0, 0, 1, 1], [], []>} : vector<1x128xbf16>, vector<128x512xbf16>, vector<1x512xf32> -> vector<1x512xf32>
    %1004 = arith.index_cast %c6_i32_210 : i32 to index
    %c0_212 = arith.constant 0 : index
    %1005 = vector.load %arg15[%1004, %c0_212] : memref<8x512xf32, #tpu.memory_space<vmem>>, vector<1x256xf32>
    %1006 = vector.extract_strided_slice %1003 {offsets = [0, 0], sizes = [1, 256], strides = [1, 1]} : vector<1x512xf32> to vector<1x256xf32>
    %1007 = arith.addf %1005, %1006 : vector<1x256xf32>
    %c7_i32_213 = arith.constant 7 : i32
    %1008 = arith.subi %c7_i32_213, %c6_i32_210 : i32
    %1009 = arith.index_cast %1008 : i32 to index
    %c256_214 = arith.constant 256 : index
    %1010 = vector.load %arg15[%1009, %c256_214] : memref<8x512xf32, #tpu.memory_space<vmem>>, vector<1x256xf32>
    %1011 = vector.extract_strided_slice %1003 {offsets = [0, 256], sizes = [1, 256], strides = [1, 1]} : vector<1x512xf32> to vector<1x256xf32>
    %1012 = arith.addf %1010, %1011 : vector<1x256xf32>
    %1013 = vector.extract_strided_slice %1001 {offsets = [0, 0], sizes = [1, 64], strides = [1, 1]} : vector<1x128xf32> to vector<1x64xf32>
    %1014 = vector.extract_strided_slice %1007 {offsets = [0, 0], sizes = [1, 64], strides = [1, 1]} : vector<1x256xf32> to vector<1x64xf32>
    %1015 = arith.negf %1014 : vector<1x64xf32>
    %1016 = math.exp %1015 : vector<1x64xf32>
    %cst_215 = arith.constant 1.000000e+00 : f32
    %1017 = vector.broadcast %cst_215 : f32 to vector<1x64xf32>
    %1018 = arith.addf %1017, %1016 : vector<1x64xf32>
    %1019 = arith.divf %1017, %1018 : vector<1x64xf32>
    %1020 = vector.extract_strided_slice %1007 {offsets = [0, 64], sizes = [1, 64], strides = [1, 1]} : vector<1x256xf32> to vector<1x64xf32>
    %1021 = arith.negf %1020 : vector<1x64xf32>
    %1022 = math.exp %1021 : vector<1x64xf32>
    %cst_216 = arith.constant 1.000000e+00 : f32
    %1023 = vector.broadcast %cst_216 : f32 to vector<1x64xf32>
    %1024 = arith.addf %1023, %1022 : vector<1x64xf32>
    %1025 = arith.divf %1023, %1024 : vector<1x64xf32>
    %1026 = vector.extract_strided_slice %1007 {offsets = [0, 128], sizes = [1, 64], strides = [1, 1]} : vector<1x256xf32> to vector<1x64xf32>
    %1027 = math.tanh %1026 : vector<1x64xf32>
    %1028 = vector.extract_strided_slice %1007 {offsets = [0, 192], sizes = [1, 64], strides = [1, 1]} : vector<1x256xf32> to vector<1x64xf32>
    %1029 = arith.negf %1028 : vector<1x64xf32>
    %1030 = math.exp %1029 : vector<1x64xf32>
    %cst_217 = arith.constant 1.000000e+00 : f32
    %1031 = vector.broadcast %cst_217 : f32 to vector<1x64xf32>
    %1032 = arith.addf %1031, %1030 : vector<1x64xf32>
    %1033 = arith.divf %1031, %1032 : vector<1x64xf32>
    %1034 = arith.mulf %1025, %1013 : vector<1x64xf32>
    %1035 = arith.mulf %1019, %1027 : vector<1x64xf32>
    %1036 = arith.addf %1034, %1035 : vector<1x64xf32>
    %1037 = math.tanh %1036 : vector<1x64xf32>
    %1038 = arith.mulf %1033, %1037 : vector<1x64xf32>
    %1039 = vector.extract_strided_slice %1001 {offsets = [0, 64], sizes = [1, 64], strides = [1, 1]} : vector<1x128xf32> to vector<1x64xf32>
    %1040 = vector.extract_strided_slice %1012 {offsets = [0, 0], sizes = [1, 64], strides = [1, 1]} : vector<1x256xf32> to vector<1x64xf32>
    %1041 = arith.negf %1040 : vector<1x64xf32>
    %1042 = math.exp %1041 : vector<1x64xf32>
    %cst_218 = arith.constant 1.000000e+00 : f32
    %1043 = vector.broadcast %cst_218 : f32 to vector<1x64xf32>
    %1044 = arith.addf %1043, %1042 : vector<1x64xf32>
    %1045 = arith.divf %1043, %1044 : vector<1x64xf32>
    %1046 = vector.extract_strided_slice %1012 {offsets = [0, 64], sizes = [1, 64], strides = [1, 1]} : vector<1x256xf32> to vector<1x64xf32>
    %1047 = arith.negf %1046 : vector<1x64xf32>
    %1048 = math.exp %1047 : vector<1x64xf32>
    %cst_219 = arith.constant 1.000000e+00 : f32
    %1049 = vector.broadcast %cst_219 : f32 to vector<1x64xf32>
    %1050 = arith.addf %1049, %1048 : vector<1x64xf32>
    %1051 = arith.divf %1049, %1050 : vector<1x64xf32>
    %1052 = vector.extract_strided_slice %1012 {offsets = [0, 128], sizes = [1, 64], strides = [1, 1]} : vector<1x256xf32> to vector<1x64xf32>
    %1053 = math.tanh %1052 : vector<1x64xf32>
    %1054 = vector.extract_strided_slice %1012 {offsets = [0, 192], sizes = [1, 64], strides = [1, 1]} : vector<1x256xf32> to vector<1x64xf32>
    %1055 = arith.negf %1054 : vector<1x64xf32>
    %1056 = math.exp %1055 : vector<1x64xf32>
    %cst_220 = arith.constant 1.000000e+00 : f32
    %1057 = vector.broadcast %cst_220 : f32 to vector<1x64xf32>
    %1058 = arith.addf %1057, %1056 : vector<1x64xf32>
    %1059 = arith.divf %1057, %1058 : vector<1x64xf32>
    %1060 = arith.mulf %1051, %1039 : vector<1x64xf32>
    %1061 = arith.mulf %1045, %1053 : vector<1x64xf32>
    %1062 = arith.addf %1060, %1061 : vector<1x64xf32>
    %1063 = math.tanh %1062 : vector<1x64xf32>
    %1064 = arith.mulf %1059, %1063 : vector<1x64xf32>
    %1065 = arith.index_cast %c6_i32_210 : i32 to index
    %c0_221 = arith.constant 0 : index
    %1066 = vector.load %arg14[%1065, %c0_221] : memref<8x128xf32, #tpu.memory_space<vmem>>, vector<1x64xf32>
    tpu.vector_store %arg14[%1065, %c0_221], %1038 {strides = array<i32>} : memref<8x128xf32, #tpu.memory_space<vmem>>, vector<1x64xf32>,
    %c7_i32_222 = arith.constant 7 : i32
    %1067 = arith.subi %c7_i32_222, %c6_i32_210 : i32
    %1068 = arith.index_cast %1067 : i32 to index
    %c64_223 = arith.constant 64 : index
    %1069 = vector.load %arg14[%1068, %c64_223] : memref<8x128xf32, #tpu.memory_space<vmem>>, vector<1x64xf32>
    tpu.vector_store %arg14[%1068, %c64_223], %1064 {strides = array<i32>} : memref<8x128xf32, #tpu.memory_space<vmem>>, vector<1x64xf32>,
    %1070 = tpu.concatenate %1038, %1064 in 1 : vector<1x64xf32>, vector<1x64xf32> -> vector<1x128xf32>
    %1071 = tpu.concatenate %1036, %1062 in 1 : vector<1x64xf32>, vector<1x64xf32> -> vector<1x128xf32>
    %c7_i32_224 = arith.constant 7 : i32
    %1072 = arith.truncf %1070 : vector<1x128xf32> to vector<1x128xbf16>
    %cst_225 = arith.constant dense<0.000000e+00> : vector<1x512xf32>
    %1073 = tpu.matmul %1072, %579, %cst_225 {dimension_numbers = #tpu.dot_dimension_numbers<[1], [0], [0], [1], [0, 0, 1, 1], [], []>} : vector<1x128xbf16>, vector<128x512xbf16>, vector<1x512xf32> -> vector<1x512xf32>
    %1074 = arith.index_cast %c7_i32_224 : i32 to index
    %c0_226 = arith.constant 0 : index
    %1075 = vector.load %arg15[%1074, %c0_226] : memref<8x512xf32, #tpu.memory_space<vmem>>, vector<1x256xf32>
    %1076 = vector.extract_strided_slice %1073 {offsets = [0, 0], sizes = [1, 256], strides = [1, 1]} : vector<1x512xf32> to vector<1x256xf32>
    %1077 = arith.addf %1075, %1076 : vector<1x256xf32>
    %c7_i32_227 = arith.constant 7 : i32
    %1078 = arith.subi %c7_i32_227, %c7_i32_224 : i32
    %1079 = arith.index_cast %1078 : i32 to index
    %c256_228 = arith.constant 256 : index
    %1080 = vector.load %arg15[%1079, %c256_228] : memref<8x512xf32, #tpu.memory_space<vmem>>, vector<1x256xf32>
    %1081 = vector.extract_strided_slice %1073 {offsets = [0, 256], sizes = [1, 256], strides = [1, 1]} : vector<1x512xf32> to vector<1x256xf32>
    %1082 = arith.addf %1080, %1081 : vector<1x256xf32>
    %1083 = vector.extract_strided_slice %1071 {offsets = [0, 0], sizes = [1, 64], strides = [1, 1]} : vector<1x128xf32> to vector<1x64xf32>
    %1084 = vector.extract_strided_slice %1077 {offsets = [0, 0], sizes = [1, 64], strides = [1, 1]} : vector<1x256xf32> to vector<1x64xf32>
    %1085 = arith.negf %1084 : vector<1x64xf32>
    %1086 = math.exp %1085 : vector<1x64xf32>
    %cst_229 = arith.constant 1.000000e+00 : f32
    %1087 = vector.broadcast %cst_229 : f32 to vector<1x64xf32>
    %1088 = arith.addf %1087, %1086 : vector<1x64xf32>
    %1089 = arith.divf %1087, %1088 : vector<1x64xf32>
    %1090 = vector.extract_strided_slice %1077 {offsets = [0, 64], sizes = [1, 64], strides = [1, 1]} : vector<1x256xf32> to vector<1x64xf32>
    %1091 = arith.negf %1090 : vector<1x64xf32>
    %1092 = math.exp %1091 : vector<1x64xf32>
    %cst_230 = arith.constant 1.000000e+00 : f32
    %1093 = vector.broadcast %cst_230 : f32 to vector<1x64xf32>
    %1094 = arith.addf %1093, %1092 : vector<1x64xf32>
    %1095 = arith.divf %1093, %1094 : vector<1x64xf32>
    %1096 = vector.extract_strided_slice %1077 {offsets = [0, 128], sizes = [1, 64], strides = [1, 1]} : vector<1x256xf32> to vector<1x64xf32>
    %1097 = math.tanh %1096 : vector<1x64xf32>
    %1098 = vector.extract_strided_slice %1077 {offsets = [0, 192], sizes = [1, 64], strides = [1, 1]} : vector<1x256xf32> to vector<1x64xf32>
    %1099 = arith.negf %1098 : vector<1x64xf32>
    %1100 = math.exp %1099 : vector<1x64xf32>
    %cst_231 = arith.constant 1.000000e+00 : f32
    %1101 = vector.broadcast %cst_231 : f32 to vector<1x64xf32>
    %1102 = arith.addf %1101, %1100 : vector<1x64xf32>
    %1103 = arith.divf %1101, %1102 : vector<1x64xf32>
    %1104 = arith.mulf %1095, %1083 : vector<1x64xf32>
    %1105 = arith.mulf %1089, %1097 : vector<1x64xf32>
    %1106 = arith.addf %1104, %1105 : vector<1x64xf32>
    %1107 = math.tanh %1106 : vector<1x64xf32>
    %1108 = arith.mulf %1103, %1107 : vector<1x64xf32>
    %1109 = vector.extract_strided_slice %1071 {offsets = [0, 64], sizes = [1, 64], strides = [1, 1]} : vector<1x128xf32> to vector<1x64xf32>
    %1110 = vector.extract_strided_slice %1082 {offsets = [0, 0], sizes = [1, 64], strides = [1, 1]} : vector<1x256xf32> to vector<1x64xf32>
    %1111 = arith.negf %1110 : vector<1x64xf32>
    %1112 = math.exp %1111 : vector<1x64xf32>
    %cst_232 = arith.constant 1.000000e+00 : f32
    %1113 = vector.broadcast %cst_232 : f32 to vector<1x64xf32>
    %1114 = arith.addf %1113, %1112 : vector<1x64xf32>
    %1115 = arith.divf %1113, %1114 : vector<1x64xf32>
    %1116 = vector.extract_strided_slice %1082 {offsets = [0, 64], sizes = [1, 64], strides = [1, 1]} : vector<1x256xf32> to vector<1x64xf32>
    %1117 = arith.negf %1116 : vector<1x64xf32>
    %1118 = math.exp %1117 : vector<1x64xf32>
    %cst_233 = arith.constant 1.000000e+00 : f32
    %1119 = vector.broadcast %cst_233 : f32 to vector<1x64xf32>
    %1120 = arith.addf %1119, %1118 : vector<1x64xf32>
    %1121 = arith.divf %1119, %1120 : vector<1x64xf32>
    %1122 = vector.extract_strided_slice %1082 {offsets = [0, 128], sizes = [1, 64], strides = [1, 1]} : vector<1x256xf32> to vector<1x64xf32>
    %1123 = math.tanh %1122 : vector<1x64xf32>
    %1124 = vector.extract_strided_slice %1082 {offsets = [0, 192], sizes = [1, 64], strides = [1, 1]} : vector<1x256xf32> to vector<1x64xf32>
    %1125 = arith.negf %1124 : vector<1x64xf32>
    %1126 = math.exp %1125 : vector<1x64xf32>
    %cst_234 = arith.constant 1.000000e+00 : f32
    %1127 = vector.broadcast %cst_234 : f32 to vector<1x64xf32>
    %1128 = arith.addf %1127, %1126 : vector<1x64xf32>
    %1129 = arith.divf %1127, %1128 : vector<1x64xf32>
    %1130 = arith.mulf %1121, %1109 : vector<1x64xf32>
    %1131 = arith.mulf %1115, %1123 : vector<1x64xf32>
    %1132 = arith.addf %1130, %1131 : vector<1x64xf32>
    %1133 = math.tanh %1132 : vector<1x64xf32>
    %1134 = arith.mulf %1129, %1133 : vector<1x64xf32>
    %1135 = arith.index_cast %c7_i32_224 : i32 to index
    %c0_235 = arith.constant 0 : index
    %1136 = vector.load %arg14[%1135, %c0_235] : memref<8x128xf32, #tpu.memory_space<vmem>>, vector<1x64xf32>
    tpu.vector_store %arg14[%1135, %c0_235], %1108 {strides = array<i32>} : memref<8x128xf32, #tpu.memory_space<vmem>>, vector<1x64xf32>,
    %c7_i32_236 = arith.constant 7 : i32
    %1137 = arith.subi %c7_i32_236, %c7_i32_224 : i32
    %1138 = arith.index_cast %1137 : i32 to index
    %c64_237 = arith.constant 64 : index
    %1139 = vector.load %arg14[%1138, %c64_237] : memref<8x128xf32, #tpu.memory_space<vmem>>, vector<1x64xf32>
    tpu.vector_store %arg14[%1138, %c64_237], %1134 {strides = array<i32>} : memref<8x128xf32, #tpu.memory_space<vmem>>, vector<1x64xf32>,
    %1140 = tpu.concatenate %1108, %1134 in 1 : vector<1x64xf32>, vector<1x64xf32> -> vector<1x128xf32>
    %1141 = tpu.concatenate %1106, %1132 in 1 : vector<1x64xf32>, vector<1x64xf32> -> vector<1x128xf32>
    %c8_i32_238 = arith.constant 8 : i32
    %c0_239 = arith.constant 0 : index
    %c0_240 = arith.constant 0 : index
    %1142 = vector.load %arg8[%c0_239, %c0_240] : memref<1x64xf32, #tpu.memory_space<vmem>>, vector<1x64xf32>
    %1143 = arith.truncf %1142 : vector<1x64xf32> to vector<1x64xbf16>
    %c0_241 = arith.constant 0 : index
    %c0_242 = arith.constant 0 : index
    %1144 = vector.load %arg9[%c0_241, %c0_242] : memref<64x64xbf16, #tpu.memory_space<vmem>>, vector<64x64xbf16>
    %cst_243 = arith.constant dense<0.000000e+00> : vector<1x64xf32>
    %1145 = tpu.matmul %1143, %1144, %cst_243 {dimension_numbers = #tpu.dot_dimension_numbers<[1], [0], [0], [1], [0, 0, 1, 1], [], []>} : vector<1x64xbf16>, vector<64x64xbf16>, vector<1x64xf32> -> vector<1x64xf32>
    %c0_244 = arith.constant 0 : index
    %c0_245 = arith.constant 0 : index
    %1146 = vector.load %arg10[%c0_244, %c0_245] : memref<1x64xf32, #tpu.memory_space<vmem>>, vector<1x64xf32>
    %1147 = arith.addf %1145, %1146 : vector<1x64xf32>
    %1148 = arith.truncf %1147 : vector<1x64xf32> to vector<1x64xbf16>
    %c0_246 = arith.constant 0 : index
    %c0_247 = arith.constant 0 : index
    %1149 = vector.load %arg11[%c0_246, %c0_247] : memref<64x32xbf16, #tpu.memory_space<vmem>>, vector<64x32xbf16>
    %cst_248 = arith.constant dense<0.000000e+00> : vector<1x32xf32>
    %1150 = tpu.matmul %1148, %1149, %cst_248 {dimension_numbers = #tpu.dot_dimension_numbers<[1], [0], [0], [1], [0, 0, 1, 1], [], []>} : vector<1x64xbf16>, vector<64x32xbf16>, vector<1x32xf32> -> vector<1x32xf32>
    %c0_249 = arith.constant 0 : index
    %c0_250 = arith.constant 0 : index
    %1151 = vector.load %arg12[%c0_249, %c0_250] : memref<1x32xf32, #tpu.memory_space<vmem>>, vector<1x32xf32>
    %1152 = arith.addf %1150, %1151 : vector<1x32xf32>
    %cst_251 = arith.constant 0.000000e+00 : f32
    %1153 = vector.broadcast %cst_251 : f32 to vector<1x32xf32>
    %1154 = arith.maximumf %1152, %1153 : vector<1x32xf32>
    %c0_252 = arith.constant 0 : index
    %c0_253 = arith.constant 0 : index
    %1155 = vector.load %arg14[%c0_252, %c0_253] : memref<8x128xf32, #tpu.memory_space<vmem>>, vector<8x128xf32>
    %c0_254 = arith.constant 0 : index
    %c0_255 = arith.constant 0 : index
    %1156 = vector.load %arg13[%c0_254, %c0_255] : memref<8x160xf32, #tpu.memory_space<vmem>>, vector<8x128xf32>
    tpu.vector_store %arg13[%c0_254, %c0_255], %1155 {strides = array<i32>} : memref<8x160xf32, #tpu.memory_space<vmem>>, vector<8x128xf32>,
    %1157 = vector.shape_cast %1154 : vector<1x32xf32> to vector<1x32xf32>
    %1158 = vector.broadcast %1157 : vector<1x32xf32> to vector<8x32xf32>
    %c0_256 = arith.constant 0 : index
    %c128 = arith.constant 128 : index
    %1159 = vector.load %arg13[%c0_256, %c128] : memref<8x160xf32, #tpu.memory_space<vmem>>, vector<8x32xf32>
    tpu.vector_store %arg13[%c0_256, %c128], %1158 {strides = array<i32>} : memref<8x160xf32, #tpu.memory_space<vmem>>, vector<8x32xf32>,
    return
  }
  func.func @transform_0(%arg0: i32) -> (i32, i32) {
    %c0_i32 = arith.constant 0 : i32
    %c0_i32_0 = arith.constant 0 : i32
    %c0_i32_1 = arith.constant 0 : i32
    return %c0_i32, %c0_i32_0 : i32, i32
  }
  func.func @transform_1(%arg0: i32) -> (i32, i32) {
    %c0_i32 = arith.constant 0 : i32
    %c0_i32_0 = arith.constant 0 : i32
    %c0_i32_1 = arith.constant 0 : i32
    return %c0_i32, %c0_i32_0 : i32, i32
  }
  func.func @transform_2(%arg0: i32) -> (i32, i32) {
    %c0_i32 = arith.constant 0 : i32
    %c0_i32_0 = arith.constant 0 : i32
    %c0_i32_1 = arith.constant 0 : i32
    return %c0_i32, %c0_i32_0 : i32, i32
  }
  func.func @transform_3(%arg0: i32) -> (i32, i32) {
    %c0_i32 = arith.constant 0 : i32
    %c0_i32_0 = arith.constant 0 : i32
    %c0_i32_1 = arith.constant 0 : i32
    return %c0_i32, %c0_i32_0 : i32, i32
  }
  func.func @transform_4(%arg0: i32) -> (i32, i32) {
    %c0_i32 = arith.constant 0 : i32
    %c0_i32_0 = arith.constant 0 : i32
    %c0_i32_1 = arith.constant 0 : i32
    return %c0_i32, %c0_i32_0 : i32, i32
  }
  func.func @transform_5(%arg0: i32) -> (i32, i32) {
    %c0_i32 = arith.constant 0 : i32
    %c0_i32_0 = arith.constant 0 : i32
    %c0_i32_1 = arith.constant 0 : i32
    return %c0_i32, %c0_i32_0 : i32, i32
  }
  func.func @transform_6(%arg0: i32) -> (i32, i32) {
    %c0_i32 = arith.constant 0 : i32
    %c0_i32_0 = arith.constant 0 : i32
    %c0_i32_1 = arith.constant 0 : i32
    return %c0_i32, %c0_i32_0 : i32, i32
  }
  func.func @transform_7(%arg0: i32) -> (i32, i32) {
    %c0_i32 = arith.constant 0 : i32
    %c0_i32_0 = arith.constant 0 : i32
    %c0_i32_1 = arith.constant 0 : i32
    return %c0_i32, %c0_i32_0 : i32, i32
  }
  func.func @transform_8(%arg0: i32) -> (i32, i32) {
    %c0_i32 = arith.constant 0 : i32
    %c0_i32_0 = arith.constant 0 : i32
    %c0_i32_1 = arith.constant 0 : i32
    return %c0_i32, %c0_i32_0 : i32, i32
  }
  func.func @transform_9(%arg0: i32) -> (i32, i32) {
    %c0_i32 = arith.constant 0 : i32
    %c0_i32_0 = arith.constant 0 : i32
    %c0_i32_1 = arith.constant 0 : i32
    return %c0_i32, %c0_i32_0 : i32, i32
  }
  func.func @transform_10(%arg0: i32) -> (i32, i32) {
    %c0_i32 = arith.constant 0 : i32
    %c0_i32_0 = arith.constant 0 : i32
    %c0_i32_1 = arith.constant 0 : i32
    return %c0_i32, %c0_i32_0 : i32, i32
  }
  func.func @transform_11(%arg0: i32) -> (i32, i32) {
    %c0_i32 = arith.constant 0 : i32
    %c0_i32_0 = arith.constant 0 : i32
    %c0_i32_1 = arith.constant 0 : i32
    return %c0_i32, %c0_i32_0 : i32, i32
  }
  func.func @transform_12(%arg0: i32) -> (i32, i32) {
    %c0_i32 = arith.constant 0 : i32
    %c0_i32_0 = arith.constant 0 : i32
    %c0_i32_1 = arith.constant 0 : i32
    return %c0_i32, %c0_i32_0 : i32, i32
  }
}

</mosaic_0001>

<bundles_post_ra>
// kernel: tpu_custom_call.1
= control target key start
LH: loop header
LB: loop body
LE: loop exit
PB: predicated region body
PF: predicated region fallthrough
CT: control target
= control target key end

     0   :  { %17 = vsyncpa [#allocation5], 0  ;;  %s7173_s0 = inlined_call_operand.vmem [shape: f32[8,64], index: 0, kind: input, shape index: {}]   ;;  %s7174_s1 = inlined_call_operand.hbm [shape: bf16[64,512], index: 1, kind: input, shape index: {}]   ;;  %s7175_s2 = inlined_call_operand.hbm [shape: bf16[128,512], index: 2, kind: input, shape index: {}]   ;;  %s7176_s3 = inlined_call_operand.vmem [shape: f32[1,512], index: 3, kind: input, shape index: {}]   ;;  %s7177_s4 = inlined_call_operand.hbm [shape: bf16[128,512], index: 4, kind: input, shape index: {}]   ;;  %s7178_s5 = inlined_call_operand.hbm [shape: bf16[128,512], index: 5, kind: input, shape index: {}]   ;;  %s7179_s6 = inlined_call_operand.vmem [shape: f32[1,512], index: 6, kind: input, shape index: {}]   ;;  %s7180_s7 = inlined_call_operand.vmem [shape: f32[1,64], index: 7, kind: input, shape index: {}]   ;;  %s7181_s8 = inlined_call_operand.vmem [shape: bf16[64,64], index: 8, kind: input, shape index: {}]   ;;  %s7182_s9 = inlined_call_operand.vmem [shape: f32[1,64], index: 9, kind: input, shape index: {}]   ;;  %s7183_s10 = inlined_call_operand.vmem [shape: bf16[64,32], index: 10, kind: input, shape index: {}]   ;;  %s7184_s11 = inlined_call_operand.vmem [shape: f32[1,32], index: 11, kind: input, shape index: {}]   ;;  %s7185_s12 = inlined_call_operand.hbm [shape: f32[8,160], index: 12, kind: output, shape index: {}]  }
   0x1   :  { %18 = vsyncpa [#allocation8], 0 }
   0x2   :  { %19 = vsyncpa [#allocation11], 0 }
   0x3   :  { %20 = vsyncpa [#allocation6], 0  ;;  %s5742_s21 = smov [#allocation7]   ;;  %s5743_s23 = smov [#allocation4]  }
   0x4   :  { %s40_s22 = sshll.u32 %s5742_s21, 4  ;;  %s28_s24 = sshll.u32 %s5743_s23, 4  ;;  %s41_s22 = int_to_ptr.vmem [resolvable:$true] %s40_s22  ;;  %s5819_s24 = int_to_ptr.vmem [resolvable:$true] %s28_s24 }
   0x5   :  { %s5624_s27 = scalar_lea.hbm %s7175_s2, 4096 }
   0x6   :  { %p5625_p0 = scmp.ne.s32.totalorder %s7175_s2, %s5624_s27  ;;  %p5628_p1 = scmp.lt.u32.totalorder %s5624_s27, %s7175_s2 }
   0x8   :  { %p5630_p2 = pnand %p5628_p1, %p5625_p0 }
   0xa   :  { %5633 = shalt.err (!%p5630_p2)
}
   0xb   :  { %s5634_s14 = scalar_lea.vmem %s41_s22, 4096  ;;  %p5639_p4 = scmp.lt.s32.totalorder %s41_s22, %s41_s22 }
   0xc   :  { %p5635_p3 = scmp.ne.s32.totalorder %s41_s22, %s5634_s14  ;;  %p5640_p5 = scmp.lt.s32.totalorder %s5634_s14, %s5634_s14 }
   0xe   :  { %p5641_p6 = por %p5640_p5, %p5639_p4 }
  0x10   :  { %p5642_p7 = pnand %p5641_p6, %p5635_p3 }
  0x12   :  { %5645 = shalt.err (!%p5642_p7)
}
  0x13   :  { %s5744_s15 = smov 256   ;;  %s5745_s16 = smov 16  }
  0x14   :  { %46 = dma.hbm_to_vmem [thread:$0]  %s7175_s2, 4096, %s41_s22, [#allocation8], %s5744_s15, %s5744_s15, %s5745_s16  }
  0x15   :  { %s5646_s21 = scalar_lea.hbm %s7174_s1, 2048 }
  0x16   :  { %p5647_p8 = scmp.ne.s32.totalorder %s7174_s1, %s5646_s21  ;;  %p5650_p9 = scmp.lt.u32.totalorder %s5646_s21, %s7174_s1 }
  0x18   :  { %p5652_p10 = pnand %p5650_p9, %p5647_p8 }
  0x1a   :  { %5655 = shalt.err (!%p5652_p10)
}
  0x1b   :  { %s5656_s28 = scalar_lea.vmem %s5819_s24, 2048  ;;  %p5661_p12 = scmp.lt.s32.totalorder %s5819_s24, %s5819_s24 }
  0x1c   :  { %p5657_p11 = scmp.ne.s32.totalorder %s5819_s24, %s5656_s28  ;;  %p5662_p13 = scmp.lt.s32.totalorder %s5656_s28, %s5656_s28 }
  0x1e   :  { %p5663_p0 = por %p5662_p13, %p5661_p12 }
  0x20   :  { %p5664_p1 = pnand %p5663_p0, %p5657_p11 }
  0x22   :  { %5667 = shalt.err (!%p5664_p1)
}
  0x23   :  { %34 = dma.hbm_to_vmem [thread:$0]  %s7174_s1, 2048, %s5819_s24, [#allocation5], %s5744_s15, %s5744_s15, %s5745_s16  }
  0x24   :  { %s5746_s29 = smov [#allocation9]   ;;  %s5747_s13 = smov [#allocation10]  }
  0x25   :  { %s54_s30 = sshll.u32 %s5746_s29, 4  ;;  %s66_s14 = sshll.u32 %s5747_s13, 4  ;;  %s55_s30 = int_to_ptr.vmem [resolvable:$true] %s54_s30  ;;  %s5856_s14 = int_to_ptr.vmem [resolvable:$true] %s66_s14 }
  0x26   :  { %s5668_s19 = scalar_lea.hbm %s7177_s4, 4096 }
  0x27   :  { %p5669_p2 = scmp.ne.s32.totalorder %s7177_s4, %s5668_s19  ;;  %p5672_p3 = scmp.lt.u32.totalorder %s5668_s19, %s7177_s4 }
  0x29   :  { %p5674_p4 = pnand %p5672_p3, %p5669_p2 }
  0x2b   :  { %5677 = shalt.err (!%p5674_p4)
}
  0x2c   :  { %s5678_s1 = scalar_lea.vmem %s55_s30, 4096  ;;  %p5683_p6 = scmp.lt.s32.totalorder %s55_s30, %s55_s30 }
  0x2d   :  { %p5679_p5 = scmp.ne.s32.totalorder %s55_s30, %s5678_s1  ;;  %p5684_p7 = scmp.lt.s32.totalorder %s5678_s1, %s5678_s1 }
  0x2f   :  { %p5685_p8 = por %p5684_p7, %p5683_p6 }
  0x31   :  { %p5686_p9 = pnand %p5685_p8, %p5679_p5 }
  0x33   :  { %5689 = shalt.err (!%p5686_p9)
}
  0x34   :  { %60 = dma.hbm_to_vmem [thread:$0]  %s7177_s4, 4096, %s55_s30, [#allocation8], %s5744_s15, %s5744_s15, %s5745_s16  }
  0x35   :  { %s5690_s2 = scalar_lea.hbm %s7178_s5, 4096 }
  0x36   :  { %p5691_p10 = scmp.ne.s32.totalorder %s7178_s5, %s5690_s2  ;;  %p5694_p11 = scmp.lt.u32.totalorder %s5690_s2, %s7178_s5 }
  0x38   :  { %p5696_p12 = pnand %p5694_p11, %p5691_p10 }
  0x3a   :  { %5699 = shalt.err (!%p5696_p12)
}
  0x3b   :  { %s5700_s18 = scalar_lea.vmem %s5856_s14, 4096  ;;  %p5705_p0 = scmp.lt.s32.totalorder %s5856_s14, %s5856_s14 }
  0x3c   :  { %p5701_p13 = scmp.ne.s32.totalorder %s5856_s14, %s5700_s18  ;;  %p5706_p1 = scmp.lt.s32.totalorder %s5700_s18, %s5700_s18 }
  0x3e   :  { %p5707_p2 = por %p5706_p1, %p5705_p0 }
  0x40   :  { %p5708_p3 = pnand %p5707_p2, %p5701_p13 }
  0x42   :  { %5711 = shalt.err (!%p5708_p3)
}
  0x43   :  { %72 = dma.hbm_to_vmem [thread:$0]  %s7178_s5, 4096, %s5856_s14, [#allocation11], %s5744_s15, %s5744_s15, %s5745_s16  }
  0x44   :  { %5734 = dma.done.wait [#allocation5], 2048  }
  0x45   :  { %5735 = vsyncadd [#allocation5], 4294965248 }
  0x46   :  { %5736 = dma.done.wait [#allocation8], 8192  }
  0x47   :  { %5737 = vsyncadd [#allocation8], 4294959104 }
  0x48   :  { %5738 = dma.done.wait [#allocation11], 4096  }
  0x49   :  { %5739 = vsyncadd [#allocation11], 4294963200  ;;  %v5748_v0 = vmov 0   ;;  %v5000_v1 = vld [vmem:[#allocation4 + $0x4] ss:$16 sps:$4 sm:$0xff]   ;;  %v98_v17 = vld [vmem:[%s7173_s0] sm:$0xff]  ;;  %v118_v51 = vlaneseq }
  0x4a   :  { %295 = vmatprep.mubr.bf16.mxu1 %v5748_v0  ;;  %254 = vmatprep.mubr.bf16.mxu0 %v5748_v0  ;;  %v5002_v2 = vld [vmem:[#allocation4 + $0xc] ss:$16 sps:$4 sm:$0xff]   ;;  %v5004_v3 = vld [vmem:[#allocation4] ss:$16 sps:$4 sm:$0xff]   ;;  %v5005_v4 = vld [vmem:[#allocation4 + $0x8] ss:$16 sps:$4 sm:$0xff]   ;;  %v99_v20 = vpack.c.bf16 %v98_v17, %v98_v17 }
  0x4b   :  { %222 = vmatprep.subr.bf16.mxu0 %v5000_v1  ;;  %263 = vmatprep.subr.bf16.mxu1 %v5002_v2  ;;  %v5006_v5 = vld [vmem:[#allocation4 + $0x24] ss:$16 sps:$4 sm:$0xff]   ;;  %v5008_v6 = vld [vmem:[#allocation4 + $0x2c] ss:$16 sps:$4 sm:$0xff]   ;;  %v5010_v7 = vld [vmem:[#allocation4 + $0x20] ss:$16 sps:$4 sm:$0xff]  }
  0x4c   :  { %223 = vmatpush1.bf16.msra.mxu0 %v5004_v3  ;;  %264 = vmatpush1.bf16.msra.mxu1 %v5005_v4  ;;  %v5011_v8 = vld [vmem:[#allocation4 + $0x28] ss:$16 sps:$4 sm:$0xff]   ;;  %v5012_v9 = vld [vmem:[#allocation4 + $0x44] ss:$16 sps:$4 sm:$0xff]   ;;  %v5014_v10 = vld [vmem:[#allocation4 + $0x4c] ss:$16 sps:$4 sm:$0xff]  }
  0x4d   :  { %224 = vmatprep.subr.bf16.mxu0 %v5006_v5  ;;  %265 = vmatprep.subr.bf16.mxu1 %v5008_v6  ;;  %v5016_v11 = vld [vmem:[#allocation4 + $0x40] ss:$16 sps:$4 sm:$0xff]   ;;  %v5017_v12 = vld [vmem:[#allocation4 + $0x48] ss:$16 sps:$4 sm:$0xff]   ;;  %v5018_v13 = vld [vmem:[#allocation4 + $0x64] ss:$16 sps:$4 sm:$0xff]  }
  0x4e   :  { %v5020_v14 = vld [vmem:[#allocation4 + $0x6c] ss:$16 sps:$4 sm:$0xff]   ;;  %v5022_v15 = vld [vmem:[#allocation4 + $0x60] ss:$16 sps:$4 sm:$0xff]   ;;  %v5023_v16 = vld [vmem:[#allocation4 + $0x68] ss:$16 sps:$4 sm:$0xff]  }
  0x4f   :  { %v5898_v18 = vld [vmem:[#allocation7 + $0x4] ss:$16 sps:$4 sm:$0xff]   ;;  %v5900_v19 = vld [vmem:[#allocation7 + $0xc] ss:$16 sps:$4 sm:$0xff]   ;;  %v5902_v21 = vld [vmem:[#allocation7] ss:$16 sps:$4 sm:$0xff]  }
  0x50   :  { %225 = vmatpush1.bf16.msra.mxu0 %v5010_v7  ;;  %266 = vmatpush1.bf16.msra.mxu1 %v5011_v8  ;;  %v5904_v22 = vld [vmem:[#allocation7 + $0x8] ss:$16 sps:$4 sm:$0xff]   ;;  %vm218_vm0 = vcmask 523264   ;;  %v5906_v23 = vld [vmem:[#allocation7 + $0x24] ss:$16 sps:$4 sm:$0xff]   ;;  %v6036_v52 = vshrl.u32 %v118_v51, 7 }
  0x51   :  { %226 = vmatprep.subr.bf16.mxu0 %v5012_v9  ;;  %267 = vmatprep.subr.bf16.mxu1 %v5014_v10  ;;  %v5910_v24 = vld [vmem:[#allocation7 + $0x2c] ss:$16 sps:$4 sm:$0xff]   ;;  %v5914_v25 = vld [vmem:[#allocation7 + $0x20] ss:$16 sps:$4 sm:$0xff]   ;;  %v5918_v26 = vld [vmem:[#allocation7 + $0x28] ss:$16 sps:$4 sm:$0xff]  }
  0x52   :  { %v5922_v27 = vld [vmem:[#allocation7 + $0x44] ss:$16 sps:$4 sm:$0xff]   ;;  %v5924_v28 = vld [vmem:[#allocation7 + $0x4c] ss:$16 sps:$4 sm:$0xff]   ;;  %v5928_v29 = vld [vmem:[#allocation7 + $0x40] ss:$16 sps:$4 sm:$0xff]  }
  0x53   :  { %v5930_v30 = vld [vmem:[#allocation7 + $0x48] ss:$16 sps:$4 sm:$0xff]   ;;  %v5934_v31 = vld [vmem:[#allocation7 + $0x64] ss:$16 sps:$4 sm:$0xff]   ;;  %v5938_v32 = vld [vmem:[#allocation7 + $0x6c] ss:$16 sps:$4 sm:$0xff]  }
  0x54   :  { %227 = vmatpush1.bf16.msra.mxu0 %v5016_v11  ;;  %268 = vmatpush1.bf16.msra.mxu1 %v5017_v12  ;;  %v5940_v33 = vld [vmem:[#allocation7 + $0x60] ss:$16 sps:$4 sm:$0xff]   ;;  %v5944_v34 = vld [vmem:[#allocation7 + $0x68] ss:$16 sps:$4 sm:$0xff]   ;;  %v5948_v35 = vld [vmem:[#allocation7 + $0x84] ss:$16 sps:$4 sm:$0xff]  }
  0x55   :  { %228 = vmatprep.subr.bf16.mxu0 %v5018_v13  ;;  %269 = vmatprep.subr.bf16.mxu1 %v5020_v14  ;;  %v5950_v36 = vld [vmem:[#allocation7 + $0x8c] ss:$16 sps:$4 sm:$0xff]   ;;  %v5952_v37 = vld [vmem:[#allocation7 + $0x80] ss:$16 sps:$4 sm:$0xff]   ;;  %v5954_v38 = vld [vmem:[#allocation7 + $0x88] ss:$16 sps:$4 sm:$0xff]  }
  0x56   :  { %v5958_v39 = vld [vmem:[#allocation7 + $0xa4] ss:$16 sps:$4 sm:$0xff]   ;;  %v5960_v40 = vld [vmem:[#allocation7 + $0xac] ss:$16 sps:$4 sm:$0xff]   ;;  %v5964_v41 = vld [vmem:[#allocation7 + $0xa0] ss:$16 sps:$4 sm:$0xff]  }
  0x57   :  { %v5966_v42 = vld [vmem:[#allocation7 + $0xa8] ss:$16 sps:$4 sm:$0xff]   ;;  %v5968_v43 = vld [vmem:[#allocation7 + $0xc4] ss:$16 sps:$4 sm:$0xff]   ;;  %v5970_v44 = vld [vmem:[#allocation7 + $0xcc] ss:$16 sps:$4 sm:$0xff]  }
  0x58   :  { %229 = vmatpush1.bf16.msra.mxu0 %v5022_v15  ;;  %270 = vmatpush1.bf16.msra.mxu1 %v5023_v16  ;;  %v5976_v45 = vld [vmem:[#allocation7 + $0xc0] ss:$16 sps:$4 sm:$0xff]   ;;  %v5978_v46 = vld [vmem:[#allocation7 + $0xc8] ss:$16 sps:$4 sm:$0xff]   ;;  %v5980_v47 = vld [vmem:[#allocation7 + $0xe4] ss:$16 sps:$4 sm:$0xff]  }
  0x59   :  { %500 = vmatprep.subr.bf16.mxu0 %v5898_v18  ;;  %541 = vmatprep.subr.bf16.mxu1 %v5900_v19  ;;  %v5982_v48 = vld [vmem:[#allocation7 + $0xec] ss:$16 sps:$4 sm:$0xff]   ;;  %v5988_v49 = vld [vmem:[#allocation7 + $0xe0] ss:$16 sps:$4 sm:$0xff]   ;;  %v5990_v50 = vld [vmem:[#allocation7 + $0xe8] ss:$16 sps:$4 sm:$0xff]  }
  0x5a   :  { %v6039_v53 = vsub.s32 0, %v6036_v52  ;;  %v128_v54 = vsub.s32 2, %v6036_v52  ;;  %v116_v55 = vld [vmem:[%s7176_s3] sm:$0xf]  ;;  %v132_v56 = vsub.s32 3, %v6036_v52  ;;  %v124_v57 = vsub.s32 1, %v6036_v52 }
  0x5b   :  { %4783 = vmatmul.mubr.msk.bf16.vlgmr.msra.gmra.mrb[0].mxu1 %vm218_vm0, %v99_v20  ;;  %4782 = vmatmul.mubr.msk.bf16.vlgmr.msra.gmra.mrb[0].mxu0 %vm218_vm0, %v99_v20  ;;  %v5749_v11 = vmov 1966171168   ;;  %s5750_s3 = smov 64   ;;  %vm689_vm1 = vcmask 516096   ;;  %vm699_vm2 = vcmask 1040896   ;;  %vm5752_vm3 = vmmov 0  }
  0x5c   :  { %501 = vmatpush1.bf16.msra.mxu0 %v5902_v21  ;;  %542 = vmatpush1.bf16.msra.mxu1 %v5904_v22  ;;  %v129_v58 = vrot.slane %v116_v55, %v128_v54  ;;  %v121_v59 = vrot.slane %v116_v55, %v6039_v53  ;;  %v133_v60 = vrot.slane %v116_v55, %v132_v56  ;;  %v587_v12 = vunpack.c.l.s4 %v5749_v11 }
  0x5d   :  { %502 = vmatprep.subr.bf16.mxu0 %v5906_v23  ;;  %543 = vmatprep.subr.bf16.mxu1 %v5910_v24  ;;  %v125_v61 = vrot.slane %v116_v55, %v124_v57  ;;  %vm4747_vm4 = vcmask 261120  }
  0x5e   :  { %532 = vmatprep.mubr.bf16.mxu0 %v5748_v0  ;;  %573 = vmatprep.mubr.bf16.mxu1 %v5748_v0  ;;  %v588_v13 = vunpack.c.0.s8 %v587_v12 }
  0x60   :  { %503 = vmatpush1.bf16.msra.mxu0 %v5914_v25  ;;  %544 = vmatpush1.bf16.msra.mxu1 %v5918_v26  ;;  %v6055_v14 = vsub.s32 %v588_v13, %v6036_v52 }
  0x61   :  { %504 = vmatprep.subr.bf16.mxu0 %v5922_v27  ;;  %545 = vmatprep.subr.bf16.mxu1 %v5924_v28 }
  0x64   :  { %505 = vmatpush1.bf16.msra.mxu0 %v5928_v29  ;;  %546 = vmatpush1.bf16.msra.mxu1 %v5930_v30 }
  0x65   :  { %506 = vmatprep.subr.bf16.mxu0 %v5934_v31  ;;  %547 = vmatprep.subr.bf16.mxu1 %v5938_v32 }
  0x68   :  { %507 = vmatpush1.bf16.msra.mxu0 %v5940_v33  ;;  %548 = vmatpush1.bf16.msra.mxu1 %v5944_v34 }
  0x69   :  { %508 = vmatprep.subr.bf16.mxu0 %v5948_v35  ;;  %549 = vmatprep.subr.bf16.mxu1 %v5950_v36 }
  0x6c   :  { %509 = vmatpush1.bf16.msra.mxu0 %v5952_v37  ;;  %550 = vmatpush1.bf16.msra.mxu1 %v5954_v38 }
  0x6d   :  { %510 = vmatprep.subr.bf16.mxu0 %v5958_v39  ;;  %551 = vmatprep.subr.bf16.mxu1 %v5960_v40 }
  0x70   :  { %511 = vmatpush1.bf16.msra.mxu0 %v5964_v41  ;;  %552 = vmatpush1.bf16.msra.mxu1 %v5966_v42 }
  0x71   :  { %512 = vmatprep.subr.bf16.mxu0 %v5968_v43  ;;  %553 = vmatprep.subr.bf16.mxu1 %v5970_v44 }
  0x74   :  { %513 = vmatpush1.bf16.msra.mxu0 %v5976_v45  ;;  %554 = vmatpush1.bf16.msra.mxu1 %v5978_v46 }
  0x75   :  { %514 = vmatprep.subr.bf16.mxu0 %v5980_v47  ;;  %555 = vmatprep.subr.bf16.mxu1 %v5982_v48 }
  0x78   :  { %515 = vmatpush1.bf16.msra.mxu0 %v5988_v49  ;;  %556 = vmatpush1.bf16.msra.mxu1 %v5990_v50 }
  0x79   :  { %712 = vmatprep.subr.bf16.mxu0 %v5898_v18  ;;  %753 = vmatprep.subr.bf16.mxu1 %v5900_v19 }
  0x7b   :  { %533 = vmatmul.mubr.bf16.vlgmr.msra.gmra.mrb[4].mxu0 %v5748_v0  ;;  %574 = vmatmul.mubr.bf16.vlgmr.msra.gmra.mrb[4].mxu1 %v5748_v0 }
  0x7c   :  { %713 = vmatpush1.bf16.msra.mxu0 %v5902_v21  ;;  %754 = vmatpush1.bf16.msra.mxu1 %v5904_v22 }
  0x7d   :  { %714 = vmatprep.subr.bf16.mxu0 %v5906_v23  ;;  %755 = vmatprep.subr.bf16.mxu1 %v5910_v24 }
  0x7e   :  { %744 = vmatprep.mubr.bf16.mxu0 %v5748_v0  ;;  %785 = vmatprep.mubr.bf16.mxu1 %v5748_v0 }
  0x80   :  { %715 = vmatpush1.bf16.msra.mxu0 %v5914_v25  ;;  %756 = vmatpush1.bf16.msra.mxu1 %v5918_v26 }
  0x81   :  { %716 = vmatprep.subr.bf16.mxu0 %v5922_v27  ;;  %757 = vmatprep.subr.bf16.mxu1 %v5924_v28 }
  0x84   :  { %717 = vmatpush1.bf16.msra.mxu0 %v5928_v29  ;;  %758 = vmatpush1.bf16.msra.mxu1 %v5930_v30 }
  0x85   :  { %718 = vmatprep.subr.bf16.mxu0 %v5934_v31  ;;  %759 = vmatprep.subr.bf16.mxu1 %v5938_v32 }
  0x88   :  { %719 = vmatpush1.bf16.msra.mxu0 %v5940_v33  ;;  %760 = vmatpush1.bf16.msra.mxu1 %v5944_v34 }
  0x89   :  { %720 = vmatprep.subr.bf16.mxu0 %v5948_v35  ;;  %761 = vmatprep.subr.bf16.mxu1 %v5950_v36 }
  0x8c   :  { %721 = vmatpush1.bf16.msra.mxu0 %v5952_v37  ;;  %762 = vmatpush1.bf16.msra.mxu1 %v5954_v38 }
  0x8d   :  { %722 = vmatprep.subr.bf16.mxu0 %v5958_v39  ;;  %763 = vmatprep.subr.bf16.mxu1 %v5960_v40 }
  0x90   :  { %723 = vmatpush1.bf16.msra.mxu0 %v5964_v41  ;;  %764 = vmatpush1.bf16.msra.mxu1 %v5966_v42 }
  0x91   :  { %724 = vmatprep.subr.bf16.mxu0 %v5968_v43  ;;  %765 = vmatprep.subr.bf16.mxu1 %v5970_v44 }
  0x94   :  { %725 = vmatpush1.bf16.msra.mxu0 %v5976_v45  ;;  %766 = vmatpush1.bf16.msra.mxu1 %v5978_v46 }
  0x95   :  { %726 = vmatprep.subr.bf16.mxu0 %v5980_v47  ;;  %767 = vmatprep.subr.bf16.mxu1 %v5982_v48 }
  0x98   :  { %727 = vmatpush1.bf16.msra.mxu0 %v5988_v49  ;;  %768 = vmatpush1.bf16.msra.mxu1 %v5990_v50 }
  0x99   :  { %941 = vmatprep.subr.bf16.mxu0 %v5898_v18  ;;  %982 = vmatprep.subr.bf16.mxu1 %v5900_v19 }
 0x12e   :  { %v297_v62 = vpop.f32.mrb[0].mxu1  ;;  %v256_v63 = vpop.f32.mrb[0].mxu0 }
 0x12f   :  { %v298_v1 = vadd.f32 %v297_v62, %v129_v58  ;;  %v299_v2 = vpop.f32.mrb[1].mxu1  ;;  %v257_v3 = vadd.f32 %v256_v63, %v121_v59  ;;  %v258_v4 = vpop.f32.mrb[1].mxu0 }
 0x130   :  { %v300_v5 = vadd.f32 %v299_v2, %v133_v60  ;;  %v301_v6 = vpop.f32.mrb[2].mxu1  ;;  %v259_v7 = vadd.f32 %v258_v4, %v125_v61  ;;  %v260_v8 = vpop.f32.mrb[2].mxu0 }
 0x131   :  { %306 = vst [vmem:[#allocation3 + $0x10] sm:$0xff] %v298_v1  ;;  %v302_v9 = vpop.f32.mrb[3].mxu1  ;;  %304 = vst [vmem:[#allocation3] sm:$0xff] %v257_v3  ;;  %v261_v10 = vpop.f32.mrb[3].mxu0 }
 0x132   :  { %307 = vst [vmem:[#allocation3 + $0x18] sm:$0xff] %v300_v5  ;;  %305 = vst [vmem:[#allocation3 + $0x8] sm:$0xff] %v259_v7 }
 0x139   :  { %v582_v1 = vld [vmem:[#allocation3] ss:$8 sm:$0x3]  ;;  %v603_v4 = vld [vmem:[#allocation3 + $0x17] ss:$8 sm:$0x3] }
 0x14e   :  { %v534_v15 = vpop.f32.mrb[4].mxu0  ;;  %v575_v16 = vpop.f32.mrb[4].mxu1 }
 0x14f   :  { %v536_v17 = vpop.f32.mrb[5].mxu0  ;;  %v577_v20 = vpop.f32.mrb[5].mxu1 }
 0x150   :  { %v585_v51 = vcombine.low %v534_v15, %v536_v17  ;;  %v606_v55 = vcombine.low %v575_v16, %v577_v20  ;;  %v579_v58 = vpop.f32.mrb[6].mxu1  ;;  %v538_v59 = vpop.f32.mrb[6].mxu0 }
 0x151   :  { %v580_v60 = vpop.f32.mrb[7].mxu1  ;;  %v539_v61 = vpop.f32.mrb[7].mxu0 }
 0x152   :  { %v592_v62 = vrot.slane %v585_v51, %v6055_v14  ;;  %v613_v63 = vrot.slane %v606_v55, %v6055_v14 }
 0x154   :  { %v599_v2 = vrot.slane %v592_v62, %v6055_v14  ;;  %v620_v3 = vrot.slane %v613_v63, %v6055_v14 }
 0x156   :  { %v601_v5 = vadd.f32 %v599_v2, %v582_v1  ;;  %v622_v6 = vadd.f32 %v620_v3, %v603_v4 }
 0x158   :  { %v4816_v7 = vmul.f32 -1.442695, %v601_v5  ;;  %v4818_v8 = vmul.f32 -1.442695, %v622_v6  ;;  %v630_v9 = vrot.slane %v601_v5, 1  ;;  %v663_v11 = vrot.slane %v622_v6, 1 }
 0x15a   :  { %5176 = vpow2.f32 %v4816_v7 }
 0x15b   :  { %5178 = vpow2.f32 %v4818_v8 }
 0x15c   :  { %5180 = vtanh.f32 %v630_v9 }
 0x164   :  { %v5177_v10 = vpop.eup %5176 }
 0x165   :  { %v626_v12 = vadd.f32 1.0, %v5177_v10  ;;  %v5179_v13 = vpop.eup %5178 }
 0x166   :  { %v659_v15 = vadd.f32 1.0, %v5179_v13  ;;  %v5181_v16 = vpop.eup %5180 }
 0x167   :  { %5182 = vrcp.f32 %v626_v12 }
 0x168   :  { %5184 = vtanh.f32 %v663_v11 }
 0x169   :  { %5186 = vrcp.f32 %v659_v15 }
 0x171   :  { %v5183_v17 = vpop.eup %5182 }
 0x172   :  { %v5185_v20 = vpop.eup %5184  ;;  %v644_v51 = vmul.f32 %v5183_v17, %v5181_v16  ;;  %v643_v63 = vmul.f32 0.0, %v5183_v17 }
 0x173   :  { %v5187_v55 = vpop.eup %5186 }
 0x174   :  { %v677_v58 = vmul.f32 %v5187_v55, %v5185_v20  ;;  %646 = vrot.lane.b32.xlu1 %v644_v51, %s5750_s3  ;;  %v676_v59 = vmul.f32 0.0, %v5187_v55 }
 0x176   :  { %679 = vrot.lane.b32.xlu0 %v677_v58, %s5750_s3 }
 0x17a   :  { %666 = vrot.lane.b32.xlu0 %v622_v6, %s5750_s3 }
 0x17e   :  { %633 = vrot.lane.b32.xlu0 %v601_v5, %s5750_s3 }
 0x1e6   :  { %v647_v61 = vpop.permute.xlu1 %646 }
 0x1e7   :  { %v649_v1 = vadd.f32 %v647_v61, %v643_v63 }
 0x1e8   :  { %v680_v60 = vpop.permute.xlu0 %679 }
 0x1e9   :  { %v6065_v62 = vadd.f32 %v680_v60, %v676_v59  ;;  %v706_v4 = vrot.slane %v649_v1, %v6039_v53 }
 0x1eb   :  { %5188 = vtanh.f32 %v6065_v62 }
 0x1ec   :  { %5190 = vtanh.f32 %v649_v1  ;;  %v667_v5 = vpop.permute.xlu0 %666 }
 0x1ed   :  { %v668_v6 = vrot.slane %v667_v5, 1 }
 0x1ef   :  { %v4819_v8 = vmul.f32 -1.442695, %v668_v6 }
 0x1f0   :  { %v634_v7 = vpop.permute.xlu0 %633 }
 0x1f1   :  { %v635_v9 = vrot.slane %v634_v7, 1  ;;  %5192 = vpow2.f32 %v4819_v8 }
 0x1f3   :  { %v4817_v10 = vmul.f32 -1.442695, %v635_v9 }
 0x1f5   :  { %v5189_v2 = vpop.eup %5188  ;;  %5194 = vpow2.f32 %v4817_v10 }
 0x1f6   :  { %685 = vrot.lane.b32.xlu1 %v5189_v2, %s5750_s3  ;;  %v5191_v3 = vpop.eup %5190 }
 0x1fa   :  { %652 = vrot.lane.b32.xlu1 %v5191_v3, %s5750_s3 }
 0x1fb   :  { %v5193_v11 = vpop.eup %5192 }
 0x1fc   :  { %v673_v12 = vadd.f32 1.0, %v5193_v11 }
 0x1fe   :  { %707 = vrot.lane.b32.xlu1 %v706_v4, %s5750_s3  ;;  %5196 = vrcp.f32 %v673_v12 }
 0x1ff   :  { %v5195_v13 = vpop.eup %5194 }
 0x200   :  { %v640_v15 = vadd.f32 1.0, %v5195_v13 }
 0x202   :  { %5198 = vrcp.f32 %v640_v15 }
 0x208   :  { %v5197_v16 = vpop.eup %5196 }
 0x20c   :  { %v5199_v55 = vpop.eup %5198 }
 0x268   :  { %v686_v17 = vpop.permute.xlu1 %685 }
 0x269   :  { %v688_v20 = vmul.f32 %v5197_v16, %v686_v17  ;;  %v795_v16 = vld [vmem:[#allocation3 + $0x1] ss:$8 sm:$0x3]  ;;  %v816_v17 = vld [vmem:[#allocation3 + $0x16] ss:$8 sm:$0x3] }
 0x26b   :  { %v695_v51 = vrot.slane %v688_v20, %v6039_v53 }
 0x26c   :  { %v653_v58 = vpop.permute.xlu1 %652 }
 0x26d   :  { %v655_v59 = vmul.f32 %v5199_v55, %v653_v58  ;;  %696 = vrot.lane.b32.xlu0 %v695_v51, %s5750_s3 }
 0x26f   :  { %690 = vst.msk [vmem:[#allocation2] sm:$0x1] %vm689_vm1, %v655_v59 }
 0x2df   :  { %v697_v60 = vpop.permute.xlu0 %696 }
 0x2e0   :  { %700 = vst.msk [vmem:[#allocation2 + $0x7] sm:$0x1] %vm699_vm2, %v697_v60  ;;  %v701_v61 = vsel %vm218_vm0, %v655_v59, %v697_v60 }
 0x2e1   :  { %v711_v63 = vpack.c.bf16 %v701_v61, %v701_v61 }
 0x2e3   :  { %745 = vmatmul.mubr.bf16.vlgmr.msra.gmra.mrb[8].mxu0 %v711_v63  ;;  %786 = vmatmul.mubr.bf16.vlgmr.msra.gmra.mrb[8].mxu1 %v711_v63 }
 0x2e4   :  { %942 = vmatpush1.bf16.msra.mxu0 %v5902_v21  ;;  %983 = vmatpush1.bf16.msra.mxu1 %v5904_v22 }
 0x2e5   :  { %943 = vmatprep.subr.bf16.mxu0 %v5906_v23  ;;  %984 = vmatprep.subr.bf16.mxu1 %v5910_v24 }
 0x2e6   :  { %973 = vmatprep.mubr.bf16.mxu0 %v5748_v0  ;;  %1014 = vmatprep.mubr.bf16.mxu1 %v5748_v0 }
 0x2e8   :  { %944 = vmatpush1.bf16.msra.mxu0 %v5914_v25  ;;  %985 = vmatpush1.bf16.msra.mxu1 %v5918_v26 }
 0x2e9   :  { %945 = vmatprep.subr.bf16.mxu0 %v5922_v27  ;;  %986 = vmatprep.subr.bf16.mxu1 %v5924_v28 }
 0x2ec   :  { %946 = vmatpush1.bf16.msra.mxu0 %v5928_v29  ;;  %987 = vmatpush1.bf16.msra.mxu1 %v5930_v30 }
 0x2ed   :  { %947 = vmatprep.subr.bf16.mxu0 %v5934_v31  ;;  %988 = vmatprep.subr.bf16.mxu1 %v5938_v32 }
 0x2f0   :  { %948 = vmatpush1.bf16.msra.mxu0 %v5940_v33  ;;  %989 = vmatpush1.bf16.msra.mxu1 %v5944_v34 }
 0x2f1   :  { %949 = vmatprep.subr.bf16.mxu0 %v5948_v35  ;;  %990 = vmatprep.subr.bf16.mxu1 %v5950_v36 }
 0x2f4   :  { %950 = vmatpush1.bf16.msra.mxu0 %v5952_v37  ;;  %991 = vmatpush1.bf16.msra.mxu1 %v5954_v38 }
 0x2f5   :  { %951 = vmatprep.subr.bf16.mxu0 %v5958_v39  ;;  %992 = vmatprep.subr.bf16.mxu1 %v5960_v40 }
 0x2f8   :  { %952 = vmatpush1.bf16.msra.mxu0 %v5964_v41  ;;  %993 = vmatpush1.bf16.msra.mxu1 %v5966_v42 }
 0x2f9   :  { %953 = vmatprep.subr.bf16.mxu0 %v5968_v43  ;;  %994 = vmatprep.subr.bf16.mxu1 %v5970_v44 }
 0x2fc   :  { %954 = vmatpush1.bf16.msra.mxu0 %v5976_v45  ;;  %995 = vmatpush1.bf16.msra.mxu1 %v5978_v46 }
 0x2fd   :  { %955 = vmatprep.subr.bf16.mxu0 %v5980_v47  ;;  %996 = vmatprep.subr.bf16.mxu1 %v5982_v48 }
 0x300   :  { %956 = vmatpush1.bf16.msra.mxu0 %v5988_v49  ;;  %997 = vmatpush1.bf16.msra.mxu1 %v5990_v50 }
 0x301   :  { %1170 = vmatprep.subr.bf16.mxu0 %v5898_v18  ;;  %1211 = vmatprep.subr.bf16.mxu1 %v5900_v19 }
 0x3b6   :  { %v746_v1 = vpop.f32.mrb[8].mxu0  ;;  %v787_v2 = vpop.f32.mrb[8].mxu1 }
 0x3b7   :  { %v748_v3 = vpop.f32.mrb[9].mxu0  ;;  %v789_v4 = vpop.f32.mrb[9].mxu1 }
 0x3b8   :  { %v798_v5 = vcombine.low %v746_v1, %v748_v3  ;;  %v819_v6 = vcombine.low %v787_v2, %v789_v4  ;;  %v750_v7 = vpop.f32.mrb[10].mxu0  ;;  %v791_v8 = vpop.f32.mrb[10].mxu1 }
 0x3b9   :  { %v751_v9 = vpop.f32.mrb[11].mxu0  ;;  %v792_v10 = vpop.f32.mrb[11].mxu1 }
 0x3ba   :  { %v805_v11 = vrot.slane %v798_v5, %v6055_v14  ;;  %v826_v12 = vrot.slane %v819_v6, %v6055_v14  ;;  %v708_v3 = vpop.permute.xlu1 %707 }
 0x3bb   :  { %v710_v6 = vsel %vm218_vm0, %v708_v3, %v6065_v62 }
 0x3bc   :  { %v812_v13 = vrot.slane %v805_v11, %v6055_v14  ;;  %v833_v15 = vrot.slane %v826_v12, %v6055_v14  ;;  %v863_v10 = vrot.slane %v710_v6, %v6055_v14 }
 0x3be   :  { %v814_v20 = vadd.f32 %v812_v13, %v795_v16  ;;  %v835_v51 = vadd.f32 %v833_v15, %v816_v17  ;;  %v870_v12 = vrot.slane %v863_v10, %v6055_v14 }
 0x3c0   :  { %v4820_v55 = vmul.f32 -1.442695, %v814_v20  ;;  %897 = vrot.lane.b32.xlu1 %v835_v51, %s5750_s3  ;;  %v4822_v58 = vmul.f32 -1.442695, %v835_v51  ;;  %v843_v59 = vrot.slane %v814_v20, 1  ;;  %v894_v61 = vrot.slane %v835_v51, 1 }
 0x3c2   :  { %5200 = vpow2.f32 %v4820_v55 }
 0x3c3   :  { %5202 = vpow2.f32 %v4822_v58 }
 0x3c4   :  { %5204 = vtanh.f32 %v843_v59 }
 0x3cc   :  { %v5201_v60 = vpop.eup %5200 }
 0x3cd   :  { %v839_v63 = vadd.f32 1.0, %v5201_v60  ;;  %v5203_v1 = vpop.eup %5202 }
 0x3ce   :  { %v890_v2 = vadd.f32 1.0, %v5203_v1  ;;  %v5205_v4 = vpop.eup %5204 }
 0x3cf   :  { %5206 = vrcp.f32 %v839_v63 }
 0x3d0   :  { %5208 = vtanh.f32 %v894_v61 }
 0x3d1   :  { %5210 = vrcp.f32 %v890_v2 }
 0x3d9   :  { %v5207_v5 = vpop.eup %5206 }
 0x3da   :  { %v5209_v7 = vpop.eup %5208  ;;  %v875_v8 = vmul.f32 %v5207_v5, %v5205_v4 }
 0x3db   :  { %v5211_v9 = vpop.eup %5210 }
 0x3dc   :  { %v908_v11 = vmul.f32 %v5211_v9, %v5209_v7  ;;  %877 = vrot.lane.b32.xlu1 %v875_v8, %s5750_s3  ;;  %v907_v13 = vmul.f32 %v5211_v9, %v710_v6 }
 0x3de   :  { %910 = vrot.lane.b32.xlu0 %v908_v11, %s5750_s3 }
 0x3e0   :  { %846 = vrot.lane.b32.xlu1 %v814_v20, %s5750_s3 }
 0x3e2   :  { %871 = vrot.lane.b32.xlu0 %v870_v12, %s5750_s3 }
 0x432   :  { %v898_v62 = vpop.permute.xlu1 %897 }
 0x433   :  { %v899_v61 = vrot.slane %v898_v62, 1 }
 0x435   :  { %v4823_v1 = vmul.f32 -1.442695, %v899_v61 }
 0x44e   :  { %v878_v55 = vpop.permute.xlu1 %877 }
 0x450   :  { %v911_v15 = vpop.permute.xlu0 %910 }
 0x451   :  { %v6124_v16 = vadd.f32 %v911_v15, %v907_v13 }
 0x452   :  { %v847_v63 = vpop.permute.xlu1 %846 }
 0x453   :  { %5212 = vtanh.f32 %v6124_v16  ;;  %v848_v2 = vrot.slane %v847_v63, 1 }
 0x454   :  { %v872_v17 = vpop.permute.xlu0 %871 }
 0x455   :  { %v874_v51 = vmul.f32 %v5207_v5, %v872_v17  ;;  %v4821_v3 = vmul.f32 -1.442695, %v848_v2 }
 0x457   :  { %v880_v58 = vadd.f32 %v878_v55, %v874_v51 }
 0x459   :  { %5214 = vtanh.f32 %v880_v58  ;;  %v935_v60 = vrot.slane %v880_v58, %v6039_v53 }
 0x45a   :  { %5216 = vpow2.f32 %v4823_v1 }
 0x45b   :  { %5218 = vpow2.f32 %v4821_v3 }
 0x45d   :  { %v5213_v59 = vpop.eup %5212 }
 0x45e   :  { %916 = vrot.lane.b32.xlu0 %v5213_v59, %s5750_s3 }
 0x463   :  { %v5215_v20 = vpop.eup %5214 }
 0x464   :  { %883 = vrot.lane.b32.xlu0 %v5215_v20, %s5750_s3  ;;  %v5217_v4 = vpop.eup %5216 }
 0x465   :  { %v904_v5 = vadd.f32 1.0, %v5217_v4  ;;  %v5219_v6 = vpop.eup %5218 }
 0x466   :  { %v853_v7 = vadd.f32 1.0, %v5219_v6 }
 0x467   :  { %5220 = vrcp.f32 %v904_v5 }
 0x468   :  { %936 = vrot.lane.b32.xlu0 %v935_v60, %s5750_s3  ;;  %5222 = vrcp.f32 %v853_v7 }
 0x471   :  { %v5221_v8 = vpop.eup %5220 }
 0x472   :  { %v5223_v12 = vpop.eup %5222 }
 0x4d0   :  { %v917_v9 = vpop.permute.xlu0 %916 }
 0x4d1   :  { %v919_v10 = vmul.f32 %v5221_v8, %v917_v9 }
 0x4d3   :  { %v925_v11 = vrot.slane %v919_v10, %v6039_v53 }
 0x4d5   :  { %926 = vrot.lane.b32.xlu1 %v925_v11, %s5750_s3 }
 0x4d6   :  { %v884_v13 = vpop.permute.xlu0 %883 }
 0x4d7   :  { %v886_v15 = vmul.f32 %v5223_v12, %v884_v13 }
 0x4d9   :  { %920 = vst.msk [vmem:[#allocation2 + $0x1] sm:$0x1] %vm689_vm1, %v886_v15 }
 0x547   :  { %v927_v62 = vpop.permute.xlu1 %926 }
 0x548   :  { %929 = vst.msk [vmem:[#allocation2 + $0x6] sm:$0x1] %vm699_vm2, %v927_v62  ;;  %v930_v17 = vsel %vm218_vm0, %v886_v15, %v927_v62 }
 0x549   :  { %v940_v51 = vpack.c.bf16 %v930_v17, %v930_v17 }
 0x54b   :  { %974 = vmatmul.mubr.bf16.vlgmr.msra.gmra.mrb[12].mxu0 %v940_v51  ;;  %1015 = vmatmul.mubr.bf16.vlgmr.msra.gmra.mrb[12].mxu1 %v940_v51 }
 0x54c   :  { %1171 = vmatpush1.bf16.msra.mxu0 %v5902_v21  ;;  %1212 = vmatpush1.bf16.msra.mxu1 %v5904_v22 }
 0x54d   :  { %1172 = vmatprep.subr.bf16.mxu0 %v5906_v23  ;;  %1213 = vmatprep.subr.bf16.mxu1 %v5910_v24 }
 0x54e   :  { %1202 = vmatprep.mubr.bf16.mxu0 %v5748_v0  ;;  %1243 = vmatprep.mubr.bf16.mxu1 %v5748_v0 }
 0x550   :  { %1173 = vmatpush1.bf16.msra.mxu0 %v5914_v25  ;;  %1214 = vmatpush1.bf16.msra.mxu1 %v5918_v26 }
 0x551   :  { %1174 = vmatprep.subr.bf16.mxu0 %v5922_v27  ;;  %1215 = vmatprep.subr.bf16.mxu1 %v5924_v28 }
 0x554   :  { %1175 = vmatpush1.bf16.msra.mxu0 %v5928_v29  ;;  %1216 = vmatpush1.bf16.msra.mxu1 %v5930_v30 }
 0x555   :  { %1176 = vmatprep.subr.bf16.mxu0 %v5934_v31  ;;  %1217 = vmatprep.subr.bf16.mxu1 %v5938_v32 }
 0x558   :  { %1177 = vmatpush1.bf16.msra.mxu0 %v5940_v33  ;;  %1218 = vmatpush1.bf16.msra.mxu1 %v5944_v34  ;;  %v1024_v34 = vld [vmem:[#allocation3 + $0x2] ss:$8 sm:$0x3] }
 0x559   :  { %1178 = vmatprep.subr.bf16.mxu0 %v5948_v35  ;;  %1219 = vmatprep.subr.bf16.mxu1 %v5950_v36 }
 0x55c   :  { %1179 = vmatpush1.bf16.msra.mxu0 %v5952_v37  ;;  %1220 = vmatpush1.bf16.msra.mxu1 %v5954_v38 }
 0x55d   :  { %1180 = vmatprep.subr.bf16.mxu0 %v5958_v39  ;;  %1221 = vmatprep.subr.bf16.mxu1 %v5960_v40 }
 0x560   :  { %1181 = vmatpush1.bf16.msra.mxu0 %v5964_v41  ;;  %1222 = vmatpush1.bf16.msra.mxu1 %v5966_v42 }
 0x561   :  { %1182 = vmatprep.subr.bf16.mxu0 %v5968_v43  ;;  %1223 = vmatprep.subr.bf16.mxu1 %v5970_v44 }
 0x564   :  { %1183 = vmatpush1.bf16.msra.mxu0 %v5976_v45  ;;  %1224 = vmatpush1.bf16.msra.mxu1 %v5978_v46  ;;  %v937_v45 = vpop.permute.xlu0 %936 }
 0x565   :  { %1184 = vmatprep.subr.bf16.mxu0 %v5980_v47  ;;  %1225 = vmatprep.subr.bf16.mxu1 %v5982_v48  ;;  %v939_v58 = vsel %vm218_vm0, %v937_v45, %v6124_v16  ;;  %v6236_v45 = vld [vmem:[#allocation7 + $0x68] ss:$16 sps:$4 sm:$0xff]  }
 0x566   :  { %v1092_v61 = vrot.slane %v939_v58, %v6055_v14 }
 0x568   :  { %1185 = vmatpush1.bf16.msra.mxu0 %v5988_v49  ;;  %1226 = vmatpush1.bf16.msra.mxu1 %v5990_v50  ;;  %v1099_v1 = vrot.slane %v1092_v61, %v6055_v14  ;;  %v6257_v61 = vld [vmem:[#allocation7 + $0xa0] ss:$16 sps:$4 sm:$0xff]  }
 0x569   :  { %1399 = vmatprep.subr.bf16.mxu0 %v5898_v18  ;;  %1440 = vmatprep.subr.bf16.mxu1 %v5900_v19  ;;  %v1045_v19 = vld [vmem:[#allocation3 + $0x15] ss:$8 sm:$0x3] }
 0x61e   :  { %v975_v21 = vpop.f32.mrb[12].mxu0  ;;  %v1016_v22 = vpop.f32.mrb[12].mxu1 }
 0x61f   :  { %v977_v23 = vpop.f32.mrb[13].mxu0  ;;  %v1018_v24 = vpop.f32.mrb[13].mxu1 }
 0x620   :  { %v1027_v25 = vcombine.low %v975_v21, %v977_v23  ;;  %v1048_v26 = vcombine.low %v1016_v22, %v1018_v24  ;;  %v979_v27 = vpop.f32.mrb[14].mxu0  ;;  %v1020_v28 = vpop.f32.mrb[14].mxu1 }
 0x621   :  { %v980_v29 = vpop.f32.mrb[15].mxu0  ;;  %v1021_v30 = vpop.f32.mrb[15].mxu1 }
 0x622   :  { %v1034_v31 = vrot.slane %v1027_v25, %v6055_v14  ;;  %v1055_v32 = vrot.slane %v1048_v26, %v6055_v14 }
 0x624   :  { %v1041_v33 = vrot.slane %v1034_v31, %v6055_v14  ;;  %v1062_v18 = vrot.slane %v1055_v32, %v6055_v14 }
 0x626   :  { %v1043_v35 = vadd.f32 %v1041_v33, %v1024_v34  ;;  %v1064_v36 = vadd.f32 %v1062_v18, %v1045_v19  ;;  %v6195_v18 = vld [vmem:[#allocation7] ss:$16 sps:$4 sm:$0xff]   ;;  %v6198_v34 = vld [vmem:[#allocation7 + $0x8] ss:$16 sps:$4 sm:$0xff]   ;;  %v6201_v19 = vld [vmem:[#allocation7 + $0x24] ss:$16 sps:$4 sm:$0xff]  }
 0x628   :  { %v4824_v37 = vmul.f32 -1.442695, %v1043_v35  ;;  %1126 = vrot.lane.b32.xlu0 %v1064_v36, %s5750_s3  ;;  %v4826_v38 = vmul.f32 -1.442695, %v1064_v36  ;;  %v1072_v39 = vrot.slane %v1043_v35, 1  ;;  %v1123_v41 = vrot.slane %v1064_v36, 1 }
 0x629   :  { %v6209_v36 = vld [vmem:[#allocation7 + $0x20] ss:$16 sps:$4 sm:$0xff]  }
 0x62a   :  { %5224 = vpow2.f32 %v4824_v37  ;;  %v6212_v37 = vld [vmem:[#allocation7 + $0x28] ss:$16 sps:$4 sm:$0xff]  }
 0x62b   :  { %5226 = vpow2.f32 %v4826_v38  ;;  %v6215_v38 = vld [vmem:[#allocation7 + $0x44] ss:$16 sps:$4 sm:$0xff]  }
 0x62c   :  { %5228 = vtanh.f32 %v1072_v39  ;;  %v6218_v39 = vld [vmem:[#allocation7 + $0x4c] ss:$16 sps:$4 sm:$0xff]  }
 0x634   :  { %v5225_v40 = vpop.eup %5224 }
 0x635   :  { %v1068_v42 = vadd.f32 1.0, %v5225_v40  ;;  %v5227_v43 = vpop.eup %5226  ;;  %v6221_v40 = vld [vmem:[#allocation7 + $0x40] ss:$16 sps:$4 sm:$0xff]  }
 0x636   :  { %v1119_v44 = vadd.f32 1.0, %v5227_v43  ;;  %v5229_v46 = vpop.eup %5228  ;;  %v6230_v43 = vld [vmem:[#allocation7 + $0x6c] ss:$16 sps:$4 sm:$0xff]  }
 0x637   :  { %5230 = vrcp.f32 %v1068_v42  ;;  %v6227_v42 = vld [vmem:[#allocation7 + $0x64] ss:$16 sps:$4 sm:$0xff]  }
 0x638   :  { %5232 = vtanh.f32 %v1123_v41  ;;  %v6224_v41 = vld [vmem:[#allocation7 + $0x48] ss:$16 sps:$4 sm:$0xff]  }
 0x639   :  { %5234 = vrcp.f32 %v1119_v44  ;;  %v6233_v44 = vld [vmem:[#allocation7 + $0x60] ss:$16 sps:$4 sm:$0xff]  }
 0x641   :  { %v5231_v55 = vpop.eup %5230 }
 0x642   :  { %v5233_v59 = vpop.eup %5232  ;;  %v1104_v20 = vmul.f32 %v5231_v55, %v5229_v46  ;;  %v6239_v46 = vld [vmem:[#allocation7 + $0x84] ss:$16 sps:$4 sm:$0xff]  }
 0x643   :  { %v5235_v60 = vpop.eup %5234 }
 0x644   :  { %v1137_v63 = vmul.f32 %v5235_v60, %v5233_v59  ;;  %1106 = vrot.lane.b32.xlu0 %v1104_v20, %s5750_s3  ;;  %v1136_v2 = vmul.f32 %v5235_v60, %v939_v58  ;;  %v6245_v58 = vld [vmem:[#allocation7 + $0x80] ss:$16 sps:$4 sm:$0xff]   ;;  %v6248_v59 = vld [vmem:[#allocation7 + $0x88] ss:$16 sps:$4 sm:$0xff]   ;;  %v6251_v20 = vld [vmem:[#allocation7 + $0xa4] ss:$16 sps:$4 sm:$0xff]  }
 0x645   :  { %v6254_v60 = vld [vmem:[#allocation7 + $0xac] ss:$16 sps:$4 sm:$0xff]  }
 0x646   :  { %1139 = vrot.lane.b32.xlu1 %v1137_v63, %s5750_s3  ;;  %v6260_v63 = vld [vmem:[#allocation7 + $0xa8] ss:$16 sps:$4 sm:$0xff]  }
 0x648   :  { %1075 = vrot.lane.b32.xlu0 %v1043_v35, %s5750_s3  ;;  %v6204_v35 = vld [vmem:[#allocation7 + $0x2c] ss:$16 sps:$4 sm:$0xff]  }
 0x64a   :  { %1100 = vrot.lane.b32.xlu1 %v1099_v1, %s5750_s3  ;;  %v6263_v1 = vld [vmem:[#allocation7 + $0xc4] ss:$16 sps:$4 sm:$0xff]  }
 0x69a   :  { %v1127_v16 = vpop.permute.xlu0 %1126 }
 0x69b   :  { %v1128_v12 = vrot.slane %v1127_v16, 1  ;;  %v6272_v16 = vld [vmem:[#allocation7 + $0xc8] ss:$16 sps:$4 sm:$0xff]  }
 0x69d   :  { %v4827_v15 = vmul.f32 -1.442695, %v1128_v12 }
 0x6b6   :  { %v1107_v7 = vpop.permute.xlu0 %1106 }
 0x6b8   :  { %v1140_v3 = vpop.permute.xlu1 %1139 }
 0x6b9   :  { %v6183_v4 = vadd.f32 %v1140_v3, %v1136_v2  ;;  %v6266_v2 = vld [vmem:[#allocation7 + $0xcc] ss:$16 sps:$4 sm:$0xff]   ;;  %v6269_v3 = vld [vmem:[#allocation7 + $0xc0] ss:$16 sps:$4 sm:$0xff]  }
 0x6ba   :  { %v1076_v13 = vpop.permute.xlu0 %1075 }
 0x6bb   :  { %5236 = vtanh.f32 %v6183_v4  ;;  %v1077_v62 = vrot.slane %v1076_v13, 1 }
 0x6bc   :  { %v1101_v5 = vpop.permute.xlu1 %1100 }
 0x6bd   :  { %v1103_v6 = vmul.f32 %v5231_v55, %v1101_v5  ;;  %v4825_v17 = vmul.f32 -1.442695, %v1077_v62  ;;  %v6242_v55 = vld [vmem:[#allocation7 + $0x8c] ss:$16 sps:$4 sm:$0xff]   ;;  %v6279_v5 = vld [vmem:[#allocation7 + $0x4] ss:$16 sps:$4 sm:$0xff]  }
 0x6bf   :  { %v1109_v8 = vadd.f32 %v1107_v7, %v1103_v6  ;;  %v6282_v6 = vld [vmem:[#allocation7 + $0xc] ss:$16 sps:$4 sm:$0xff]  }
 0x6c1   :  { %5238 = vtanh.f32 %v1109_v8  ;;  %v1164_v11 = vrot.slane %v1109_v8, %v6039_v53 }
 0x6c2   :  { %5240 = vpow2.f32 %v4827_v15 }
 0x6c3   :  { %5242 = vpow2.f32 %v4825_v17 }
 0x6c5   :  { %v5237_v9 = vpop.eup %5236 }
 0x6c6   :  { %1145 = vrot.lane.b32.xlu1 %v5237_v9, %s5750_s3 }
 0x6cb   :  { %v5239_v10 = vpop.eup %5238 }
 0x6cc   :  { %1112 = vrot.lane.b32.xlu1 %v5239_v10, %s5750_s3  ;;  %v5241_v51 = vpop.eup %5240 }
 0x6cd   :  { %v1133_v21 = vadd.f32 1.0, %v5241_v51  ;;  %v5243_v22 = vpop.eup %5242  ;;  %v1253_v51 = vld [vmem:[#allocation3 + $0x3] ss:$8 sm:$0x3] }
 0x6ce   :  { %v1082_v23 = vadd.f32 1.0, %v5243_v22 }
 0x6cf   :  { %5244 = vrcp.f32 %v1133_v21  ;;  %v1274_v21 = vld [vmem:[#allocation3 + $0x14] ss:$8 sm:$0x3] }
 0x6d0   :  { %1165 = vrot.lane.b32.xlu1 %v1164_v11, %s5750_s3  ;;  %5246 = vrcp.f32 %v1082_v23 }
 0x6d9   :  { %v5245_v24 = vpop.eup %5244 }
 0x6da   :  { %v5247_v28 = vpop.eup %5246 }
 0x738   :  { %v1146_v25 = vpop.permute.xlu1 %1145 }
 0x739   :  { %v1148_v26 = vmul.f32 %v5245_v24, %v1146_v25 }
 0x73b   :  { %v1154_v27 = vrot.slane %v1148_v26, %v6039_v53 }
 0x73d   :  { %1155 = vrot.lane.b32.xlu0 %v1154_v27, %s5750_s3 }
 0x73e   :  { %v1113_v29 = vpop.permute.xlu1 %1112 }
 0x73f   :  { %v1115_v30 = vmul.f32 %v5247_v28, %v1113_v29 }
 0x741   :  { %1149 = vst.msk [vmem:[#allocation2 + $0x2] sm:$0x1] %vm689_vm1, %v1115_v30 }
 0x7af   :  { %v1156_v31 = vpop.permute.xlu0 %1155 }
 0x7b0   :  { %1158 = vst.msk [vmem:[#allocation2 + $0x5] sm:$0x1] %vm699_vm2, %v1156_v31  ;;  %v1159_v32 = vsel %vm218_vm0, %v1115_v30, %v1156_v31 }
 0x7b1   :  { %v1169_v33 = vpack.c.bf16 %v1159_v32, %v1159_v32  ;;  %v1166_v32 = vpop.permute.xlu1 %1165 }
 0x7b3   :  { %1203 = vmatmul.mubr.bf16.vlgmr.msra.gmra.mrb[16].mxu0 %v1169_v33  ;;  %1244 = vmatmul.mubr.bf16.vlgmr.msra.gmra.mrb[16].mxu1 %v1169_v33 }
 0x7b4   :  { %1400 = vmatpush1.bf16.msra.mxu0 %v6195_v18  ;;  %1441 = vmatpush1.bf16.msra.mxu1 %v6198_v34 }
 0x7b5   :  { %1401 = vmatprep.subr.bf16.mxu0 %v6201_v19  ;;  %1442 = vmatprep.subr.bf16.mxu1 %v6204_v35 }
 0x7b6   :  { %1431 = vmatprep.mubr.bf16.mxu0 %v5748_v0  ;;  %1472 = vmatprep.mubr.bf16.mxu1 %v5748_v0 }
 0x7b8   :  { %1402 = vmatpush1.bf16.msra.mxu0 %v6209_v36  ;;  %1443 = vmatpush1.bf16.msra.mxu1 %v6212_v37 }
 0x7b9   :  { %1403 = vmatprep.subr.bf16.mxu0 %v6215_v38  ;;  %1444 = vmatprep.subr.bf16.mxu1 %v6218_v39 }
 0x7bc   :  { %1404 = vmatpush1.bf16.msra.mxu0 %v6221_v40  ;;  %1445 = vmatpush1.bf16.msra.mxu1 %v6224_v41 }
 0x7bd   :  { %1405 = vmatprep.subr.bf16.mxu0 %v6227_v42  ;;  %1446 = vmatprep.subr.bf16.mxu1 %v6230_v43 }
 0x7c0   :  { %1406 = vmatpush1.bf16.msra.mxu0 %v6233_v44  ;;  %1447 = vmatpush1.bf16.msra.mxu1 %v6236_v45 }
 0x7c1   :  { %1407 = vmatprep.subr.bf16.mxu0 %v6239_v46  ;;  %1448 = vmatprep.subr.bf16.mxu1 %v6242_v55 }
 0x7c4   :  { %1408 = vmatpush1.bf16.msra.mxu0 %v6245_v58  ;;  %1449 = vmatpush1.bf16.msra.mxu1 %v6248_v59 }
 0x7c5   :  { %1409 = vmatprep.subr.bf16.mxu0 %v6251_v20  ;;  %1450 = vmatprep.subr.bf16.mxu1 %v6254_v60 }
 0x7c8   :  { %1410 = vmatpush1.bf16.msra.mxu0 %v6257_v61  ;;  %1451 = vmatpush1.bf16.msra.mxu1 %v6260_v63 }
 0x7c9   :  { %1411 = vmatprep.subr.bf16.mxu0 %v6263_v1  ;;  %1452 = vmatprep.subr.bf16.mxu1 %v6266_v2 }
 0x7cc   :  { %1412 = vmatpush1.bf16.msra.mxu0 %v6269_v3  ;;  %1453 = vmatpush1.bf16.msra.mxu1 %v6272_v16 }
 0x7cd   :  { %1413 = vmatprep.subr.bf16.mxu0 %v5980_v47  ;;  %1454 = vmatprep.subr.bf16.mxu1 %v5982_v48 }
 0x7d0   :  { %1414 = vmatpush1.bf16.msra.mxu0 %v5988_v49  ;;  %1455 = vmatpush1.bf16.msra.mxu1 %v5990_v50 }
 0x7d1   :  { %1628 = vmatprep.subr.bf16.mxu0 %v6279_v5  ;;  %1669 = vmatprep.subr.bf16.mxu1 %v6282_v6 }
 0x886   :  { %v1204_v7 = vpop.f32.mrb[16].mxu0  ;;  %v1245_v8 = vpop.f32.mrb[16].mxu1 }
 0x887   :  { %v1206_v9 = vpop.f32.mrb[17].mxu0  ;;  %v1247_v10 = vpop.f32.mrb[17].mxu1 }
 0x888   :  { %v1256_v11 = vcombine.low %v1204_v7, %v1206_v9  ;;  %v1277_v47 = vcombine.low %v1245_v8, %v1247_v10  ;;  %v1208_v12 = vpop.f32.mrb[18].mxu0  ;;  %v1249_v48 = vpop.f32.mrb[18].mxu1  ;;  %v1168_v8 = vsel %vm218_vm0, %v1166_v32, %v6183_v4 }
 0x889   :  { %v1209_v13 = vpop.f32.mrb[19].mxu0  ;;  %v1250_v49 = vpop.f32.mrb[19].mxu1 }
 0x88a   :  { %v1263_v50 = vrot.slane %v1256_v11, %v6055_v14  ;;  %v1284_v15 = vrot.slane %v1277_v47, %v6055_v14  ;;  %v1321_v47 = vrot.slane %v1168_v8, %v6055_v14 }
 0x88c   :  { %v1270_v62 = vrot.slane %v1263_v50, %v6055_v14  ;;  %v1291_v17 = vrot.slane %v1284_v15, %v6055_v14  ;;  %v1328_v48 = vrot.slane %v1321_v47, %v6055_v14 }
 0x88e   :  { %v1272_v22 = vadd.f32 %v1270_v62, %v1253_v51  ;;  %v1293_v23 = vadd.f32 %v1291_v17, %v1274_v21 }
 0x890   :  { %v4828_v24 = vmul.f32 -1.442695, %v1272_v22  ;;  %1355 = vrot.lane.b32.xlu1 %v1293_v23, %s5750_s3  ;;  %v4830_v25 = vmul.f32 -1.442695, %v1293_v23  ;;  %v1301_v26 = vrot.slane %v1272_v22, 1  ;;  %v1352_v28 = vrot.slane %v1293_v23, 1 }
 0x892   :  { %5248 = vpow2.f32 %v4828_v24 }
 0x893   :  { %5250 = vpow2.f32 %v4830_v25 }
 0x894   :  { %5252 = vtanh.f32 %v1301_v26 }
 0x89c   :  { %v5249_v27 = vpop.eup %5248 }
 0x89d   :  { %v1297_v29 = vadd.f32 1.0, %v5249_v27  ;;  %v5251_v30 = vpop.eup %5250 }
 0x89e   :  { %v1348_v31 = vadd.f32 1.0, %v5251_v30  ;;  %v5253_v33 = vpop.eup %5252 }
 0x89f   :  { %5254 = vrcp.f32 %v1297_v29 }
 0x8a0   :  { %5256 = vtanh.f32 %v1352_v28 }
 0x8a1   :  { %5258 = vrcp.f32 %v1348_v31 }
 0x8a9   :  { %v5255_v7 = vpop.eup %5254 }
 0x8aa   :  { %v5257_v9 = vpop.eup %5256  ;;  %v1333_v10 = vmul.f32 %v5255_v7, %v5253_v33 }
 0x8ab   :  { %v5259_v11 = vpop.eup %5258 }
 0x8ac   :  { %v1366_v12 = vmul.f32 %v5259_v11, %v5257_v9  ;;  %1335 = vrot.lane.b32.xlu1 %v1333_v10, %s5750_s3  ;;  %v1365_v13 = vmul.f32 %v5259_v11, %v1168_v8 }
 0x8ae   :  { %1368 = vrot.lane.b32.xlu0 %v1366_v12, %s5750_s3 }
 0x8b0   :  { %1304 = vrot.lane.b32.xlu1 %v1272_v22, %s5750_s3 }
 0x8b2   :  { %1329 = vrot.lane.b32.xlu0 %v1328_v48, %s5750_s3 }
 0x902   :  { %v1356_v4 = vpop.permute.xlu1 %1355 }
 0x903   :  { %v1357_v24 = vrot.slane %v1356_v4, 1  ;;  %v6341_v4 = vld [vmem:[#allocation7 + $0xec] ss:$16 sps:$4 sm:$0xff]  }
 0x905   :  { %v4831_v26 = vmul.f32 -1.442695, %v1357_v24 }
 0x91e   :  { %v1336_v17 = vpop.permute.xlu1 %1335 }
 0x920   :  { %v1369_v49 = vpop.permute.xlu0 %1368 }
 0x921   :  { %v6298_v50 = vadd.f32 %v1369_v49, %v1365_v13  ;;  %v6338_v49 = vld [vmem:[#allocation7 + $0xe4] ss:$16 sps:$4 sm:$0xff]  }
 0x922   :  { %v1305_v25 = vpop.permute.xlu1 %1304 }
 0x923   :  { %5260 = vtanh.f32 %v6298_v50  ;;  %v1306_v27 = vrot.slane %v1305_v25, 1 }
 0x924   :  { %v1330_v15 = vpop.permute.xlu0 %1329 }
 0x925   :  { %v1332_v62 = vmul.f32 %v5255_v7, %v1330_v15  ;;  %v4829_v28 = vmul.f32 -1.442695, %v1306_v27  ;;  %v6344_v15 = vld [vmem:[#allocation7 + $0xe0] ss:$16 sps:$4 sm:$0xff]  }
 0x927   :  { %v1338_v51 = vadd.f32 %v1336_v17, %v1332_v62  ;;  %v6347_v62 = vld [vmem:[#allocation7 + $0xe8] ss:$16 sps:$4 sm:$0xff]  }
 0x929   :  { %5262 = vtanh.f32 %v1338_v51  ;;  %v1393_v22 = vrot.slane %v1338_v51, %v6039_v53 }
 0x92a   :  { %5264 = vpow2.f32 %v4831_v26 }
 0x92b   :  { %5266 = vpow2.f32 %v4829_v28 }
 0x92d   :  { %v5261_v21 = vpop.eup %5260 }
 0x92e   :  { %1374 = vrot.lane.b32.xlu0 %v5261_v21, %s5750_s3 }
 0x933   :  { %v5263_v23 = vpop.eup %5262 }
 0x934   :  { %1341 = vrot.lane.b32.xlu0 %v5263_v23, %s5750_s3  ;;  %v5265_v29 = vpop.eup %5264 }
 0x935   :  { %v1362_v30 = vadd.f32 1.0, %v5265_v29  ;;  %v5267_v31 = vpop.eup %5266 }
 0x936   :  { %v1311_v32 = vadd.f32 1.0, %v5267_v31 }
 0x937   :  { %5268 = vrcp.f32 %v1362_v30 }
 0x938   :  { %1394 = vrot.lane.b32.xlu0 %v1393_v22, %s5750_s3  ;;  %5270 = vrcp.f32 %v1311_v32 }
 0x941   :  { %v5269_v33 = vpop.eup %5268 }
 0x942   :  { %v5271_v10 = vpop.eup %5270 }
 0x9a0   :  { %v1375_v7 = vpop.permute.xlu0 %1374 }
 0x9a1   :  { %v1377_v8 = vmul.f32 %v5269_v33, %v1375_v7  ;;  %v1482_v33 = vld [vmem:[#allocation3 + $0x4] ss:$8 sm:$0x3]  ;;  %v1503_v7 = vld [vmem:[#allocation3 + $0x13] ss:$8 sm:$0x3] }
 0x9a3   :  { %v1383_v9 = vrot.slane %v1377_v8, %v6039_v53 }
 0x9a5   :  { %1384 = vrot.lane.b32.xlu1 %v1383_v9, %s5750_s3 }
 0x9a6   :  { %v1342_v11 = vpop.permute.xlu0 %1341 }
 0x9a7   :  { %v1344_v47 = vmul.f32 %v5271_v10, %v1342_v11 }
 0x9a9   :  { %1378 = vst.msk [vmem:[#allocation2 + $0x3] sm:$0x1] %vm689_vm1, %v1344_v47 }
 0xa17   :  { %v1385_v12 = vpop.permute.xlu1 %1384 }
 0xa18   :  { %1387 = vst.msk [vmem:[#allocation2 + $0x4] sm:$0x1] %vm699_vm2, %v1385_v12  ;;  %v1388_v48 = vsel %vm218_vm0, %v1344_v47, %v1385_v12 }
 0xa19   :  { %v1398_v13 = vpack.c.bf16 %v1388_v48, %v1388_v48 }
 0xa1b   :  { %1432 = vmatmul.mubr.bf16.vlgmr.msra.gmra.mrb[20].mxu0 %v1398_v13  ;;  %1473 = vmatmul.mubr.bf16.vlgmr.msra.gmra.mrb[20].mxu1 %v1398_v13 }
 0xa1c   :  { %1629 = vmatpush1.bf16.msra.mxu0 %v6195_v18  ;;  %1670 = vmatpush1.bf16.msra.mxu1 %v6198_v34 }
 0xa1d   :  { %1630 = vmatprep.subr.bf16.mxu0 %v6201_v19  ;;  %1671 = vmatprep.subr.bf16.mxu1 %v6204_v35 }
 0xa1e   :  { %1660 = vmatprep.mubr.bf16.mxu0 %v5748_v0  ;;  %1701 = vmatprep.mubr.bf16.mxu1 %v5748_v0 }
 0xa20   :  { %1631 = vmatpush1.bf16.msra.mxu0 %v6209_v36  ;;  %1672 = vmatpush1.bf16.msra.mxu1 %v6212_v37 }
 0xa21   :  { %1632 = vmatprep.subr.bf16.mxu0 %v6215_v38  ;;  %1673 = vmatprep.subr.bf16.mxu1 %v6218_v39 }
 0xa24   :  { %1633 = vmatpush1.bf16.msra.mxu0 %v6221_v40  ;;  %1674 = vmatpush1.bf16.msra.mxu1 %v6224_v41 }
 0xa25   :  { %1634 = vmatprep.subr.bf16.mxu0 %v6227_v42  ;;  %1675 = vmatprep.subr.bf16.mxu1 %v6230_v43 }
 0xa28   :  { %1635 = vmatpush1.bf16.msra.mxu0 %v6233_v44  ;;  %1676 = vmatpush1.bf16.msra.mxu1 %v6236_v45 }
 0xa29   :  { %1636 = vmatprep.subr.bf16.mxu0 %v6239_v46  ;;  %1677 = vmatprep.subr.bf16.mxu1 %v6242_v55 }
 0xa2c   :  { %1637 = vmatpush1.bf16.msra.mxu0 %v6245_v58  ;;  %1678 = vmatpush1.bf16.msra.mxu1 %v6248_v59 }
 0xa2d   :  { %1638 = vmatprep.subr.bf16.mxu0 %v6251_v20  ;;  %1679 = vmatprep.subr.bf16.mxu1 %v6254_v60 }
 0xa30   :  { %1639 = vmatpush1.bf16.msra.mxu0 %v6257_v61  ;;  %1680 = vmatpush1.bf16.msra.mxu1 %v6260_v63 }
 0xa31   :  { %1640 = vmatprep.subr.bf16.mxu0 %v6263_v1  ;;  %1681 = vmatprep.subr.bf16.mxu1 %v6266_v2 }
 0xa34   :  { %1641 = vmatpush1.bf16.msra.mxu0 %v6269_v3  ;;  %1682 = vmatpush1.bf16.msra.mxu1 %v6272_v16 }
 0xa35   :  { %1642 = vmatprep.subr.bf16.mxu0 %v6338_v49  ;;  %1683 = vmatprep.subr.bf16.mxu1 %v6341_v4 }
 0xa38   :  { %1643 = vmatpush1.bf16.msra.mxu0 %v6344_v15  ;;  %1684 = vmatpush1.bf16.msra.mxu1 %v6347_v62 }
 0xa39   :  { %1857 = vmatprep.subr.bf16.mxu0 %v6279_v5  ;;  %1898 = vmatprep.subr.bf16.mxu1 %v6282_v6 }
 0xaee   :  { %v1433_v17 = vpop.f32.mrb[20].mxu0  ;;  %v1474_v51 = vpop.f32.mrb[20].mxu1 }
 0xaef   :  { %v1435_v21 = vpop.f32.mrb[21].mxu0  ;;  %v1476_v23 = vpop.f32.mrb[21].mxu1 }
 0xaf0   :  { %v1485_v22 = vcombine.low %v1433_v17, %v1435_v21  ;;  %v1506_v24 = vcombine.low %v1474_v51, %v1476_v23  ;;  %v1437_v25 = vpop.f32.mrb[22].mxu0  ;;  %v1478_v26 = vpop.f32.mrb[22].mxu1 }
 0xaf1   :  { %v1438_v27 = vpop.f32.mrb[23].mxu0  ;;  %v1479_v28 = vpop.f32.mrb[23].mxu1 }
 0xaf2   :  { %v1492_v29 = vrot.slane %v1485_v22, %v6055_v14  ;;  %v1513_v30 = vrot.slane %v1506_v24, %v6055_v14  ;;  %v1395_v21 = vpop.permute.xlu0 %1394 }
 0xaf3   :  { %v1397_v24 = vsel %vm218_vm0, %v1395_v21, %v6298_v50 }
 0xaf4   :  { %v1499_v31 = vrot.slane %v1492_v29, %v6055_v14  ;;  %v1520_v32 = vrot.slane %v1513_v30, %v6055_v14  ;;  %v1550_v28 = vrot.slane %v1397_v24, %v6055_v14 }
 0xaf6   :  { %v1501_v8 = vadd.f32 %v1499_v31, %v1482_v33  ;;  %v1522_v9 = vadd.f32 %v1520_v32, %v1503_v7  ;;  %v1557_v30 = vrot.slane %v1550_v28, %v6055_v14 }
 0xaf8   :  { %v4832_v10 = vmul.f32 -1.442695, %v1501_v8  ;;  %1584 = vrot.lane.b32.xlu0 %v1522_v9, %s5750_s3  ;;  %v4834_v11 = vmul.f32 -1.442695, %v1522_v9  ;;  %v1530_v47 = vrot.slane %v1501_v8, 1  ;;  %v1581_v48 = vrot.slane %v1522_v9, 1 }
 0xafa   :  { %5272 = vpow2.f32 %v4832_v10 }
 0xafb   :  { %5274 = vpow2.f32 %v4834_v11 }
 0xafc   :  { %5276 = vtanh.f32 %v1530_v47 }
 0xb04   :  { %v5273_v12 = vpop.eup %5272 }
 0xb05   :  { %v1526_v13 = vadd.f32 1.0, %v5273_v12  ;;  %v5275_v17 = vpop.eup %5274 }
 0xb06   :  { %v1577_v51 = vadd.f32 1.0, %v5275_v17  ;;  %v5277_v23 = vpop.eup %5276 }
 0xb07   :  { %5278 = vrcp.f32 %v1526_v13 }
 0xb08   :  { %5280 = vtanh.f32 %v1581_v48 }
 0xb09   :  { %5282 = vrcp.f32 %v1577_v51 }
 0xb11   :  { %v5279_v22 = vpop.eup %5278 }
 0xb12   :  { %v5281_v25 = vpop.eup %5280  ;;  %v1562_v26 = vmul.f32 %v5279_v22, %v5277_v23 }
 0xb13   :  { %v5283_v27 = vpop.eup %5282 }
 0xb14   :  { %v1595_v29 = vmul.f32 %v5283_v27, %v5281_v25  ;;  %1564 = vrot.lane.b32.xlu0 %v1562_v26, %s5750_s3  ;;  %v1594_v31 = vmul.f32 %v5283_v27, %v1397_v24 }
 0xb16   :  { %1597 = vrot.lane.b32.xlu1 %v1595_v29, %s5750_s3 }
 0xb18   :  { %1533 = vrot.lane.b32.xlu0 %v1501_v8, %s5750_s3 }
 0xb1a   :  { %1558 = vrot.lane.b32.xlu1 %v1557_v30, %s5750_s3 }
 0xb6a   :  { %v1585_v50 = vpop.permute.xlu0 %1584 }
 0xb6b   :  { %v1586_v48 = vrot.slane %v1585_v50, 1 }
 0xb6d   :  { %v4835_v17 = vmul.f32 -1.442695, %v1586_v48 }
 0xb86   :  { %v1565_v10 = vpop.permute.xlu0 %1564 }
 0xb88   :  { %v1598_v32 = vpop.permute.xlu1 %1597 }
 0xb89   :  { %v6365_v33 = vadd.f32 %v1598_v32, %v1594_v31 }
 0xb8a   :  { %v1534_v13 = vpop.permute.xlu0 %1533 }
 0xb8b   :  { %5284 = vtanh.f32 %v6365_v33  ;;  %v1535_v51 = vrot.slane %v1534_v13, 1 }
 0xb8c   :  { %v1559_v7 = vpop.permute.xlu1 %1558 }
 0xb8d   :  { %v1561_v9 = vmul.f32 %v5279_v22, %v1559_v7  ;;  %v4833_v21 = vmul.f32 -1.442695, %v1535_v51 }
 0xb8f   :  { %v1567_v11 = vadd.f32 %v1565_v10, %v1561_v9 }
 0xb91   :  { %5286 = vtanh.f32 %v1567_v11  ;;  %v1622_v8 = vrot.slane %v1567_v11, %v6039_v53 }
 0xb92   :  { %5288 = vpow2.f32 %v4835_v17 }
 0xb93   :  { %5290 = vpow2.f32 %v4833_v21 }
 0xb95   :  { %v5285_v47 = vpop.eup %5284 }
 0xb96   :  { %1603 = vrot.lane.b32.xlu1 %v5285_v47, %s5750_s3 }
 0xb9b   :  { %v5287_v12 = vpop.eup %5286 }
 0xb9c   :  { %1570 = vrot.lane.b32.xlu1 %v5287_v12, %s5750_s3  ;;  %v5289_v23 = vpop.eup %5288 }
 0xb9d   :  { %v1591_v22 = vadd.f32 1.0, %v5289_v23  ;;  %v5291_v24 = vpop.eup %5290 }
 0xb9e   :  { %v1540_v25 = vadd.f32 1.0, %v5291_v24 }
 0xb9f   :  { %5292 = vrcp.f32 %v1591_v22 }
 0xba0   :  { %1623 = vrot.lane.b32.xlu1 %v1622_v8, %s5750_s3  ;;  %5294 = vrcp.f32 %v1540_v25  ;;  %v1711_v25 = vld [vmem:[#allocation3 + $0x5] ss:$8 sm:$0x3] }
 0xba9   :  { %v5293_v26 = vpop.eup %5292 }
 0xbaa   :  { %v5295_v30 = vpop.eup %5294 }
 0xc08   :  { %v1604_v27 = vpop.permute.xlu1 %1603 }
 0xc09   :  { %v1606_v28 = vmul.f32 %v5293_v26, %v1604_v27 }
 0xc0b   :  { %v1612_v29 = vrot.slane %v1606_v28, %v6039_v53 }
 0xc0d   :  { %1613 = vrot.lane.b32.xlu0 %v1612_v29, %s5750_s3 }
 0xc0e   :  { %v1571_v31 = vpop.permute.xlu1 %1570 }
 0xc0f   :  { %v1573_v32 = vmul.f32 %v5295_v30, %v1571_v31 }
 0xc11   :  { %1607 = vst.msk [vmem:[#allocation2 + $0x4] sm:$0x1] %vm689_vm1, %v1573_v32 }
 0xc7f   :  { %v1614_v50 = vpop.permute.xlu0 %1613 }
 0xc80   :  { %1616 = vst.msk [vmem:[#allocation2 + $0x3] sm:$0x1] %vm699_vm2, %v1614_v50  ;;  %v1617_v7 = vsel %vm218_vm0, %v1573_v32, %v1614_v50 }
 0xc81   :  { %v1627_v9 = vpack.c.bf16 %v1617_v7, %v1617_v7 }
 0xc83   :  { %1661 = vmatmul.mubr.bf16.vlgmr.msra.gmra.mrb[24].mxu0 %v1627_v9  ;;  %1702 = vmatmul.mubr.bf16.vlgmr.msra.gmra.mrb[24].mxu1 %v1627_v9 }
 0xc84   :  { %1858 = vmatpush1.bf16.msra.mxu0 %v6195_v18  ;;  %1899 = vmatpush1.bf16.msra.mxu1 %v6198_v34 }
 0xc85   :  { %1859 = vmatprep.subr.bf16.mxu0 %v6201_v19  ;;  %1900 = vmatprep.subr.bf16.mxu1 %v6204_v35 }
 0xc86   :  { %1889 = vmatprep.mubr.bf16.mxu0 %v5748_v0  ;;  %1930 = vmatprep.mubr.bf16.mxu1 %v5748_v0 }
 0xc88   :  { %1860 = vmatpush1.bf16.msra.mxu0 %v6209_v36  ;;  %1901 = vmatpush1.bf16.msra.mxu1 %v6212_v37 }
 0xc89   :  { %1861 = vmatprep.subr.bf16.mxu0 %v6215_v38  ;;  %1902 = vmatprep.subr.bf16.mxu1 %v6218_v39 }
 0xc8c   :  { %1862 = vmatpush1.bf16.msra.mxu0 %v6221_v40  ;;  %1903 = vmatpush1.bf16.msra.mxu1 %v6224_v41 }
 0xc8d   :  { %1863 = vmatprep.subr.bf16.mxu0 %v6227_v42  ;;  %1904 = vmatprep.subr.bf16.mxu1 %v6230_v43 }
 0xc90   :  { %1864 = vmatpush1.bf16.msra.mxu0 %v6233_v44  ;;  %1905 = vmatpush1.bf16.msra.mxu1 %v6236_v45 }
 0xc91   :  { %1865 = vmatprep.subr.bf16.mxu0 %v6239_v46  ;;  %1906 = vmatprep.subr.bf16.mxu1 %v6242_v55 }
 0xc94   :  { %1866 = vmatpush1.bf16.msra.mxu0 %v6245_v58  ;;  %1907 = vmatpush1.bf16.msra.mxu1 %v6248_v59 }
 0xc95   :  { %1867 = vmatprep.subr.bf16.mxu0 %v6251_v20  ;;  %1908 = vmatprep.subr.bf16.mxu1 %v6254_v60 }
 0xc98   :  { %1868 = vmatpush1.bf16.msra.mxu0 %v6257_v61  ;;  %1909 = vmatpush1.bf16.msra.mxu1 %v6260_v63 }
 0xc99   :  { %1869 = vmatprep.subr.bf16.mxu0 %v6263_v1  ;;  %1910 = vmatprep.subr.bf16.mxu1 %v6266_v2 }
 0xc9c   :  { %1870 = vmatpush1.bf16.msra.mxu0 %v6269_v3  ;;  %1911 = vmatpush1.bf16.msra.mxu1 %v6272_v16 }
 0xc9d   :  { %1871 = vmatprep.subr.bf16.mxu0 %v6338_v49  ;;  %1912 = vmatprep.subr.bf16.mxu1 %v6341_v4 }
 0xca0   :  { %1872 = vmatpush1.bf16.msra.mxu0 %v6344_v15  ;;  %1913 = vmatpush1.bf16.msra.mxu1 %v6347_v62 }
 0xca1   :  { %2086 = vmatprep.subr.bf16.mxu0 %v6279_v5  ;;  %2127 = vmatprep.subr.bf16.mxu1 %v6282_v6  ;;  %v1732_v6 = vld [vmem:[#allocation3 + $0x12] ss:$8 sm:$0x3] }
 0xd56   :  { %v1662_v10 = vpop.f32.mrb[24].mxu0  ;;  %v1703_v11 = vpop.f32.mrb[24].mxu1 }
 0xd57   :  { %v1664_v47 = vpop.f32.mrb[25].mxu0  ;;  %v1705_v12 = vpop.f32.mrb[25].mxu1 }
 0xd58   :  { %v1714_v8 = vcombine.low %v1662_v10, %v1664_v47  ;;  %v1735_v48 = vcombine.low %v1703_v11, %v1705_v12  ;;  %v1666_v13 = vpop.f32.mrb[26].mxu0  ;;  %v1707_v17 = vpop.f32.mrb[26].mxu1 }
 0xd59   :  { %v1667_v51 = vpop.f32.mrb[27].mxu0  ;;  %v1708_v21 = vpop.f32.mrb[27].mxu1 }
 0xd5a   :  { %v1721_v23 = vrot.slane %v1714_v8, %v6055_v14  ;;  %v1742_v22 = vrot.slane %v1735_v48, %v6055_v14  ;;  %v1624_v10 = vpop.permute.xlu1 %1623 }
 0xd5b   :  { %v1626_v12 = vsel %vm218_vm0, %v1624_v10, %v6365_v33 }
 0xd5c   :  { %v1728_v24 = vrot.slane %v1721_v23, %v6055_v14  ;;  %v1749_v5 = vrot.slane %v1742_v22, %v6055_v14  ;;  %v1779_v17 = vrot.slane %v1626_v12, %v6055_v14 }
 0xd5e   :  { %v1730_v26 = vadd.f32 %v1728_v24, %v1711_v25  ;;  %v1751_v27 = vadd.f32 %v1749_v5, %v1732_v6  ;;  %v1786_v21 = vrot.slane %v1779_v17, %v6055_v14 }
 0xd60   :  { %v4836_v28 = vmul.f32 -1.442695, %v1730_v26  ;;  %1813 = vrot.lane.b32.xlu1 %v1751_v27, %s5750_s3  ;;  %v4838_v29 = vmul.f32 -1.442695, %v1751_v27  ;;  %v1759_v30 = vrot.slane %v1730_v26, 1  ;;  %v1810_v32 = vrot.slane %v1751_v27, 1 }
 0xd62   :  { %5296 = vpow2.f32 %v4836_v28 }
 0xd63   :  { %5298 = vpow2.f32 %v4838_v29 }
 0xd64   :  { %5300 = vtanh.f32 %v1759_v30 }
 0xd6c   :  { %v5297_v31 = vpop.eup %5296 }
 0xd6d   :  { %v1755_v50 = vadd.f32 1.0, %v5297_v31  ;;  %v5299_v7 = vpop.eup %5298 }
 0xd6e   :  { %v1806_v9 = vadd.f32 1.0, %v5299_v7  ;;  %v5301_v11 = vpop.eup %5300 }
 0xd6f   :  { %5302 = vrcp.f32 %v1755_v50 }
 0xd70   :  { %5304 = vtanh.f32 %v1810_v32 }
 0xd71   :  { %5306 = vrcp.f32 %v1806_v9 }
 0xd79   :  { %v5303_v47 = vpop.eup %5302 }
 0xd7a   :  { %v5305_v8 = vpop.eup %5304  ;;  %v1791_v48 = vmul.f32 %v5303_v47, %v5301_v11 }
 0xd7b   :  { %v5307_v13 = vpop.eup %5306 }
 0xd7c   :  { %v1824_v51 = vmul.f32 %v5307_v13, %v5305_v8  ;;  %1793 = vrot.lane.b32.xlu1 %v1791_v48, %s5750_s3  ;;  %v1823_v23 = vmul.f32 %v5307_v13, %v1626_v12 }
 0xd7e   :  { %1826 = vrot.lane.b32.xlu0 %v1824_v51, %s5750_s3 }
 0xd80   :  { %1762 = vrot.lane.b32.xlu1 %v1730_v26, %s5750_s3 }
 0xd82   :  { %1787 = vrot.lane.b32.xlu0 %v1786_v21, %s5750_s3 }
 0xdd2   :  { %v1814_v33 = vpop.permute.xlu1 %1813 }
 0xdd3   :  { %v1815_v30 = vrot.slane %v1814_v33, 1 }
 0xdd5   :  { %v4839_v32 = vmul.f32 -1.442695, %v1815_v30 }
 0xdee   :  { %v1794_v6 = vpop.permute.xlu1 %1793 }
 0xdf0   :  { %v1827_v22 = vpop.permute.xlu0 %1826 }
 0xdf1   :  { %v6424_v24 = vadd.f32 %v1827_v22, %v1823_v23 }
 0xdf2   :  { %v1763_v31 = vpop.permute.xlu1 %1762 }
 0xdf3   :  { %5308 = vtanh.f32 %v6424_v24  ;;  %v1764_v50 = vrot.slane %v1763_v31, 1 }
 0xdf4   :  { %v1788_v5 = vpop.permute.xlu0 %1787 }
 0xdf5   :  { %v1790_v25 = vmul.f32 %v5303_v47, %v1788_v5  ;;  %v4837_v7 = vmul.f32 -1.442695, %v1764_v50 }
 0xdf7   :  { %v1796_v27 = vadd.f32 %v1794_v6, %v1790_v25 }
 0xdf9   :  { %5310 = vtanh.f32 %v1796_v27  ;;  %v1851_v26 = vrot.slane %v1796_v27, %v6039_v53 }
 0xdfa   :  { %5312 = vpow2.f32 %v4839_v32 }
 0xdfb   :  { %5314 = vpow2.f32 %v4837_v7 }
 0xdfd   :  { %v5309_v28 = vpop.eup %5308 }
 0xdfe   :  { %1832 = vrot.lane.b32.xlu0 %v5309_v28, %s5750_s3 }
 0xe03   :  { %v5311_v29 = vpop.eup %5310 }
 0xe04   :  { %1799 = vrot.lane.b32.xlu0 %v5311_v29, %s5750_s3  ;;  %v5313_v9 = vpop.eup %5312 }
 0xe05   :  { %v1820_v10 = vadd.f32 1.0, %v5313_v9  ;;  %v5315_v11 = vpop.eup %5314 }
 0xe06   :  { %v1769_v47 = vadd.f32 1.0, %v5315_v11 }
 0xe07   :  { %5316 = vrcp.f32 %v1820_v10 }
 0xe08   :  { %1852 = vrot.lane.b32.xlu0 %v1851_v26, %s5750_s3  ;;  %5318 = vrcp.f32 %v1769_v47 }
 0xe11   :  { %v5317_v12 = vpop.eup %5316 }
 0xe12   :  { %v5319_v17 = vpop.eup %5318 }
 0xe70   :  { %v1833_v8 = vpop.permute.xlu0 %1832 }
 0xe71   :  { %v1835_v48 = vmul.f32 %v5317_v12, %v1833_v8 }
 0xe73   :  { %v1841_v13 = vrot.slane %v1835_v48, %v6039_v53 }
 0xe75   :  { %1842 = vrot.lane.b32.xlu1 %v1841_v13, %s5750_s3 }
 0xe76   :  { %v1800_v51 = vpop.permute.xlu0 %1799 }
 0xe77   :  { %v1802_v21 = vmul.f32 %v5319_v17, %v1800_v51 }
 0xe79   :  { %1836 = vst.msk [vmem:[#allocation2 + $0x5] sm:$0x1] %vm689_vm1, %v1802_v21 }
 0xee7   :  { %v1843_v23 = vpop.permute.xlu1 %1842 }
 0xee8   :  { %1845 = vst.msk [vmem:[#allocation2 + $0x2] sm:$0x1] %vm699_vm2, %v1843_v23  ;;  %v1846_v22 = vsel %vm218_vm0, %v1802_v21, %v1843_v23 }
 0xee9   :  { %v1856_v33 = vpack.c.bf16 %v1846_v22, %v1846_v22 }
 0xeeb   :  { %1890 = vmatmul.mubr.bf16.vlgmr.msra.gmra.mrb[28].mxu0 %v1856_v33  ;;  %1931 = vmatmul.mubr.bf16.vlgmr.msra.gmra.mrb[28].mxu1 %v1856_v33 }
 0xeec   :  { %2087 = vmatpush1.bf16.msra.mxu0 %v6195_v18  ;;  %2128 = vmatpush1.bf16.msra.mxu1 %v6198_v34 }
 0xeed   :  { %2088 = vmatprep.subr.bf16.mxu0 %v6201_v19  ;;  %2129 = vmatprep.subr.bf16.mxu1 %v6204_v35 }
 0xeee   :  { %2118 = vmatprep.mubr.bf16.mxu0 %v5748_v0  ;;  %2159 = vmatprep.mubr.bf16.mxu1 %v5748_v0 }
 0xef0   :  { %2089 = vmatpush1.bf16.msra.mxu0 %v6209_v36  ;;  %2130 = vmatpush1.bf16.msra.mxu1 %v6212_v37 }
 0xef1   :  { %2090 = vmatprep.subr.bf16.mxu0 %v6215_v38  ;;  %2131 = vmatprep.subr.bf16.mxu1 %v6218_v39 }
 0xef4   :  { %2091 = vmatpush1.bf16.msra.mxu0 %v6221_v40  ;;  %2132 = vmatpush1.bf16.msra.mxu1 %v6224_v41 }
 0xef5   :  { %2092 = vmatprep.subr.bf16.mxu0 %v6227_v42  ;;  %2133 = vmatprep.subr.bf16.mxu1 %v6230_v43 }
 0xef8   :  { %2093 = vmatpush1.bf16.msra.mxu0 %v6233_v44  ;;  %2134 = vmatpush1.bf16.msra.mxu1 %v6236_v45 }
 0xef9   :  { %2094 = vmatprep.subr.bf16.mxu0 %v6239_v46  ;;  %2135 = vmatprep.subr.bf16.mxu1 %v6242_v55  ;;  %v1940_v46 = vld [vmem:[#allocation3 + $0x6] ss:$8 sm:$0x3]  ;;  %v1961_v55 = vld [vmem:[#allocation3 + $0x11] ss:$8 sm:$0x3] }
 0xefc   :  { %2095 = vmatpush1.bf16.msra.mxu0 %v6245_v58  ;;  %2136 = vmatpush1.bf16.msra.mxu1 %v6248_v59 }
 0xefd   :  { %2096 = vmatprep.subr.bf16.mxu0 %v6251_v20  ;;  %2137 = vmatprep.subr.bf16.mxu1 %v6254_v60 }
 0xf00   :  { %2097 = vmatpush1.bf16.msra.mxu0 %v6257_v61  ;;  %2138 = vmatpush1.bf16.msra.mxu1 %v6260_v63 }
 0xf01   :  { %2098 = vmatprep.subr.bf16.mxu0 %v6263_v1  ;;  %2139 = vmatprep.subr.bf16.mxu1 %v6266_v2 }
 0xf04   :  { %2099 = vmatpush1.bf16.msra.mxu0 %v6269_v3  ;;  %2140 = vmatpush1.bf16.msra.mxu1 %v6272_v16 }
 0xf05   :  { %2100 = vmatprep.subr.bf16.mxu0 %v6338_v49  ;;  %2141 = vmatprep.subr.bf16.mxu1 %v6341_v4  ;;  %v1853_v49 = vpop.permute.xlu0 %1852 }
 0xf08   :  { %2101 = vmatpush1.bf16.msra.mxu0 %v6344_v15  ;;  %2142 = vmatpush1.bf16.msra.mxu1 %v6347_v62  ;;  %v1855_v62 = vsel %vm218_vm0, %v1853_v49, %v6424_v24 }
 0xf09   :  { %v2008_v27 = vrot.slane %v1855_v62, %v6055_v14 }
 0xf0b   :  { %v2015_v29 = vrot.slane %v2008_v27, %v6055_v14 }
 0xfbe   :  { %v1891_v18 = vpop.f32.mrb[28].mxu0  ;;  %v1932_v34 = vpop.f32.mrb[28].mxu1 }
 0xfbf   :  { %v1893_v19 = vpop.f32.mrb[29].mxu0  ;;  %v1934_v35 = vpop.f32.mrb[29].mxu1 }
 0xfc0   :  { %v1943_v36 = vcombine.low %v1891_v18, %v1893_v19  ;;  %v1964_v37 = vcombine.low %v1932_v34, %v1934_v35  ;;  %v1895_v38 = vpop.f32.mrb[30].mxu0  ;;  %v1936_v39 = vpop.f32.mrb[30].mxu1 }
 0xfc1   :  { %v1896_v40 = vpop.f32.mrb[31].mxu0  ;;  %v1937_v41 = vpop.f32.mrb[31].mxu1 }
 0xfc2   :  { %v1950_v42 = vrot.slane %v1943_v36, %v6055_v14  ;;  %v1971_v43 = vrot.slane %v1964_v37, %v6055_v14 }
 0xfc4   :  { %v1957_v44 = vrot.slane %v1950_v42, %v6055_v14  ;;  %v1978_v45 = vrot.slane %v1971_v43, %v6055_v14 }
 0xfc6   :  { %v1959_v58 = vadd.f32 %v1957_v44, %v1940_v46  ;;  %v1980_v59 = vadd.f32 %v1978_v45, %v1961_v55 }
 0xfc8   :  { %v4840_v20 = vmul.f32 -1.442695, %v1959_v58  ;;  %2042 = vrot.lane.b32.xlu0 %v1980_v59, %s5750_s3  ;;  %v4842_v60 = vmul.f32 -1.442695, %v1980_v59  ;;  %v1988_v61 = vrot.slane %v1959_v58, 1  ;;  %v2039_v1 = vrot.slane %v1980_v59, 1 }
 0xfca   :  { %5320 = vpow2.f32 %v4840_v20 }
 0xfcb   :  { %5322 = vpow2.f32 %v4842_v60 }
 0xfcc   :  { %5324 = vtanh.f32 %v1988_v61 }
 0xfd4   :  { %v5321_v63 = vpop.eup %5320 }
 0xfd5   :  { %v1984_v2 = vadd.f32 1.0, %v5321_v63  ;;  %v5323_v3 = vpop.eup %5322 }
 0xfd6   :  { %v2035_v16 = vadd.f32 1.0, %v5323_v3  ;;  %v5325_v4 = vpop.eup %5324  ;;  %v2190_v3 = vld [vmem:[#allocation3 + $0x10] ss:$8 sm:$0x3] }
 0xfd7   :  { %5326 = vrcp.f32 %v1984_v2  ;;  %v2169_v2 = vld [vmem:[#allocation3 + $0x7] ss:$8 sm:$0x3] }
 0xfd8   :  { %5328 = vtanh.f32 %v2039_v1 }
 0xfd9   :  { %5330 = vrcp.f32 %v2035_v16 }
 0xfe1   :  { %v5327_v15 = vpop.eup %5326 }
 0xfe2   :  { %v5329_v5 = vpop.eup %5328  ;;  %v2020_v25 = vmul.f32 %v5327_v15, %v5325_v4 }
 0xfe3   :  { %v5331_v6 = vpop.eup %5330 }
 0xfe4   :  { %v2053_v28 = vmul.f32 %v5331_v6, %v5329_v5  ;;  %2022 = vrot.lane.b32.xlu0 %v2020_v25, %s5750_s3  ;;  %v2052_v26 = vmul.f32 %v5331_v6, %v1855_v62 }
 0xfe6   :  { %2055 = vrot.lane.b32.xlu1 %v2053_v28, %s5750_s3 }
 0xfe8   :  { %1991 = vrot.lane.b32.xlu0 %v1959_v58, %s5750_s3 }
 0xfea   :  { %2016 = vrot.lane.b32.xlu1 %v2015_v29, %s5750_s3 }
0x103a   :  { %v2043_v24 = vpop.permute.xlu0 %2042 }
0x103b   :  { %v2044_v12 = vrot.slane %v2043_v24, 1 }
0x103d   :  { %v4843_v48 = vmul.f32 -1.442695, %v2044_v12 }
0x1056   :  { %v2023_v7 = vpop.permute.xlu0 %2022 }
0x1058   :  { %v2056_v30 = vpop.permute.xlu1 %2055 }
0x1059   :  { %v6481_v31 = vadd.f32 %v2056_v30, %v2052_v26 }
0x105a   :  { %v1992_v8 = vpop.permute.xlu0 %1991 }
0x105b   :  { %5332 = vtanh.f32 %v6481_v31  ;;  %v1993_v13 = vrot.slane %v1992_v8, 1 }
0x105c   :  { %v2017_v32 = vpop.permute.xlu1 %2016 }
0x105d   :  { %v2019_v50 = vmul.f32 %v5327_v15, %v2017_v32  ;;  %v4841_v17 = vmul.f32 -1.442695, %v1993_v13 }
0x105f   :  { %v2025_v9 = vadd.f32 %v2023_v7, %v2019_v50 }
0x1061   :  { %5334 = vtanh.f32 %v2025_v9  ;;  %v2080_v47 = vrot.slane %v2025_v9, %v6039_v53 }
0x1062   :  { %5336 = vpow2.f32 %v4843_v48 }
0x1063   :  { %5338 = vpow2.f32 %v4841_v17 }
0x1065   :  { %v5333_v10 = vpop.eup %5332 }
0x1066   :  { %2061 = vrot.lane.b32.xlu1 %v5333_v10, %s5750_s3 }
0x106b   :  { %v5335_v11 = vpop.eup %5334 }
0x106c   :  { %2028 = vrot.lane.b32.xlu1 %v5335_v11, %s5750_s3  ;;  %v5337_v51 = vpop.eup %5336 }
0x106d   :  { %v2049_v21 = vadd.f32 1.0, %v5337_v51  ;;  %v5339_v23 = vpop.eup %5338 }
0x106e   :  { %v1998_v22 = vadd.f32 1.0, %v5339_v23  ;;  %v5074_v23 = vld [vmem:[#allocation9 + $0x4] ss:$16 sps:$4 sm:$0xff]  }
0x106f   :  { %5340 = vrcp.f32 %v2049_v21  ;;  %v5072_v21 = vld [vmem:[#allocation9] ss:$16 sps:$4 sm:$0xff]   ;;  %2520 = vmatprep.subr.bf16.mxu0 %v5074_v23  ;;  %v6526_v23 = vld [vmem:[#allocation10 + $0x2c] ss:$16 sps:$4 sm:$0xff]  }
0x1070   :  { %2081 = vrot.lane.b32.xlu1 %v2080_v47, %s5750_s3  ;;  %5342 = vrcp.f32 %v1998_v22  ;;  %v5075_v22 = vld [vmem:[#allocation9 + $0x8] ss:$16 sps:$4 sm:$0xff]  }
0x1079   :  { %v5341_v33 = vpop.eup %5340 }
0x107a   :  { %v5343_v35 = vpop.eup %5342 }
0x10d8   :  { %v2062_v18 = vpop.permute.xlu1 %2061 }
0x10d9   :  { %v2064_v34 = vmul.f32 %v5341_v33, %v2062_v18  ;;  %v5077_v33 = vld [vmem:[#allocation9 + $0xc] ss:$16 sps:$4 sm:$0xff]   ;;  %v5080_v18 = vld [vmem:[#allocation9 + $0x24] ss:$16 sps:$4 sm:$0xff]  }
0x10da   :  { %2561 = vmatprep.subr.bf16.mxu1 %v5077_v33  ;;  %v6532_v33 = vld [vmem:[#allocation10 + $0x28] ss:$16 sps:$4 sm:$0xff]  }
0x10db   :  { %v2070_v19 = vrot.slane %v2064_v34, %v6039_v53  ;;  %v5083_v34 = vld [vmem:[#allocation9 + $0x2c] ss:$16 sps:$4 sm:$0xff]  }
0x10dd   :  { %2071 = vrot.lane.b32.xlu0 %v2070_v19, %s5750_s3  ;;  %v5078_v19 = vld [vmem:[#allocation9 + $0x20] ss:$16 sps:$4 sm:$0xff]  }
0x10de   :  { %v2029_v36 = vpop.permute.xlu1 %2028 }
0x10df   :  { %v2031_v37 = vmul.f32 %v5343_v35, %v2029_v36  ;;  %v5081_v36 = vld [vmem:[#allocation9 + $0x28] ss:$16 sps:$4 sm:$0xff]  }
0x10e1   :  { %2065 = vst.msk [vmem:[#allocation2 + $0x6] sm:$0x1] %vm689_vm1, %v2031_v37 }
0x10e2   :  { %v2082_v29 = vpop.permute.xlu1 %2081 }
0x10e3   :  { %v2084_v24 = vsel %vm218_vm0, %v2082_v29, %v6481_v31  ;;  %v5116_v29 = vld [vmem:[#allocation9 + $0xe4] ss:$16 sps:$4 sm:$0xff]  }
0x10e4   :  { %v2237_v9 = vrot.slane %v2084_v24, %v6055_v14 }
0x10e6   :  { %v2244_v11 = vrot.slane %v2237_v9, %v6055_v14 }
0x114f   :  { %v2072_v38 = vpop.permute.xlu0 %2071 }
0x1150   :  { %2074 = vst.msk [vmem:[#allocation2 + $0x1] sm:$0x1] %vm699_vm2, %v2072_v38  ;;  %v2075_v39 = vsel %vm218_vm0, %v2031_v37, %v2072_v38  ;;  %v5086_v37 = vld [vmem:[#allocation9 + $0x44] ss:$16 sps:$4 sm:$0xff]   ;;  %v5089_v38 = vld [vmem:[#allocation9 + $0x4c] ss:$16 sps:$4 sm:$0xff]  }
0x1151   :  { %v2085_v40 = vpack.c.bf16 %v2075_v39, %v2075_v39  ;;  %v5084_v39 = vld [vmem:[#allocation9 + $0x40] ss:$16 sps:$4 sm:$0xff]  }
0x1153   :  { %2119 = vmatmul.mubr.bf16.vlgmr.msra.gmra.mrb[32].mxu0 %v2085_v40  ;;  %2160 = vmatmul.mubr.bf16.vlgmr.msra.gmra.mrb[32].mxu1 %v2085_v40  ;;  %v5087_v40 = vld [vmem:[#allocation9 + $0x48] ss:$16 sps:$4 sm:$0xff]  }
0x1154   :  { %2552 = vmatprep.mubr.bf16.mxu0 %v5748_v0  ;;  %2593 = vmatprep.mubr.bf16.mxu1 %v5748_v0 }
0x1155   :  { %2521 = vmatpush1.bf16.msra.mxu0 %v5072_v21  ;;  %2562 = vmatpush1.bf16.msra.mxu1 %v5075_v22  ;;  %v6524_v21 = vld [vmem:[#allocation10 + $0x24] ss:$16 sps:$4 sm:$0xff]   ;;  %v6530_v22 = vld [vmem:[#allocation10 + $0x20] ss:$16 sps:$4 sm:$0xff]  }
0x1156   :  { %2522 = vmatprep.subr.bf16.mxu0 %v5080_v18  ;;  %2563 = vmatprep.subr.bf16.mxu1 %v5083_v34  ;;  %v6536_v18 = vld [vmem:[#allocation10 + $0x44] ss:$16 sps:$4 sm:$0xff]   ;;  %v6538_v34 = vld [vmem:[#allocation10 + $0x4c] ss:$16 sps:$4 sm:$0xff]  }
0x1159   :  { %2523 = vmatpush1.bf16.msra.mxu0 %v5078_v19  ;;  %2564 = vmatpush1.bf16.msra.mxu1 %v5081_v36  ;;  %v6544_v19 = vld [vmem:[#allocation10 + $0x40] ss:$16 sps:$4 sm:$0xff]   ;;  %v6550_v36 = vld [vmem:[#allocation10 + $0x64] ss:$16 sps:$4 sm:$0xff]  }
0x115a   :  { %2524 = vmatprep.subr.bf16.mxu0 %v5086_v37  ;;  %2565 = vmatprep.subr.bf16.mxu1 %v5089_v38  ;;  %v6552_v37 = vld [vmem:[#allocation10 + $0x6c] ss:$16 sps:$4 sm:$0xff]   ;;  %v6556_v38 = vld [vmem:[#allocation10 + $0x60] ss:$16 sps:$4 sm:$0xff]  }
0x115d   :  { %2525 = vmatpush1.bf16.msra.mxu0 %v5084_v39  ;;  %2566 = vmatpush1.bf16.msra.mxu1 %v5087_v40  ;;  %v6558_v39 = vld [vmem:[#allocation10 + $0x68] ss:$16 sps:$4 sm:$0xff]   ;;  %v6562_v40 = vld [vmem:[#allocation10 + $0x84] ss:$16 sps:$4 sm:$0xff]  }
0x1226   :  { %v2120_v41 = vpop.f32.mrb[32].mxu0  ;;  %v2161_v42 = vpop.f32.mrb[32].mxu1 }
0x1227   :  { %v2122_v43 = vpop.f32.mrb[33].mxu0  ;;  %v2163_v44 = vpop.f32.mrb[33].mxu1 }
0x1228   :  { %v2172_v45 = vcombine.low %v2120_v41, %v2122_v43  ;;  %v2193_v46 = vcombine.low %v2161_v42, %v2163_v44  ;;  %v2124_v55 = vpop.f32.mrb[34].mxu0  ;;  %v2165_v58 = vpop.f32.mrb[34].mxu1  ;;  %v5092_v41 = vld [vmem:[#allocation9 + $0x64] ss:$16 sps:$4 sm:$0xff]   ;;  %v5095_v42 = vld [vmem:[#allocation9 + $0x6c] ss:$16 sps:$4 sm:$0xff]  }
0x1229   :  { %v2125_v59 = vpop.f32.mrb[35].mxu0  ;;  %v2166_v20 = vpop.f32.mrb[35].mxu1  ;;  %v5090_v44 = vld [vmem:[#allocation9 + $0x60] ss:$16 sps:$4 sm:$0xff]   ;;  %2526 = vmatprep.subr.bf16.mxu0 %v5092_v41  ;;  %2567 = vmatprep.subr.bf16.mxu1 %v5095_v42  ;;  %v5101_v55 = vld [vmem:[#allocation9 + $0x8c] ss:$16 sps:$4 sm:$0xff]  }
0x122a   :  { %v2179_v60 = vrot.slane %v2172_v45, %v6055_v14  ;;  %v2200_v61 = vrot.slane %v2193_v46, %v6055_v14  ;;  %v5093_v45 = vld [vmem:[#allocation9 + $0x68] ss:$16 sps:$4 sm:$0xff]   ;;  %v5098_v46 = vld [vmem:[#allocation9 + $0x84] ss:$16 sps:$4 sm:$0xff]   ;;  %2527 = vmatpush1.bf16.msra.mxu0 %v5090_v44  ;;  %v5096_v58 = vld [vmem:[#allocation9 + $0x80] ss:$16 sps:$4 sm:$0xff]  }
0x122b   :  { %2568 = vmatpush1.bf16.msra.mxu1 %v5093_v45  ;;  %2528 = vmatprep.subr.bf16.mxu0 %v5098_v46  ;;  %v5099_v59 = vld [vmem:[#allocation9 + $0x88] ss:$16 sps:$4 sm:$0xff]   ;;  %v5104_v20 = vld [vmem:[#allocation9 + $0xa4] ss:$16 sps:$4 sm:$0xff]   ;;  %v6564_v41 = vld [vmem:[#allocation10 + $0x8c] ss:$16 sps:$4 sm:$0xff]  }
0x122c   :  { %v2186_v63 = vrot.slane %v2179_v60, %v6055_v14  ;;  %v2207_v1 = vrot.slane %v2200_v61, %v6055_v14  ;;  %2569 = vmatprep.subr.bf16.mxu1 %v5101_v55  ;;  %v5107_v60 = vld [vmem:[#allocation9 + $0xac] ss:$16 sps:$4 sm:$0xff]   ;;  %v5102_v61 = vld [vmem:[#allocation9 + $0xa0] ss:$16 sps:$4 sm:$0xff]   ;;  %v6574_v44 = vld [vmem:[#allocation10 + $0xa4] ss:$16 sps:$4 sm:$0xff]  }
0x122d   :  { %v6568_v42 = vld [vmem:[#allocation10 + $0x80] ss:$16 sps:$4 sm:$0xff]   ;;  %v6576_v45 = vld [vmem:[#allocation10 + $0xac] ss:$16 sps:$4 sm:$0xff]   ;;  %v6582_v55 = vld [vmem:[#allocation10 + $0xa8] ss:$16 sps:$4 sm:$0xff]  }
0x122e   :  { %v2188_v16 = vadd.f32 %v2186_v63, %v2169_v2  ;;  %v2209_v49 = vadd.f32 %v2207_v1, %v2190_v3  ;;  %2529 = vmatpush1.bf16.msra.mxu0 %v5096_v58  ;;  %v5105_v63 = vld [vmem:[#allocation9 + $0xa8] ss:$16 sps:$4 sm:$0xff]   ;;  %v6580_v46 = vld [vmem:[#allocation10 + $0xa0] ss:$16 sps:$4 sm:$0xff]   ;;  %v6586_v58 = vld [vmem:[#allocation10 + $0xc4] ss:$16 sps:$4 sm:$0xff]  }
0x122f   :  { %2570 = vmatpush1.bf16.msra.mxu1 %v5099_v59  ;;  %2530 = vmatprep.subr.bf16.mxu0 %v5104_v20  ;;  %v6588_v59 = vld [vmem:[#allocation10 + $0xcc] ss:$16 sps:$4 sm:$0xff]   ;;  %v6592_v20 = vld [vmem:[#allocation10 + $0xc0] ss:$16 sps:$4 sm:$0xff]  }
0x1230   :  { %v4844_v4 = vmul.f32 -1.442695, %v2188_v16  ;;  %2271 = vrot.lane.b32.xlu1 %v2209_v49, %s5750_s3  ;;  %v4846_v15 = vmul.f32 -1.442695, %v2209_v49  ;;  %v2217_v62 = vrot.slane %v2188_v16, 1  ;;  %v2268_v25 = vrot.slane %v2209_v49, 1  ;;  %2571 = vmatprep.subr.bf16.mxu1 %v5107_v60 }
0x1231   :  { %v6594_v60 = vld [vmem:[#allocation10 + $0xc8] ss:$16 sps:$4 sm:$0xff]  }
0x1232   :  { %5344 = vpow2.f32 %v4844_v4  ;;  %2531 = vmatpush1.bf16.msra.mxu0 %v5102_v61  ;;  %v6598_v61 = vld [vmem:[#allocation10 + $0xe4] ss:$16 sps:$4 sm:$0xff]  }
0x1233   :  { %5346 = vpow2.f32 %v4846_v15  ;;  %2572 = vmatpush1.bf16.msra.mxu1 %v5105_v63  ;;  %v6600_v63 = vld [vmem:[#allocation10 + $0xec] ss:$16 sps:$4 sm:$0xff]  }
0x1234   :  { %5348 = vtanh.f32 %v2217_v62 }
0x123c   :  { %v5345_v5 = vpop.eup %5344 }
0x123d   :  { %v2213_v6 = vadd.f32 1.0, %v5345_v5  ;;  %v5347_v27 = vpop.eup %5346 }
0x123e   :  { %v2264_v28 = vadd.f32 1.0, %v5347_v27  ;;  %v5349_v26 = vpop.eup %5348  ;;  %v5108_v27 = vld [vmem:[#allocation9 + $0xc0] ss:$16 sps:$4 sm:$0xff]  }
0x123f   :  { %5350 = vrcp.f32 %v2213_v6  ;;  %v5113_v6 = vld [vmem:[#allocation9 + $0xcc] ss:$16 sps:$4 sm:$0xff]  }
0x1240   :  { %5352 = vtanh.f32 %v2268_v25  ;;  %v5110_v25 = vld [vmem:[#allocation9 + $0xc4] ss:$16 sps:$4 sm:$0xff]   ;;  %2573 = vmatprep.subr.bf16.mxu1 %v5113_v6 }
0x1241   :  { %5354 = vrcp.f32 %v2264_v28  ;;  %v5111_v28 = vld [vmem:[#allocation9 + $0xc8] ss:$16 sps:$4 sm:$0xff]   ;;  %2532 = vmatprep.subr.bf16.mxu0 %v5110_v25 }
0x1242   :  { %2533 = vmatpush1.bf16.msra.mxu0 %v5108_v27  ;;  %2574 = vmatpush1.bf16.msra.mxu1 %v5111_v28 }
0x1243   :  { %2534 = vmatprep.subr.bf16.mxu0 %v5116_v29 }
0x1249   :  { %v5351_v30 = vpop.eup %5350 }
0x124a   :  { %v5353_v32 = vpop.eup %5352  ;;  %v2249_v50 = vmul.f32 %v5351_v30, %v5349_v26  ;;  %v5119_v26 = vld [vmem:[#allocation9 + $0xec] ss:$16 sps:$4 sm:$0xff]  }
0x124b   :  { %v5355_v7 = vpop.eup %5354  ;;  %2575 = vmatprep.subr.bf16.mxu1 %v5119_v26 }
0x124c   :  { %v2282_v10 = vmul.f32 %v5355_v7, %v5353_v32  ;;  %2251 = vrot.lane.b32.xlu1 %v2249_v50, %s5750_s3  ;;  %v2281_v47 = vmul.f32 %v5355_v7, %v2084_v24  ;;  %v5117_v24 = vld [vmem:[#allocation9 + $0xe8] ss:$16 sps:$4 sm:$0xff]   ;;  %v6510_v32 = vld [vmem:[#allocation10 + $0x4] ss:$16 sps:$4 sm:$0xff]   ;;  %v6512_v50 = vld [vmem:[#allocation10 + $0xc] ss:$16 sps:$4 sm:$0xff]  }
0x124d   :  { %2576 = vmatpush1.bf16.msra.mxu1 %v5117_v24 }
0x124e   :  { %2284 = vrot.lane.b32.xlu0 %v2282_v10, %s5750_s3  ;;  %2839 = vmatprep.subr.bf16.mxu1 %v6512_v50 }
0x1250   :  { %2220 = vrot.lane.b32.xlu1 %v2188_v16, %s5750_s3 }
0x1252   :  { %2245 = vrot.lane.b32.xlu0 %v2244_v11, %s5750_s3 }
0x12a2   :  { %v2272_v31 = vpop.permute.xlu1 %2271 }
0x12a3   :  { %v2273_v1 = vrot.slane %v2272_v31, 1 }
0x12a5   :  { %v4847_v3 = vmul.f32 -1.442695, %v2273_v1  ;;  %v6604_v1 = vld [vmem:[#allocation10 + $0xe0] ss:$16 sps:$4 sm:$0xff]  }
0x12be   :  { %v2252_v17 = vpop.permute.xlu1 %2251 }
0x12c0   :  { %v2285_v12 = vpop.permute.xlu0 %2284 }
0x12c1   :  { %v2287_v8 = vadd.f32 %v2285_v12, %v2281_v47 }
0x12c2   :  { %v2221_v2 = vpop.permute.xlu1 %2220 }
0x12c3   :  { %5356 = vtanh.f32 %v2287_v8  ;;  %v2222_v16 = vrot.slane %v2221_v2, 1  ;;  %v6606_v2 = vld [vmem:[#allocation10 + $0xe8] ss:$16 sps:$4 sm:$0xff]  }
0x12c4   :  { %v2246_v48 = vpop.permute.xlu0 %2245 }
0x12c5   :  { %v2248_v13 = vmul.f32 %v5351_v30, %v2246_v48  ;;  %v4845_v49 = vmul.f32 -1.442695, %v2222_v16  ;;  %v5114_v30 = vld [vmem:[#allocation9 + $0xe0] ss:$16 sps:$4 sm:$0xff]  }
0x12c6   :  { %2535 = vmatpush1.bf16.msra.mxu0 %v5114_v30 }
0x12c7   :  { %v2254_v51 = vadd.f32 %v2252_v17, %v2248_v13  ;;  %2798 = vmatprep.subr.bf16.mxu0 %v6510_v32  ;;  %v6520_v13 = vld [vmem:[#allocation10] ss:$16 sps:$4 sm:$0xff]   ;;  %v6522_v17 = vld [vmem:[#allocation10 + $0x8] ss:$16 sps:$4 sm:$0xff]  }
0x12c9   :  { %5358 = vtanh.f32 %v2254_v51 }
0x12ca   :  { %5360 = vpow2.f32 %v4847_v3  ;;  %v2338_v3 = vld [vmem:[%s7179_s6] sm:$0xf] }
0x12cb   :  { %5362 = vpow2.f32 %v4845_v49  ;;  %v2343_v16 = vrot.slane %v2338_v3, %v6039_v53  ;;  %v2351_v49 = vrot.slane %v2338_v3, %v128_v54 }
0x12cd   :  { %v5357_v35 = vpop.eup %5356 }
0x12ce   :  { %2290 = vrot.lane.b32.xlu0 %v5357_v35, %s5750_s3  ;;  %v6546_v35 = vld [vmem:[#allocation10 + $0x48] ss:$16 sps:$4 sm:$0xff]  }
0x12d3   :  { %v5359_v43 = vpop.eup %5358 }
0x12d4   :  { %2257 = vrot.lane.b32.xlu0 %v5359_v43, %s5750_s3  ;;  %v5361_v4 = vpop.eup %5360  ;;  %v6570_v43 = vld [vmem:[#allocation10 + $0x88] ss:$16 sps:$4 sm:$0xff]  }
0x12d5   :  { %v2278_v15 = vadd.f32 1.0, %v5361_v4  ;;  %v5363_v62 = vpop.eup %5362  ;;  %v2347_v4 = vrot.slane %v2338_v3, %v124_v57 }
0x12d6   :  { %v2227_v5 = vadd.f32 1.0, %v5363_v62 }
0x12d7   :  { %5364 = vrcp.f32 %v2278_v15  ;;  %v2355_v15 = vrot.slane %v2338_v3, %v132_v56 }
0x12d8   :  { %5366 = vrcp.f32 %v2227_v5 }
0x12e1   :  { %v5365_v7 = vpop.eup %5364 }
0x12e2   :  { %v5367_v47 = vpop.eup %5366 }
0x1340   :  { %v2291_v9 = vpop.permute.xlu0 %2290 }
0x1341   :  { %v2293_v10 = vmul.f32 %v5365_v7, %v2291_v9 }
0x1343   :  { %v2299_v11 = vrot.slane %v2293_v10, %v6039_v53 }
0x1345   :  { %2300 = vrot.lane.b32.xlu1 %v2299_v11, %s5750_s3 }
0x1346   :  { %v2258_v12 = vpop.permute.xlu0 %2257 }
0x1347   :  { %v2260_v8 = vmul.f32 %v5367_v47, %v2258_v12 }
0x1349   :  { %2294 = vst.msk [vmem:[#allocation2 + $0x7] sm:$0x1] %vm689_vm1, %v2260_v8 }
0x13b7   :  { %v2301_v31 = vpop.permute.xlu1 %2300 }
0x13b8   :  { %2303 = vst.msk [vmem:[#allocation2] sm:$0x1] %vm699_vm2, %v2301_v31 }
0x13bf   :  { %v2304_v48 = vld [vmem:[#allocation2] sm:$0xff] }
0x13c0   :  { %v2305_v51 = vpack.c.bf16 %v2304_v48, %v2304_v48 }
0x13c2   :  { %2553 = vmatmul.mubr.bf16.vlgmr.msra.gmra.mrb[36].mxu0 %v2305_v51  ;;  %2594 = vmatmul.mubr.bf16.vlgmr.msra.gmra.mrb[36].mxu1 %v2305_v51 }
0x13c3   :  { %2799 = vmatpush1.bf16.msra.mxu0 %v6520_v13  ;;  %2840 = vmatpush1.bf16.msra.mxu1 %v6522_v17 }
0x13c4   :  { %2800 = vmatprep.subr.bf16.mxu0 %v6524_v21  ;;  %2841 = vmatprep.subr.bf16.mxu1 %v6526_v23 }
0x13c5   :  { %2830 = vmatprep.mubr.bf16.mxu0 %v5748_v0  ;;  %2871 = vmatprep.mubr.bf16.mxu1 %v5748_v0 }
0x13c7   :  { %2801 = vmatpush1.bf16.msra.mxu0 %v6530_v22  ;;  %2842 = vmatpush1.bf16.msra.mxu1 %v6532_v33 }
0x13c8   :  { %2802 = vmatprep.subr.bf16.mxu0 %v6536_v18  ;;  %2843 = vmatprep.subr.bf16.mxu1 %v6538_v34 }
0x13cb   :  { %2803 = vmatpush1.bf16.msra.mxu0 %v6544_v19  ;;  %2844 = vmatpush1.bf16.msra.mxu1 %v6546_v35 }
0x13cc   :  { %2804 = vmatprep.subr.bf16.mxu0 %v6550_v36  ;;  %2845 = vmatprep.subr.bf16.mxu1 %v6552_v37 }
0x13cf   :  { %2805 = vmatpush1.bf16.msra.mxu0 %v6556_v38  ;;  %2846 = vmatpush1.bf16.msra.mxu1 %v6558_v39 }
0x13d0   :  { %2806 = vmatprep.subr.bf16.mxu0 %v6562_v40  ;;  %2847 = vmatprep.subr.bf16.mxu1 %v6564_v41 }
0x13d3   :  { %2807 = vmatpush1.bf16.msra.mxu0 %v6568_v42  ;;  %2848 = vmatpush1.bf16.msra.mxu1 %v6570_v43 }
0x13d4   :  { %2808 = vmatprep.subr.bf16.mxu0 %v6574_v44  ;;  %2849 = vmatprep.subr.bf16.mxu1 %v6576_v45 }
0x13d7   :  { %2809 = vmatpush1.bf16.msra.mxu0 %v6580_v46  ;;  %2850 = vmatpush1.bf16.msra.mxu1 %v6582_v55 }
0x13d8   :  { %2810 = vmatprep.subr.bf16.mxu0 %v6586_v58  ;;  %2851 = vmatprep.subr.bf16.mxu1 %v6588_v59 }
0x13db   :  { %2811 = vmatpush1.bf16.msra.mxu0 %v6592_v20  ;;  %2852 = vmatpush1.bf16.msra.mxu1 %v6594_v60 }
0x13dc   :  { %2812 = vmatprep.subr.bf16.mxu0 %v6598_v61  ;;  %2853 = vmatprep.subr.bf16.mxu1 %v6600_v63 }
0x13df   :  { %2813 = vmatpush1.bf16.msra.mxu0 %v6604_v1  ;;  %2854 = vmatpush1.bf16.msra.mxu1 %v6606_v2 }
0x13e0   :  { %3007 = vmatprep.subr.bf16.mxu0 %v6510_v32  ;;  %3048 = vmatprep.subr.bf16.mxu1 %v6512_v50 }
0x13e2   :  { %2831 = vmatmul.mubr.bf16.vlgmr.msra.gmra.mrb[40].mxu0 %v5748_v0  ;;  %2872 = vmatmul.mubr.bf16.vlgmr.msra.gmra.mrb[40].mxu1 %v5748_v0 }
0x13e3   :  { %3008 = vmatpush1.bf16.msra.mxu0 %v6520_v13  ;;  %3049 = vmatpush1.bf16.msra.mxu1 %v6522_v17 }
0x13e4   :  { %3009 = vmatprep.subr.bf16.mxu0 %v6524_v21  ;;  %3050 = vmatprep.subr.bf16.mxu1 %v6526_v23 }
0x13e5   :  { %3039 = vmatprep.mubr.bf16.mxu0 %v5748_v0  ;;  %3080 = vmatprep.mubr.bf16.mxu1 %v5748_v0 }
0x13e7   :  { %3010 = vmatpush1.bf16.msra.mxu0 %v6530_v22  ;;  %3051 = vmatpush1.bf16.msra.mxu1 %v6532_v33 }
0x13e8   :  { %3011 = vmatprep.subr.bf16.mxu0 %v6536_v18  ;;  %3052 = vmatprep.subr.bf16.mxu1 %v6538_v34 }
0x13eb   :  { %3012 = vmatpush1.bf16.msra.mxu0 %v6544_v19  ;;  %3053 = vmatpush1.bf16.msra.mxu1 %v6546_v35 }
0x13ec   :  { %3013 = vmatprep.subr.bf16.mxu0 %v6550_v36  ;;  %3054 = vmatprep.subr.bf16.mxu1 %v6552_v37 }
0x13ef   :  { %3014 = vmatpush1.bf16.msra.mxu0 %v6556_v38  ;;  %3055 = vmatpush1.bf16.msra.mxu1 %v6558_v39 }
0x13f0   :  { %3015 = vmatprep.subr.bf16.mxu0 %v6562_v40  ;;  %3056 = vmatprep.subr.bf16.mxu1 %v6564_v41 }
0x13f3   :  { %3016 = vmatpush1.bf16.msra.mxu0 %v6568_v42  ;;  %3057 = vmatpush1.bf16.msra.mxu1 %v6570_v43 }
0x13f4   :  { %3017 = vmatprep.subr.bf16.mxu0 %v6574_v44  ;;  %3058 = vmatprep.subr.bf16.mxu1 %v6576_v45 }
0x13f7   :  { %3018 = vmatpush1.bf16.msra.mxu0 %v6580_v46  ;;  %3059 = vmatpush1.bf16.msra.mxu1 %v6582_v55 }
0x13f8   :  { %3019 = vmatprep.subr.bf16.mxu0 %v6586_v58  ;;  %3060 = vmatprep.subr.bf16.mxu1 %v6588_v59 }
0x13fb   :  { %3020 = vmatpush1.bf16.msra.mxu0 %v6592_v20  ;;  %3061 = vmatpush1.bf16.msra.mxu1 %v6594_v60 }
0x13fc   :  { %3021 = vmatprep.subr.bf16.mxu0 %v6598_v61  ;;  %3062 = vmatprep.subr.bf16.mxu1 %v6600_v63 }
0x13ff   :  { %3022 = vmatpush1.bf16.msra.mxu0 %v6604_v1  ;;  %3063 = vmatpush1.bf16.msra.mxu1 %v6606_v2 }
0x1400   :  { %3234 = vmatprep.subr.bf16.mxu0 %v6510_v32  ;;  %3275 = vmatprep.subr.bf16.mxu1 %v6512_v50 }
0x1495   :  { %v2554_v62 = vpop.f32.mrb[36].mxu0  ;;  %v2595_v5 = vpop.f32.mrb[36].mxu1 }
0x1496   :  { %v2555_v25 = vadd.f32 %v2554_v62, %v2343_v16  ;;  %v2596_v6 = vadd.f32 %v2595_v5, %v2351_v49  ;;  %v2556_v27 = vpop.f32.mrb[37].mxu0  ;;  %v2597_v28 = vpop.f32.mrb[37].mxu1 }
0x1497   :  { %v2557_v29 = vadd.f32 %v2556_v27, %v2347_v4  ;;  %v2598_v26 = vadd.f32 %v2597_v28, %v2355_v15  ;;  %v2558_v30 = vpop.f32.mrb[38].mxu0  ;;  %v2599_v24 = vpop.f32.mrb[38].mxu1 }
0x1498   :  { %2602 = vst [vmem:[#allocation3] sm:$0xff] %v2555_v25  ;;  %2604 = vst [vmem:[#allocation3 + $0x10] sm:$0xff] %v2596_v6  ;;  %v2559_v7 = vpop.f32.mrb[39].mxu0  ;;  %v2600_v54 = vpop.f32.mrb[39].mxu1 }
0x1499   :  { %2603 = vst [vmem:[#allocation3 + $0x8] sm:$0xff] %v2557_v29  ;;  %2605 = vst [vmem:[#allocation3 + $0x18] sm:$0xff] %v2598_v26 }
0x14a0   :  { %v2880_v49 = vld [vmem:[#allocation3] ss:$8 sm:$0x3]  ;;  %v2900_v4 = vld [vmem:[#allocation3 + $0x17] ss:$8 sm:$0x3] }
0x14b5   :  { %v2832_v57 = vpop.f32.mrb[40].mxu0  ;;  %v2873_v9 = vpop.f32.mrb[40].mxu1 }
0x14b6   :  { %v2834_v52 = vpop.f32.mrb[41].mxu0  ;;  %v2875_v56 = vpop.f32.mrb[41].mxu1 }
0x14b7   :  { %v2883_v10 = vcombine.low %v2832_v57, %v2834_v52  ;;  %v2903_v11 = vcombine.low %v2873_v9, %v2875_v56  ;;  %v2877_v47 = vpop.f32.mrb[42].mxu1  ;;  %v2836_v12 = vpop.f32.mrb[42].mxu0 }
0x14b8   :  { %v2878_v8 = vpop.f32.mrb[43].mxu1  ;;  %v2837_v31 = vpop.f32.mrb[43].mxu0 }
0x14b9   :  { %v2890_v48 = vrot.slane %v2883_v10, %v6055_v14  ;;  %v2910_v51 = vrot.slane %v2903_v11, %v6055_v14 }
0x14bb   :  { %v2897_v3 = vrot.slane %v2890_v48, %v6055_v14  ;;  %v2917_v16 = vrot.slane %v2910_v51, %v6055_v14 }
0x14bd   :  { %v2899_v15 = vadd.f32 %v2897_v3, %v2880_v49  ;;  %v2919_v62 = vadd.f32 %v2917_v16, %v2900_v4 }
0x14bf   :  { %v4912_v5 = vmul.f32 -1.442695, %v2899_v15  ;;  %2963 = vrot.lane.b32.xlu1 %v2919_v62, %s5750_s3  ;;  %v4914_v25 = vmul.f32 -1.442695, %v2919_v62  ;;  %v2960_v27 = vrot.slane %v2919_v62, 1  ;;  %v2927_v30 = vrot.slane %v2899_v15, 1 }
0x14c1   :  { %5368 = vpow2.f32 %v4912_v5 }
0x14c2   :  { %5370 = vpow2.f32 %v4914_v25 }
0x14c3   :  { %5372 = vtanh.f32 %v2960_v27 }
0x14cb   :  { %v5369_v6 = vpop.eup %5368 }
0x14cc   :  { %v5371_v28 = vpop.eup %5370  ;;  %v2923_v29 = vadd.f32 1.0, %v5369_v6 }
0x14cd   :  { %v2956_v26 = vadd.f32 1.0, %v5371_v28  ;;  %v5373_v24 = vpop.eup %5372 }
0x14cf   :  { %5374 = vrcp.f32 %v2956_v26 }
0x14d0   :  { %5376 = vrcp.f32 %v2923_v29 }
0x14d1   :  { %5378 = vtanh.f32 %v2927_v30 }
0x14d9   :  { %v5375_v7 = vpop.eup %5374 }
0x14da   :  { %v2974_v54 = vmul.f32 %v5375_v7, %v5373_v24  ;;  %v5377_v57 = vpop.eup %5376  ;;  %v2973_v56 = vmul.f32 0.0, %v5375_v7 }
0x14db   :  { %v5379_v9 = vpop.eup %5378  ;;  %v2940_v47 = vmul.f32 0.0, %v5377_v57 }
0x14dc   :  { %2976 = vrot.lane.b32.xlu0 %v2974_v54, %s5750_s3  ;;  %v2941_v52 = vmul.f32 %v5379_v9, %v5377_v57 }
0x14e0   :  { %2943 = vrot.lane.b32.xlu0 %v2941_v52, %s5750_s3 }
0x14e4   :  { %2930 = vrot.lane.b32.xlu0 %v2899_v15, %s5750_s3 }
0x1531   :  { %v2964_v3 = vpop.permute.xlu1 %2963 }
0x1532   :  { %v2965_v16 = vrot.slane %v2964_v3, 1 }
0x1534   :  { %v4915_v4 = vmul.f32 -1.442695, %v2965_v16 }
0x154e   :  { %v2977_v10 = vpop.permute.xlu0 %2976 }
0x154f   :  { %v6668_v11 = vadd.f32 %v2977_v10, %v2973_v56 }
0x1551   :  { %5380 = vtanh.f32 %v6668_v11 }
0x1552   :  { %v2944_v12 = vpop.permute.xlu0 %2943 }
0x1553   :  { %v2946_v8 = vadd.f32 %v2944_v12, %v2940_v47 }
0x1555   :  { %5382 = vtanh.f32 %v2946_v8  ;;  %v3001_v51 = vrot.slane %v2946_v8, %v6039_v53 }
0x1556   :  { %v2931_v49 = vpop.permute.xlu0 %2930  ;;  %5384 = vpow2.f32 %v4915_v4 }
0x1557   :  { %v2932_v15 = vrot.slane %v2931_v49, 1 }
0x1559   :  { %v4913_v62 = vmul.f32 -1.442695, %v2932_v15 }
0x155b   :  { %v5381_v31 = vpop.eup %5380  ;;  %5386 = vpow2.f32 %v4913_v62 }
0x155c   :  { %2982 = vrot.lane.b32.xlu1 %v5381_v31, %s5750_s3 }
0x155f   :  { %v5383_v48 = vpop.eup %5382 }
0x1560   :  { %2949 = vrot.lane.b32.xlu1 %v5383_v48, %s5750_s3  ;;  %v5385_v5 = vpop.eup %5384 }
0x1561   :  { %v2970_v25 = vadd.f32 1.0, %v5385_v5  ;;  %v3089_v5 = vld [vmem:[#allocation3 + $0x1] ss:$8 sm:$0x3] }
0x1563   :  { %5388 = vrcp.f32 %v2970_v25  ;;  %v3109_v25 = vld [vmem:[#allocation3 + $0x16] ss:$8 sm:$0x3] }
0x1564   :  { %3002 = vrot.lane.b32.xlu1 %v3001_v51, %s5750_s3 }
0x1565   :  { %v5387_v6 = vpop.eup %5386 }
0x1566   :  { %v2937_v27 = vadd.f32 1.0, %v5387_v6 }
0x1568   :  { %5390 = vrcp.f32 %v2937_v27 }
0x156d   :  { %v5389_v28 = vpop.eup %5388 }
0x1572   :  { %v5391_v24 = vpop.eup %5390 }
0x15ce   :  { %v2983_v29 = vpop.permute.xlu1 %2982 }
0x15cf   :  { %v2985_v26 = vmul.f32 %v5389_v28, %v2983_v29 }
0x15d1   :  { %v2991_v30 = vrot.slane %v2985_v26, %v6039_v53 }
0x15d2   :  { %v2950_v7 = vpop.permute.xlu1 %2949 }
0x15d3   :  { %v2952_v54 = vmul.f32 %v5391_v24, %v2950_v7  ;;  %2992 = vrot.lane.b32.xlu0 %v2991_v30, %s5750_s3 }
0x15d5   :  { %2986 = vst.msk [vmem:[#allocation2] sm:$0x1] %vm689_vm1, %v2952_v54 }
0x1645   :  { %v2993_v57 = vpop.permute.xlu0 %2992 }
0x1646   :  { %2995 = vst.msk [vmem:[#allocation2 + $0x7] sm:$0x1] %vm699_vm2, %v2993_v57  ;;  %v2996_v9 = vsel %vm218_vm0, %v2952_v54, %v2993_v57 }
0x1647   :  { %v3006_v52 = vpack.c.bf16 %v2996_v9, %v2996_v9  ;;  %v3003_v9 = vpop.permute.xlu1 %3002 }
0x1649   :  { %3040 = vmatmul.mubr.bf16.vlgmr.msra.gmra.mrb[44].mxu0 %v3006_v52  ;;  %3081 = vmatmul.mubr.bf16.vlgmr.msra.gmra.mrb[44].mxu1 %v3006_v52 }
0x164a   :  { %3235 = vmatpush1.bf16.msra.mxu0 %v6520_v13  ;;  %3276 = vmatpush1.bf16.msra.mxu1 %v6522_v17 }
0x164b   :  { %3236 = vmatprep.subr.bf16.mxu0 %v6524_v21  ;;  %3277 = vmatprep.subr.bf16.mxu1 %v6526_v23 }
0x164c   :  { %3266 = vmatprep.mubr.bf16.mxu0 %v5748_v0  ;;  %3307 = vmatprep.mubr.bf16.mxu1 %v5748_v0 }
0x164e   :  { %3237 = vmatpush1.bf16.msra.mxu0 %v6530_v22  ;;  %3278 = vmatpush1.bf16.msra.mxu1 %v6532_v33 }
0x164f   :  { %3238 = vmatprep.subr.bf16.mxu0 %v6536_v18  ;;  %3279 = vmatprep.subr.bf16.mxu1 %v6538_v34 }
0x1652   :  { %3239 = vmatpush1.bf16.msra.mxu0 %v6544_v19  ;;  %3280 = vmatpush1.bf16.msra.mxu1 %v6546_v35 }
0x1653   :  { %3240 = vmatprep.subr.bf16.mxu0 %v6550_v36  ;;  %3281 = vmatprep.subr.bf16.mxu1 %v6552_v37 }
0x1656   :  { %3241 = vmatpush1.bf16.msra.mxu0 %v6556_v38  ;;  %3282 = vmatpush1.bf16.msra.mxu1 %v6558_v39 }
0x1657   :  { %3242 = vmatprep.subr.bf16.mxu0 %v6562_v40  ;;  %3283 = vmatprep.subr.bf16.mxu1 %v6564_v41 }
0x165a   :  { %3243 = vmatpush1.bf16.msra.mxu0 %v6568_v42  ;;  %3284 = vmatpush1.bf16.msra.mxu1 %v6570_v43 }
0x165b   :  { %3244 = vmatprep.subr.bf16.mxu0 %v6574_v44  ;;  %3285 = vmatprep.subr.bf16.mxu1 %v6576_v45 }
0x165e   :  { %3245 = vmatpush1.bf16.msra.mxu0 %v6580_v46  ;;  %3286 = vmatpush1.bf16.msra.mxu1 %v6582_v55 }
0x165f   :  { %3246 = vmatprep.subr.bf16.mxu0 %v6586_v58  ;;  %3287 = vmatprep.subr.bf16.mxu1 %v6588_v59 }
0x1662   :  { %3247 = vmatpush1.bf16.msra.mxu0 %v6592_v20  ;;  %3288 = vmatpush1.bf16.msra.mxu1 %v6594_v60 }
0x1663   :  { %3248 = vmatprep.subr.bf16.mxu0 %v6598_v61  ;;  %3289 = vmatprep.subr.bf16.mxu1 %v6600_v63 }
0x1666   :  { %3249 = vmatpush1.bf16.msra.mxu0 %v6604_v1  ;;  %3290 = vmatpush1.bf16.msra.mxu1 %v6606_v2 }
0x1667   :  { %3461 = vmatprep.subr.bf16.mxu0 %v6510_v32  ;;  %3502 = vmatprep.subr.bf16.mxu1 %v6512_v50 }
0x171c   :  { %v3041_v56 = vpop.f32.mrb[44].mxu0  ;;  %v3082_v10 = vpop.f32.mrb[44].mxu1 }
0x171d   :  { %v3043_v47 = vpop.f32.mrb[45].mxu0  ;;  %v3084_v12 = vpop.f32.mrb[45].mxu1 }
0x171e   :  { %v3092_v8 = vcombine.low %v3041_v56, %v3043_v47  ;;  %v3112_v31 = vcombine.low %v3082_v10, %v3084_v12  ;;  %v3045_v48 = vpop.f32.mrb[46].mxu0  ;;  %v3086_v51 = vpop.f32.mrb[46].mxu1  ;;  %v3005_v10 = vsel %vm218_vm0, %v3003_v9, %v6668_v11 }
0x171f   :  { %v3046_v3 = vpop.f32.mrb[47].mxu0  ;;  %v3087_v16 = vpop.f32.mrb[47].mxu1 }
0x1720   :  { %v3099_v49 = vrot.slane %v3092_v8, %v6055_v14  ;;  %v3119_v4 = vrot.slane %v3112_v31, %v6055_v14  ;;  %v3156_v31 = vrot.slane %v3005_v10, %v6055_v14 }
0x1722   :  { %v3106_v15 = vrot.slane %v3099_v49, %v6055_v14  ;;  %v3126_v62 = vrot.slane %v3119_v4, %v6055_v14  ;;  %v3163_v51 = vrot.slane %v3156_v31, %v6055_v14 }
0x1724   :  { %v3108_v6 = vadd.f32 %v3106_v15, %v3089_v5  ;;  %v3128_v27 = vadd.f32 %v3126_v62, %v3109_v25 }
0x1726   :  { %v4916_v28 = vmul.f32 -1.442695, %v3108_v6  ;;  %3190 = vrot.lane.b32.xlu1 %v3128_v27, %s5750_s3  ;;  %v4918_v29 = vmul.f32 -1.442695, %v3128_v27  ;;  %v3136_v26 = vrot.slane %v3108_v6, 1  ;;  %v3187_v24 = vrot.slane %v3128_v27, 1 }
0x1728   :  { %5392 = vpow2.f32 %v4916_v28 }
0x1729   :  { %5394 = vpow2.f32 %v4918_v29 }
0x172a   :  { %5396 = vtanh.f32 %v3136_v26 }
0x1732   :  { %v5393_v30 = vpop.eup %5392 }
0x1733   :  { %v3132_v7 = vadd.f32 1.0, %v5393_v30  ;;  %v5395_v54 = vpop.eup %5394 }
0x1734   :  { %v3183_v57 = vadd.f32 1.0, %v5395_v54  ;;  %v5397_v52 = vpop.eup %5396 }
0x1735   :  { %5398 = vrcp.f32 %v3132_v7 }
0x1736   :  { %5400 = vtanh.f32 %v3187_v24 }
0x1737   :  { %5402 = vrcp.f32 %v3183_v57 }
0x173f   :  { %v5399_v56 = vpop.eup %5398 }
0x1740   :  { %v5401_v47 = vpop.eup %5400  ;;  %v3168_v12 = vmul.f32 %v5399_v56, %v5397_v52 }
0x1741   :  { %v5403_v8 = vpop.eup %5402 }
0x1742   :  { %v3201_v48 = vmul.f32 %v5403_v8, %v5401_v47  ;;  %3170 = vrot.lane.b32.xlu1 %v3168_v12, %s5750_s3  ;;  %v3200_v3 = vmul.f32 %v5403_v8, %v3005_v10 }
0x1744   :  { %3203 = vrot.lane.b32.xlu0 %v3201_v48, %s5750_s3 }
0x1746   :  { %3139 = vrot.lane.b32.xlu1 %v3108_v6, %s5750_s3 }
0x1748   :  { %3164 = vrot.lane.b32.xlu0 %v3163_v51, %s5750_s3 }
0x1798   :  { %v3191_v11 = vpop.permute.xlu1 %3190 }
0x1799   :  { %v3192_v28 = vrot.slane %v3191_v11, 1 }
0x179b   :  { %v4919_v26 = vmul.f32 -1.442695, %v3192_v28 }
0x17b4   :  { %v3171_v62 = vpop.permute.xlu1 %3170 }
0x17b6   :  { %v3204_v16 = vpop.permute.xlu0 %3203 }
0x17b7   :  { %v6727_v49 = vadd.f32 %v3204_v16, %v3200_v3 }
0x17b8   :  { %v3140_v29 = vpop.permute.xlu1 %3139 }
0x17b9   :  { %5404 = vtanh.f32 %v6727_v49  ;;  %v3141_v30 = vrot.slane %v3140_v29, 1 }
0x17ba   :  { %v3165_v4 = vpop.permute.xlu0 %3164 }
0x17bb   :  { %v3167_v15 = vmul.f32 %v5399_v56, %v3165_v4  ;;  %v4917_v24 = vmul.f32 -1.442695, %v3141_v30 }
0x17bd   :  { %v3173_v5 = vadd.f32 %v3171_v62, %v3167_v15 }
0x17bf   :  { %5406 = vtanh.f32 %v3173_v5  ;;  %v3228_v27 = vrot.slane %v3173_v5, %v6039_v53 }
0x17c0   :  { %5408 = vpow2.f32 %v4919_v26 }
0x17c1   :  { %5410 = vpow2.f32 %v4917_v24 }
0x17c3   :  { %v5405_v25 = vpop.eup %5404 }
0x17c4   :  { %3209 = vrot.lane.b32.xlu0 %v5405_v25, %s5750_s3 }
0x17c9   :  { %v5407_v6 = vpop.eup %5406 }
0x17ca   :  { %3176 = vrot.lane.b32.xlu0 %v5407_v6, %s5750_s3  ;;  %v5409_v7 = vpop.eup %5408 }
0x17cb   :  { %v3197_v54 = vadd.f32 1.0, %v5409_v7  ;;  %v5411_v57 = vpop.eup %5410  ;;  %v3316_v7 = vld [vmem:[#allocation3 + $0x2] ss:$8 sm:$0x3] }
0x17cc   :  { %v3146_v9 = vadd.f32 1.0, %v5411_v57 }
0x17cd   :  { %5412 = vrcp.f32 %v3197_v54  ;;  %v3336_v54 = vld [vmem:[#allocation3 + $0x15] ss:$8 sm:$0x3] }
0x17ce   :  { %3229 = vrot.lane.b32.xlu0 %v3228_v27, %s5750_s3  ;;  %5414 = vrcp.f32 %v3146_v9 }
0x17d7   :  { %v5413_v52 = vpop.eup %5412 }
0x17d8   :  { %v5415_v12 = vpop.eup %5414 }
0x1836   :  { %v3210_v56 = vpop.permute.xlu0 %3209 }
0x1837   :  { %v3212_v10 = vmul.f32 %v5413_v52, %v3210_v56 }
0x1839   :  { %v3218_v47 = vrot.slane %v3212_v10, %v6039_v53 }
0x183b   :  { %3219 = vrot.lane.b32.xlu1 %v3218_v47, %s5750_s3 }
0x183c   :  { %v3177_v8 = vpop.permute.xlu0 %3176 }
0x183d   :  { %v3179_v31 = vmul.f32 %v5415_v12, %v3177_v8 }
0x183f   :  { %3213 = vst.msk [vmem:[#allocation2 + $0x1] sm:$0x1] %vm689_vm1, %v3179_v31 }
0x18ad   :  { %v3220_v48 = vpop.permute.xlu1 %3219 }
0x18ae   :  { %3222 = vst.msk [vmem:[#allocation2 + $0x6] sm:$0x1] %vm699_vm2, %v3220_v48  ;;  %v3223_v51 = vsel %vm218_vm0, %v3179_v31, %v3220_v48 }
0x18af   :  { %v3233_v3 = vpack.c.bf16 %v3223_v51, %v3223_v51  ;;  %v3230_v51 = vpop.permute.xlu0 %3229 }
0x18b1   :  { %3267 = vmatmul.mubr.bf16.vlgmr.msra.gmra.mrb[48].mxu0 %v3233_v3  ;;  %3308 = vmatmul.mubr.bf16.vlgmr.msra.gmra.mrb[48].mxu1 %v3233_v3 }
0x18b2   :  { %3462 = vmatpush1.bf16.msra.mxu0 %v6520_v13  ;;  %3503 = vmatpush1.bf16.msra.mxu1 %v6522_v17 }
0x18b3   :  { %3463 = vmatprep.subr.bf16.mxu0 %v6524_v21  ;;  %3504 = vmatprep.subr.bf16.mxu1 %v6526_v23 }
0x18b4   :  { %3493 = vmatprep.mubr.bf16.mxu0 %v5748_v0  ;;  %3534 = vmatprep.mubr.bf16.mxu1 %v5748_v0 }
0x18b6   :  { %3464 = vmatpush1.bf16.msra.mxu0 %v6530_v22  ;;  %3505 = vmatpush1.bf16.msra.mxu1 %v6532_v33 }
0x18b7   :  { %3465 = vmatprep.subr.bf16.mxu0 %v6536_v18  ;;  %3506 = vmatprep.subr.bf16.mxu1 %v6538_v34 }
0x18ba   :  { %3466 = vmatpush1.bf16.msra.mxu0 %v6544_v19  ;;  %3507 = vmatpush1.bf16.msra.mxu1 %v6546_v35 }
0x18bb   :  { %3467 = vmatprep.subr.bf16.mxu0 %v6550_v36  ;;  %3508 = vmatprep.subr.bf16.mxu1 %v6552_v37 }
0x18be   :  { %3468 = vmatpush1.bf16.msra.mxu0 %v6556_v38  ;;  %3509 = vmatpush1.bf16.msra.mxu1 %v6558_v39 }
0x18bf   :  { %3469 = vmatprep.subr.bf16.mxu0 %v6562_v40  ;;  %3510 = vmatprep.subr.bf16.mxu1 %v6564_v41 }
0x18c2   :  { %3470 = vmatpush1.bf16.msra.mxu0 %v6568_v42  ;;  %3511 = vmatpush1.bf16.msra.mxu1 %v6570_v43 }
0x18c3   :  { %3471 = vmatprep.subr.bf16.mxu0 %v6574_v44  ;;  %3512 = vmatprep.subr.bf16.mxu1 %v6576_v45 }
0x18c6   :  { %3472 = vmatpush1.bf16.msra.mxu0 %v6580_v46  ;;  %3513 = vmatpush1.bf16.msra.mxu1 %v6582_v55 }
0x18c7   :  { %3473 = vmatprep.subr.bf16.mxu0 %v6586_v58  ;;  %3514 = vmatprep.subr.bf16.mxu1 %v6588_v59 }
0x18ca   :  { %3474 = vmatpush1.bf16.msra.mxu0 %v6592_v20  ;;  %3515 = vmatpush1.bf16.msra.mxu1 %v6594_v60 }
0x18cb   :  { %3475 = vmatprep.subr.bf16.mxu0 %v6598_v61  ;;  %3516 = vmatprep.subr.bf16.mxu1 %v6600_v63 }
0x18ce   :  { %3476 = vmatpush1.bf16.msra.mxu0 %v6604_v1  ;;  %3517 = vmatpush1.bf16.msra.mxu1 %v6606_v2 }
0x18cf   :  { %3688 = vmatprep.subr.bf16.mxu0 %v6510_v32  ;;  %3729 = vmatprep.subr.bf16.mxu1 %v6512_v50 }
0x1984   :  { %v3268_v16 = vpop.f32.mrb[48].mxu0  ;;  %v3309_v11 = vpop.f32.mrb[48].mxu1 }
0x1985   :  { %v3270_v4 = vpop.f32.mrb[49].mxu0  ;;  %v3311_v15 = vpop.f32.mrb[49].mxu1 }
0x1986   :  { %v3319_v62 = vcombine.low %v3268_v16, %v3270_v4  ;;  %v3339_v5 = vcombine.low %v3309_v11, %v3311_v15  ;;  %v3272_v25 = vpop.f32.mrb[50].mxu0  ;;  %v3313_v6 = vpop.f32.mrb[50].mxu1  ;;  %v3232_v11 = vsel %vm218_vm0, %v3230_v51, %v6727_v49 }
0x1987   :  { %v3273_v27 = vpop.f32.mrb[51].mxu0  ;;  %v3314_v28 = vpop.f32.mrb[51].mxu1 }
0x1988   :  { %v3326_v29 = vrot.slane %v3319_v62, %v6055_v14  ;;  %v3346_v26 = vrot.slane %v3339_v5, %v6055_v14  ;;  %v3383_v5 = vrot.slane %v3232_v11, %v6055_v14 }
0x198a   :  { %v3333_v30 = vrot.slane %v3326_v29, %v6055_v14  ;;  %v3353_v24 = vrot.slane %v3346_v26, %v6055_v14  ;;  %v3390_v6 = vrot.slane %v3383_v5, %v6055_v14 }
0x198c   :  { %v3335_v57 = vadd.f32 %v3333_v30, %v3316_v7  ;;  %v3355_v9 = vadd.f32 %v3353_v24, %v3336_v54 }
0x198e   :  { %v4920_v52 = vmul.f32 -1.442695, %v3335_v57  ;;  %3417 = vrot.lane.b32.xlu0 %v3355_v9, %s5750_s3  ;;  %v4922_v56 = vmul.f32 -1.442695, %v3355_v9  ;;  %v3363_v10 = vrot.slane %v3335_v57, 1  ;;  %v3414_v12 = vrot.slane %v3355_v9, 1 }
0x1990   :  { %5416 = vpow2.f32 %v4920_v52 }
0x1991   :  { %5418 = vpow2.f32 %v4922_v56 }
0x1992   :  { %5420 = vtanh.f32 %v3363_v10 }
0x199a   :  { %v5417_v47 = vpop.eup %5416 }
0x199b   :  { %v3359_v8 = vadd.f32 1.0, %v5417_v47  ;;  %v5419_v31 = vpop.eup %5418 }
0x199c   :  { %v3410_v48 = vadd.f32 1.0, %v5419_v31  ;;  %v5421_v3 = vpop.eup %5420 }
0x199d   :  { %5422 = vrcp.f32 %v3359_v8 }
0x199e   :  { %5424 = vtanh.f32 %v3414_v12 }
0x199f   :  { %5426 = vrcp.f32 %v3410_v48 }
0x19a7   :  { %v5423_v16 = vpop.eup %5422 }
0x19a8   :  { %v5425_v4 = vpop.eup %5424  ;;  %v3395_v15 = vmul.f32 %v5423_v16, %v5421_v3 }
0x19a9   :  { %v5427_v62 = vpop.eup %5426 }
0x19aa   :  { %v3428_v25 = vmul.f32 %v5427_v62, %v5425_v4  ;;  %3397 = vrot.lane.b32.xlu0 %v3395_v15, %s5750_s3  ;;  %v3427_v27 = vmul.f32 %v5427_v62, %v3232_v11 }
0x19ac   :  { %3430 = vrot.lane.b32.xlu1 %v3428_v25, %s5750_s3 }
0x19ae   :  { %3366 = vrot.lane.b32.xlu0 %v3335_v57, %s5750_s3 }
0x19b0   :  { %3391 = vrot.lane.b32.xlu1 %v3390_v6, %s5750_s3 }
0x1a00   :  { %v3418_v49 = vpop.permute.xlu0 %3417 }
0x1a01   :  { %v3419_v52 = vrot.slane %v3418_v49, 1 }
0x1a03   :  { %v4923_v10 = vmul.f32 -1.442695, %v3419_v52 }
0x1a1c   :  { %v3398_v24 = vpop.permute.xlu0 %3397 }
0x1a1e   :  { %v3431_v28 = vpop.permute.xlu1 %3430 }
0x1a1f   :  { %v6786_v29 = vadd.f32 %v3431_v28, %v3427_v27 }
0x1a20   :  { %v3367_v56 = vpop.permute.xlu0 %3366 }
0x1a21   :  { %5428 = vtanh.f32 %v6786_v29  ;;  %v3368_v47 = vrot.slane %v3367_v56, 1 }
0x1a22   :  { %v3392_v26 = vpop.permute.xlu1 %3391 }
0x1a23   :  { %v3394_v30 = vmul.f32 %v5423_v16, %v3392_v26  ;;  %v4921_v12 = vmul.f32 -1.442695, %v3368_v47 }
0x1a25   :  { %v3400_v7 = vadd.f32 %v3398_v24, %v3394_v30 }
0x1a27   :  { %5430 = vtanh.f32 %v3400_v7  ;;  %v3455_v57 = vrot.slane %v3400_v7, %v6039_v53 }
0x1a28   :  { %5432 = vpow2.f32 %v4923_v10 }
0x1a29   :  { %5434 = vpow2.f32 %v4921_v12 }
0x1a2b   :  { %v5429_v54 = vpop.eup %5428 }
0x1a2c   :  { %3436 = vrot.lane.b32.xlu1 %v5429_v54, %s5750_s3 }
0x1a31   :  { %v5431_v9 = vpop.eup %5430 }
0x1a32   :  { %3403 = vrot.lane.b32.xlu1 %v5431_v9, %s5750_s3  ;;  %v5433_v8 = vpop.eup %5432 }
0x1a33   :  { %v3424_v31 = vadd.f32 1.0, %v5433_v8  ;;  %v5435_v48 = vpop.eup %5434 }
0x1a34   :  { %v3373_v51 = vadd.f32 1.0, %v5435_v48 }
0x1a35   :  { %5436 = vrcp.f32 %v3424_v31 }
0x1a36   :  { %3456 = vrot.lane.b32.xlu1 %v3455_v57, %s5750_s3  ;;  %5438 = vrcp.f32 %v3373_v51 }
0x1a3f   :  { %v5437_v3 = vpop.eup %5436 }
0x1a40   :  { %v5439_v15 = vpop.eup %5438 }
0x1a9e   :  { %v3437_v16 = vpop.permute.xlu1 %3436 }
0x1a9f   :  { %v3439_v11 = vmul.f32 %v5437_v3, %v3437_v16 }
0x1aa1   :  { %v3445_v4 = vrot.slane %v3439_v11, %v6039_v53 }
0x1aa3   :  { %3446 = vrot.lane.b32.xlu0 %v3445_v4, %s5750_s3 }
0x1aa4   :  { %v3404_v62 = vpop.permute.xlu1 %3403 }
0x1aa5   :  { %v3406_v5 = vmul.f32 %v5439_v15, %v3404_v62 }
0x1aa7   :  { %3440 = vst.msk [vmem:[#allocation2 + $0x2] sm:$0x1] %vm689_vm1, %v3406_v5 }
0x1b15   :  { %v3447_v25 = vpop.permute.xlu0 %3446 }
0x1b16   :  { %3449 = vst.msk [vmem:[#allocation2 + $0x5] sm:$0x1] %vm699_vm2, %v3447_v25  ;;  %v3450_v6 = vsel %vm218_vm0, %v3406_v5, %v3447_v25 }
0x1b17   :  { %v3460_v27 = vpack.c.bf16 %v3450_v6, %v3450_v6 }
0x1b19   :  { %3494 = vmatmul.mubr.bf16.vlgmr.msra.gmra.mrb[52].mxu0 %v3460_v27  ;;  %3535 = vmatmul.mubr.bf16.vlgmr.msra.gmra.mrb[52].mxu1 %v3460_v27 }
0x1b1a   :  { %3689 = vmatpush1.bf16.msra.mxu0 %v6520_v13  ;;  %3730 = vmatpush1.bf16.msra.mxu1 %v6522_v17 }
0x1b1b   :  { %3690 = vmatprep.subr.bf16.mxu0 %v6524_v21  ;;  %3731 = vmatprep.subr.bf16.mxu1 %v6526_v23 }
0x1b1c   :  { %3720 = vmatprep.mubr.bf16.mxu0 %v5748_v0  ;;  %3761 = vmatprep.mubr.bf16.mxu1 %v5748_v0 }
0x1b1e   :  { %3691 = vmatpush1.bf16.msra.mxu0 %v6530_v22  ;;  %3732 = vmatpush1.bf16.msra.mxu1 %v6532_v33 }
0x1b1f   :  { %3692 = vmatprep.subr.bf16.mxu0 %v6536_v18  ;;  %3733 = vmatprep.subr.bf16.mxu1 %v6538_v34 }
0x1b22   :  { %3693 = vmatpush1.bf16.msra.mxu0 %v6544_v19  ;;  %3734 = vmatpush1.bf16.msra.mxu1 %v6546_v35 }
0x1b23   :  { %3694 = vmatprep.subr.bf16.mxu0 %v6550_v36  ;;  %3735 = vmatprep.subr.bf16.mxu1 %v6552_v37 }
0x1b26   :  { %3695 = vmatpush1.bf16.msra.mxu0 %v6556_v38  ;;  %3736 = vmatpush1.bf16.msra.mxu1 %v6558_v39  ;;  %v3543_v39 = vld [vmem:[#allocation3 + $0x3] ss:$8 sm:$0x3] }
0x1b27   :  { %3696 = vmatprep.subr.bf16.mxu0 %v6562_v40  ;;  %3737 = vmatprep.subr.bf16.mxu1 %v6564_v41 }
0x1b2a   :  { %3697 = vmatpush1.bf16.msra.mxu0 %v6568_v42  ;;  %3738 = vmatpush1.bf16.msra.mxu1 %v6570_v43 }
0x1b2b   :  { %3698 = vmatprep.subr.bf16.mxu0 %v6574_v44  ;;  %3739 = vmatprep.subr.bf16.mxu1 %v6576_v45 }
0x1b2e   :  { %3699 = vmatpush1.bf16.msra.mxu0 %v6580_v46  ;;  %3740 = vmatpush1.bf16.msra.mxu1 %v6582_v55 }
0x1b2f   :  { %3700 = vmatprep.subr.bf16.mxu0 %v6586_v58  ;;  %3741 = vmatprep.subr.bf16.mxu1 %v6588_v59 }
0x1b32   :  { %3701 = vmatpush1.bf16.msra.mxu0 %v6592_v20  ;;  %3742 = vmatpush1.bf16.msra.mxu1 %v6594_v60  ;;  %v3457_v20 = vpop.permute.xlu1 %3456 }
0x1b33   :  { %3702 = vmatprep.subr.bf16.mxu0 %v6598_v61  ;;  %3743 = vmatprep.subr.bf16.mxu1 %v6600_v63  ;;  %v3459_v63 = vsel %vm218_vm0, %v3457_v20, %v6786_v29  ;;  %v6922_v20 = vld [vmem:[#allocation10 + $0xa8] ss:$16 sps:$4 sm:$0xff]  }
0x1b34   :  { %v3610_v49 = vrot.slane %v3459_v63, %v6055_v14 }
0x1b36   :  { %3703 = vmatpush1.bf16.msra.mxu0 %v6604_v1  ;;  %3744 = vmatpush1.bf16.msra.mxu1 %v6606_v2  ;;  %v3617_v30 = vrot.slane %v3610_v49, %v6055_v14  ;;  %v6943_v49 = vld [vmem:[#allocation10 + $0xe0] ss:$16 sps:$4 sm:$0xff]  }
0x1b37   :  { %3915 = vmatprep.subr.bf16.mxu0 %v6510_v32  ;;  %3956 = vmatprep.subr.bf16.mxu1 %v6512_v50  ;;  %v3563_v50 = vld [vmem:[#allocation3 + $0x14] ss:$8 sm:$0x3] }
0x1bec   :  { %v3495_v13 = vpop.f32.mrb[52].mxu0  ;;  %v3536_v17 = vpop.f32.mrb[52].mxu1 }
0x1bed   :  { %v3497_v21 = vpop.f32.mrb[53].mxu0  ;;  %v3538_v23 = vpop.f32.mrb[53].mxu1 }
0x1bee   :  { %v3546_v22 = vcombine.low %v3495_v13, %v3497_v21  ;;  %v3566_v33 = vcombine.low %v3536_v17, %v3538_v23  ;;  %v3499_v18 = vpop.f32.mrb[54].mxu0  ;;  %v3540_v34 = vpop.f32.mrb[54].mxu1 }
0x1bef   :  { %v3500_v19 = vpop.f32.mrb[55].mxu0  ;;  %v3541_v35 = vpop.f32.mrb[55].mxu1  ;;  %v6860_v18 = vld [vmem:[#allocation10 + $0x8] ss:$16 sps:$4 sm:$0xff]   ;;  %v6863_v34 = vld [vmem:[#allocation10 + $0x24] ss:$16 sps:$4 sm:$0xff]  }
0x1bf0   :  { %v3553_v36 = vrot.slane %v3546_v22, %v6055_v14  ;;  %v3573_v37 = vrot.slane %v3566_v33, %v6055_v14  ;;  %v6857_v33 = vld [vmem:[#allocation10] ss:$16 sps:$4 sm:$0xff]   ;;  %v6866_v19 = vld [vmem:[#allocation10 + $0x2c] ss:$16 sps:$4 sm:$0xff]  }
0x1bf1   :  { %v6871_v35 = vld [vmem:[#allocation10 + $0x20] ss:$16 sps:$4 sm:$0xff]  }
0x1bf2   :  { %v3560_v38 = vrot.slane %v3553_v36, %v6055_v14  ;;  %v3580_v32 = vrot.slane %v3573_v37, %v6055_v14  ;;  %v6874_v36 = vld [vmem:[#allocation10 + $0x28] ss:$16 sps:$4 sm:$0xff]   ;;  %v6877_v37 = vld [vmem:[#allocation10 + $0x44] ss:$16 sps:$4 sm:$0xff]  }
0x1bf4   :  { %v3562_v40 = vadd.f32 %v3560_v38, %v3543_v39  ;;  %v3582_v41 = vadd.f32 %v3580_v32, %v3563_v50  ;;  %v6880_v38 = vld [vmem:[#allocation10 + $0x4c] ss:$16 sps:$4 sm:$0xff]   ;;  %v6883_v32 = vld [vmem:[#allocation10 + $0x40] ss:$16 sps:$4 sm:$0xff]   ;;  %v6886_v39 = vld [vmem:[#allocation10 + $0x48] ss:$16 sps:$4 sm:$0xff]  }
0x1bf5   :  { %v6889_v50 = vld [vmem:[#allocation10 + $0x64] ss:$16 sps:$4 sm:$0xff]  }
0x1bf6   :  { %v4924_v42 = vmul.f32 -1.442695, %v3562_v40  ;;  %3644 = vrot.lane.b32.xlu1 %v3582_v41, %s5750_s3  ;;  %v4926_v43 = vmul.f32 -1.442695, %v3582_v41  ;;  %v3590_v44 = vrot.slane %v3562_v40, 1  ;;  %v3641_v46 = vrot.slane %v3582_v41, 1 }
0x1bf7   :  { %v6895_v41 = vld [vmem:[#allocation10 + $0x60] ss:$16 sps:$4 sm:$0xff]  }
0x1bf8   :  { %5440 = vpow2.f32 %v4924_v42  ;;  %v6898_v42 = vld [vmem:[#allocation10 + $0x68] ss:$16 sps:$4 sm:$0xff]  }
0x1bf9   :  { %5442 = vpow2.f32 %v4926_v43  ;;  %v6901_v43 = vld [vmem:[#allocation10 + $0x84] ss:$16 sps:$4 sm:$0xff]  }
0x1bfa   :  { %5444 = vtanh.f32 %v3590_v44  ;;  %v6904_v44 = vld [vmem:[#allocation10 + $0x8c] ss:$16 sps:$4 sm:$0xff]  }
0x1c02   :  { %v5441_v45 = vpop.eup %5440 }
0x1c03   :  { %v3586_v55 = vadd.f32 1.0, %v5441_v45  ;;  %v5443_v58 = vpop.eup %5442  ;;  %v6907_v45 = vld [vmem:[#allocation10 + $0x80] ss:$16 sps:$4 sm:$0xff]  }
0x1c04   :  { %v3637_v59 = vadd.f32 1.0, %v5443_v58  ;;  %v5445_v60 = vpop.eup %5444  ;;  %v6916_v58 = vld [vmem:[#allocation10 + $0xac] ss:$16 sps:$4 sm:$0xff]  }
0x1c05   :  { %5446 = vrcp.f32 %v3586_v55  ;;  %v6913_v55 = vld [vmem:[#allocation10 + $0xa4] ss:$16 sps:$4 sm:$0xff]  }
0x1c06   :  { %5448 = vtanh.f32 %v3641_v46  ;;  %v6910_v46 = vld [vmem:[#allocation10 + $0x88] ss:$16 sps:$4 sm:$0xff]  }
0x1c07   :  { %5450 = vrcp.f32 %v3637_v59  ;;  %v6919_v59 = vld [vmem:[#allocation10 + $0xa0] ss:$16 sps:$4 sm:$0xff]  }
0x1c0f   :  { %v5447_v61 = vpop.eup %5446 }
0x1c10   :  { %v5449_v1 = vpop.eup %5448  ;;  %v3622_v2 = vmul.f32 %v5447_v61, %v5445_v60  ;;  %v6925_v60 = vld [vmem:[#allocation10 + $0xc4] ss:$16 sps:$4 sm:$0xff]  }
0x1c11   :  { %v5451_v28 = vpop.eup %5450 }
0x1c12   :  { %v3655_v26 = vmul.f32 %v5451_v28, %v5449_v1  ;;  %3624 = vrot.lane.b32.xlu1 %v3622_v2, %s5750_s3  ;;  %v3654_v24 = vmul.f32 %v5451_v28, %v3459_v63  ;;  %v6931_v63 = vld [vmem:[#allocation10 + $0xc0] ss:$16 sps:$4 sm:$0xff]   ;;  %v6934_v1 = vld [vmem:[#allocation10 + $0xc8] ss:$16 sps:$4 sm:$0xff]   ;;  %v6937_v2 = vld [vmem:[#allocation10 + $0xe4] ss:$16 sps:$4 sm:$0xff]  }
0x1c13   :  { %v6940_v28 = vld [vmem:[#allocation10 + $0xec] ss:$16 sps:$4 sm:$0xff]  }
0x1c14   :  { %3657 = vrot.lane.b32.xlu0 %v3655_v26, %s5750_s3  ;;  %v6946_v26 = vld [vmem:[#allocation10 + $0xe8] ss:$16 sps:$4 sm:$0xff]  }
0x1c16   :  { %3593 = vrot.lane.b32.xlu1 %v3562_v40, %s5750_s3  ;;  %v6892_v40 = vld [vmem:[#allocation10 + $0x6c] ss:$16 sps:$4 sm:$0xff]  }
0x1c18   :  { %3618 = vrot.lane.b32.xlu0 %v3617_v30, %s5750_s3  ;;  %v6949_v30 = vld [vmem:[#allocation10 + $0x4] ss:$16 sps:$4 sm:$0xff]  }
0x1c68   :  { %v3645_v29 = vpop.permute.xlu1 %3644 }
0x1c69   :  { %v3646_v8 = vrot.slane %v3645_v29, 1 }
0x1c6b   :  { %v4927_v48 = vmul.f32 -1.442695, %v3646_v8 }
0x1c84   :  { %v3625_v52 = vpop.permute.xlu1 %3624 }
0x1c86   :  { %v3658_v7 = vpop.permute.xlu0 %3657 }
0x1c87   :  { %v6845_v54 = vadd.f32 %v3658_v7, %v3654_v24  ;;  %v6952_v24 = vld [vmem:[#allocation10 + $0xc] ss:$16 sps:$4 sm:$0xff]  }
0x1c88   :  { %v3594_v31 = vpop.permute.xlu1 %3593 }
0x1c89   :  { %5452 = vtanh.f32 %v6845_v54  ;;  %v3595_v51 = vrot.slane %v3594_v31, 1 }
0x1c8a   :  { %v3619_v9 = vpop.permute.xlu0 %3618 }
0x1c8b   :  { %v3621_v57 = vmul.f32 %v5447_v61, %v3619_v9  ;;  %v4925_v3 = vmul.f32 -1.442695, %v3595_v51  ;;  %v6928_v61 = vld [vmem:[#allocation10 + $0xcc] ss:$16 sps:$4 sm:$0xff]  }
0x1c8d   :  { %v3627_v56 = vadd.f32 %v3625_v52, %v3621_v57 }
0x1c8f   :  { %5454 = vtanh.f32 %v3627_v56  ;;  %v3682_v12 = vrot.slane %v3627_v56, %v6039_v53 }
0x1c90   :  { %5456 = vpow2.f32 %v4927_v48 }
0x1c91   :  { %5458 = vpow2.f32 %v4925_v3 }
0x1c93   :  { %v5453_v10 = vpop.eup %5452 }
0x1c94   :  { %3663 = vrot.lane.b32.xlu0 %v5453_v10, %s5750_s3 }
0x1c99   :  { %v5455_v47 = vpop.eup %5454 }
0x1c9a   :  { %3630 = vrot.lane.b32.xlu0 %v5455_v47, %s5750_s3  ;;  %v5457_v16 = vpop.eup %5456 }
0x1c9b   :  { %v3651_v11 = vadd.f32 1.0, %v5457_v16  ;;  %v5459_v4 = vpop.eup %5458  ;;  %v3770_v16 = vld [vmem:[#allocation3 + $0x4] ss:$8 sm:$0x3] }
0x1c9c   :  { %v3600_v15 = vadd.f32 1.0, %v5459_v4 }
0x1c9d   :  { %5460 = vrcp.f32 %v3651_v11  ;;  %v3790_v11 = vld [vmem:[#allocation3 + $0x13] ss:$8 sm:$0x3] }
0x1c9e   :  { %3683 = vrot.lane.b32.xlu0 %v3682_v12, %s5750_s3  ;;  %5462 = vrcp.f32 %v3600_v15 }
0x1ca7   :  { %v5461_v62 = vpop.eup %5460 }
0x1ca8   :  { %v5463_v27 = vpop.eup %5462 }
0x1d06   :  { %v3664_v5 = vpop.permute.xlu0 %3663 }
0x1d07   :  { %v3666_v25 = vmul.f32 %v5461_v62, %v3664_v5 }
0x1d09   :  { %v3672_v6 = vrot.slane %v3666_v25, %v6039_v53 }
0x1d0b   :  { %3673 = vrot.lane.b32.xlu1 %v3672_v6, %s5750_s3 }
0x1d0c   :  { %v3631_v13 = vpop.permute.xlu0 %3630 }
0x1d0d   :  { %v3633_v17 = vmul.f32 %v5463_v27, %v3631_v13 }
0x1d0f   :  { %3667 = vst.msk [vmem:[#allocation2 + $0x3] sm:$0x1] %vm689_vm1, %v3633_v17 }
0x1d7d   :  { %v3674_v21 = vpop.permute.xlu1 %3673 }
0x1d7e   :  { %3676 = vst.msk [vmem:[#allocation2 + $0x4] sm:$0x1] %vm699_vm2, %v3674_v21  ;;  %v3677_v23 = vsel %vm218_vm0, %v3633_v17, %v3674_v21 }
0x1d7f   :  { %v3687_v22 = vpack.c.bf16 %v3677_v23, %v3677_v23  ;;  %v3684_v23 = vpop.permute.xlu0 %3683 }
0x1d81   :  { %3721 = vmatmul.mubr.bf16.vlgmr.msra.gmra.mrb[56].mxu0 %v3687_v22  ;;  %3762 = vmatmul.mubr.bf16.vlgmr.msra.gmra.mrb[56].mxu1 %v3687_v22 }
0x1d82   :  { %3916 = vmatpush1.bf16.msra.mxu0 %v6857_v33  ;;  %3957 = vmatpush1.bf16.msra.mxu1 %v6860_v18 }
0x1d83   :  { %3917 = vmatprep.subr.bf16.mxu0 %v6863_v34  ;;  %3958 = vmatprep.subr.bf16.mxu1 %v6866_v19 }
0x1d84   :  { %3947 = vmatprep.mubr.bf16.mxu0 %v5748_v0  ;;  %3988 = vmatprep.mubr.bf16.mxu1 %v5748_v0 }
0x1d86   :  { %3918 = vmatpush1.bf16.msra.mxu0 %v6871_v35  ;;  %3959 = vmatpush1.bf16.msra.mxu1 %v6874_v36 }
0x1d87   :  { %3919 = vmatprep.subr.bf16.mxu0 %v6877_v37  ;;  %3960 = vmatprep.subr.bf16.mxu1 %v6880_v38 }
0x1d8a   :  { %3920 = vmatpush1.bf16.msra.mxu0 %v6883_v32  ;;  %3961 = vmatpush1.bf16.msra.mxu1 %v6886_v39 }
0x1d8b   :  { %3921 = vmatprep.subr.bf16.mxu0 %v6889_v50  ;;  %3962 = vmatprep.subr.bf16.mxu1 %v6892_v40 }
0x1d8e   :  { %3922 = vmatpush1.bf16.msra.mxu0 %v6895_v41  ;;  %3963 = vmatpush1.bf16.msra.mxu1 %v6898_v42 }
0x1d8f   :  { %3923 = vmatprep.subr.bf16.mxu0 %v6901_v43  ;;  %3964 = vmatprep.subr.bf16.mxu1 %v6904_v44 }
0x1d92   :  { %3924 = vmatpush1.bf16.msra.mxu0 %v6907_v45  ;;  %3965 = vmatpush1.bf16.msra.mxu1 %v6910_v46 }
0x1d93   :  { %3925 = vmatprep.subr.bf16.mxu0 %v6913_v55  ;;  %3966 = vmatprep.subr.bf16.mxu1 %v6916_v58 }
0x1d96   :  { %3926 = vmatpush1.bf16.msra.mxu0 %v6919_v59  ;;  %3967 = vmatpush1.bf16.msra.mxu1 %v6922_v20 }
0x1d97   :  { %3927 = vmatprep.subr.bf16.mxu0 %v6925_v60  ;;  %3968 = vmatprep.subr.bf16.mxu1 %v6928_v61 }
0x1d9a   :  { %3928 = vmatpush1.bf16.msra.mxu0 %v6931_v63  ;;  %3969 = vmatpush1.bf16.msra.mxu1 %v6934_v1 }
0x1d9b   :  { %3929 = vmatprep.subr.bf16.mxu0 %v6937_v2  ;;  %3970 = vmatprep.subr.bf16.mxu1 %v6940_v28 }
0x1d9e   :  { %3930 = vmatpush1.bf16.msra.mxu0 %v6943_v49  ;;  %3971 = vmatpush1.bf16.msra.mxu1 %v6946_v26 }
0x1d9f   :  { %4142 = vmatprep.subr.bf16.mxu0 %v6949_v30  ;;  %4183 = vmatprep.subr.bf16.mxu1 %v6952_v24 }
0x1e54   :  { %v3722_v7 = vpop.f32.mrb[56].mxu0  ;;  %v3763_v29 = vpop.f32.mrb[56].mxu1 }
0x1e55   :  { %v3724_v9 = vpop.f32.mrb[57].mxu0  ;;  %v3765_v57 = vpop.f32.mrb[57].mxu1 }
0x1e56   :  { %v3773_v52 = vcombine.low %v3722_v7, %v3724_v9  ;;  %v3793_v56 = vcombine.low %v3763_v29, %v3765_v57  ;;  %v3726_v10 = vpop.f32.mrb[58].mxu0  ;;  %v3767_v47 = vpop.f32.mrb[58].mxu1  ;;  %v3686_v29 = vsel %vm218_vm0, %v3684_v23, %v6845_v54 }
0x1e57   :  { %v3727_v12 = vpop.f32.mrb[59].mxu0  ;;  %v3768_v8 = vpop.f32.mrb[59].mxu1 }
0x1e58   :  { %v3780_v31 = vrot.slane %v3773_v52, %v6055_v14  ;;  %v3800_v48 = vrot.slane %v3793_v56, %v6055_v14  ;;  %v3837_v56 = vrot.slane %v3686_v29, %v6055_v14 }
0x1e5a   :  { %v3787_v51 = vrot.slane %v3780_v31, %v6055_v14  ;;  %v3807_v3 = vrot.slane %v3800_v48, %v6055_v14  ;;  %v3844_v47 = vrot.slane %v3837_v56, %v6055_v14 }
0x1e5c   :  { %v3789_v4 = vadd.f32 %v3787_v51, %v3770_v16  ;;  %v3809_v15 = vadd.f32 %v3807_v3, %v3790_v11 }
0x1e5e   :  { %v4928_v62 = vmul.f32 -1.442695, %v3789_v4  ;;  %v4930_v5 = vmul.f32 -1.442695, %v3809_v15  ;;  %3871 = vrot.lane.b32.xlu0 %v3809_v15, %s5750_s3  ;;  %v3817_v25 = vrot.slane %v3789_v4, 1  ;;  %v3868_v27 = vrot.slane %v3809_v15, 1 }
0x1e60   :  { %5464 = vpow2.f32 %v4928_v62 }
0x1e61   :  { %5466 = vpow2.f32 %v4930_v5 }
0x1e62   :  { %5468 = vtanh.f32 %v3817_v25 }
0x1e6a   :  { %v5465_v6 = vpop.eup %5464 }
0x1e6b   :  { %v3813_v13 = vadd.f32 1.0, %v5465_v6  ;;  %v5467_v17 = vpop.eup %5466 }
0x1e6c   :  { %v3864_v21 = vadd.f32 1.0, %v5467_v17  ;;  %v5469_v22 = vpop.eup %5468 }
0x1e6d   :  { %5470 = vrcp.f32 %v3813_v13 }
0x1e6e   :  { %5472 = vtanh.f32 %v3868_v27 }
0x1e6f   :  { %5474 = vrcp.f32 %v3864_v21 }
0x1e77   :  { %v5471_v7 = vpop.eup %5470 }
0x1e78   :  { %v5473_v9 = vpop.eup %5472  ;;  %v3849_v57 = vmul.f32 %v5471_v7, %v5469_v22 }
0x1e79   :  { %v5475_v52 = vpop.eup %5474 }
0x1e7a   :  { %v3882_v10 = vmul.f32 %v5475_v52, %v5473_v9  ;;  %3851 = vrot.lane.b32.xlu0 %v3849_v57, %s5750_s3  ;;  %v3881_v12 = vmul.f32 %v5475_v52, %v3686_v29 }
0x1e7c   :  { %3884 = vrot.lane.b32.xlu1 %v3882_v10, %s5750_s3 }
0x1e7e   :  { %3820 = vrot.lane.b32.xlu0 %v3789_v4, %s5750_s3 }
0x1e80   :  { %3845 = vrot.lane.b32.xlu1 %v3844_v47, %s5750_s3 }
0x1ed0   :  { %v3872_v54 = vpop.permute.xlu0 %3871 }
0x1ed1   :  { %v3873_v62 = vrot.slane %v3872_v54, 1 }
0x1ed3   :  { %v4931_v25 = vmul.f32 -1.442695, %v3873_v62 }
0x1eec   :  { %v3852_v3 = vpop.permute.xlu0 %3851 }
0x1eee   :  { %v3885_v8 = vpop.permute.xlu1 %3884 }
0x1eef   :  { %v6968_v31 = vadd.f32 %v3885_v8, %v3881_v12 }
0x1ef0   :  { %v3821_v5 = vpop.permute.xlu0 %3820 }
0x1ef1   :  { %5476 = vtanh.f32 %v6968_v31  ;;  %v3822_v6 = vrot.slane %v3821_v5, 1 }
0x1ef2   :  { %v3846_v48 = vpop.permute.xlu1 %3845 }
0x1ef3   :  { %v3848_v51 = vmul.f32 %v5471_v7, %v3846_v48  ;;  %v4929_v27 = vmul.f32 -1.442695, %v3822_v6 }
0x1ef5   :  { %v3854_v16 = vadd.f32 %v3852_v3, %v3848_v51 }
0x1ef7   :  { %5478 = vtanh.f32 %v3854_v16  ;;  %v3909_v4 = vrot.slane %v3854_v16, %v6039_v53 }
0x1ef8   :  { %5480 = vpow2.f32 %v4931_v25 }
0x1ef9   :  { %5482 = vpow2.f32 %v4929_v27  ;;  %v3997_v27 = vld [vmem:[#allocation3 + $0x5] ss:$8 sm:$0x3] }
0x1efb   :  { %v5477_v11 = vpop.eup %5476 }
0x1efc   :  { %3890 = vrot.lane.b32.xlu1 %v5477_v11, %s5750_s3 }
0x1f01   :  { %v5479_v15 = vpop.eup %5478 }
0x1f02   :  { %3857 = vrot.lane.b32.xlu1 %v5479_v15, %s5750_s3  ;;  %v5481_v13 = vpop.eup %5480 }
0x1f03   :  { %v3878_v17 = vadd.f32 1.0, %v5481_v13  ;;  %v5483_v21 = vpop.eup %5482 }
0x1f04   :  { %v3827_v23 = vadd.f32 1.0, %v5483_v21 }
0x1f05   :  { %5484 = vrcp.f32 %v3878_v17 }
0x1f06   :  { %3910 = vrot.lane.b32.xlu1 %v3909_v4, %s5750_s3  ;;  %5486 = vrcp.f32 %v3827_v23 }
0x1f0f   :  { %v5485_v22 = vpop.eup %5484 }
0x1f10   :  { %v5487_v57 = vpop.eup %5486 }
0x1f6e   :  { %v3891_v7 = vpop.permute.xlu1 %3890 }
0x1f6f   :  { %v3893_v29 = vmul.f32 %v5485_v22, %v3891_v7 }
0x1f71   :  { %v3899_v9 = vrot.slane %v3893_v29, %v6039_v53 }
0x1f73   :  { %3900 = vrot.lane.b32.xlu0 %v3899_v9, %s5750_s3 }
0x1f74   :  { %v3858_v52 = vpop.permute.xlu1 %3857 }
0x1f75   :  { %v3860_v56 = vmul.f32 %v5487_v57, %v3858_v52 }
0x1f77   :  { %3894 = vst.msk [vmem:[#allocation2 + $0x4] sm:$0x1] %vm689_vm1, %v3860_v56 }
0x1fe5   :  { %v3901_v10 = vpop.permute.xlu0 %3900 }
0x1fe6   :  { %3903 = vst.msk [vmem:[#allocation2 + $0x3] sm:$0x1] %vm699_vm2, %v3901_v10  ;;  %v3904_v47 = vsel %vm218_vm0, %v3860_v56, %v3901_v10  ;;  %v3911_v56 = vpop.permute.xlu1 %3910 }
0x1fe7   :  { %v3914_v12 = vpack.c.bf16 %v3904_v47, %v3904_v47 }
0x1fe9   :  { %3948 = vmatmul.mubr.bf16.vlgmr.msra.gmra.mrb[60].mxu0 %v3914_v12  ;;  %3989 = vmatmul.mubr.bf16.vlgmr.msra.gmra.mrb[60].mxu1 %v3914_v12  ;;  %v3913_v12 = vsel %vm218_vm0, %v3911_v56, %v6968_v31 }
0x1fea   :  { %4143 = vmatpush1.bf16.msra.mxu0 %v6857_v33  ;;  %4184 = vmatpush1.bf16.msra.mxu1 %v6860_v18 }
0x1feb   :  { %4144 = vmatprep.subr.bf16.mxu0 %v6863_v34  ;;  %4185 = vmatprep.subr.bf16.mxu1 %v6866_v19 }
0x1fec   :  { %4174 = vmatprep.mubr.bf16.mxu0 %v5748_v0  ;;  %4215 = vmatprep.mubr.bf16.mxu1 %v5748_v0 }
0x1fee   :  { %4145 = vmatpush1.bf16.msra.mxu0 %v6871_v35  ;;  %4186 = vmatpush1.bf16.msra.mxu1 %v6874_v36 }
0x1fef   :  { %4146 = vmatprep.subr.bf16.mxu0 %v6877_v37  ;;  %4187 = vmatprep.subr.bf16.mxu1 %v6880_v38 }
0x1ff2   :  { %4147 = vmatpush1.bf16.msra.mxu0 %v6883_v32  ;;  %4188 = vmatpush1.bf16.msra.mxu1 %v6886_v39 }
0x1ff3   :  { %4148 = vmatprep.subr.bf16.mxu0 %v6889_v50  ;;  %4189 = vmatprep.subr.bf16.mxu1 %v6892_v40 }
0x1ff6   :  { %4149 = vmatpush1.bf16.msra.mxu0 %v6895_v41  ;;  %4190 = vmatpush1.bf16.msra.mxu1 %v6898_v42 }
0x1ff7   :  { %4150 = vmatprep.subr.bf16.mxu0 %v6901_v43  ;;  %4191 = vmatprep.subr.bf16.mxu1 %v6904_v44 }
0x1ffa   :  { %4151 = vmatpush1.bf16.msra.mxu0 %v6907_v45  ;;  %4192 = vmatpush1.bf16.msra.mxu1 %v6910_v46 }
0x1ffb   :  { %4152 = vmatprep.subr.bf16.mxu0 %v6913_v55  ;;  %4193 = vmatprep.subr.bf16.mxu1 %v6916_v58 }
0x1ffe   :  { %4153 = vmatpush1.bf16.msra.mxu0 %v6919_v59  ;;  %4194 = vmatpush1.bf16.msra.mxu1 %v6922_v20 }
0x1fff   :  { %4154 = vmatprep.subr.bf16.mxu0 %v6925_v60  ;;  %4195 = vmatprep.subr.bf16.mxu1 %v6928_v61 }
0x2002   :  { %4155 = vmatpush1.bf16.msra.mxu0 %v6931_v63  ;;  %4196 = vmatpush1.bf16.msra.mxu1 %v6934_v1 }
0x2003   :  { %4156 = vmatprep.subr.bf16.mxu0 %v6937_v2  ;;  %4197 = vmatprep.subr.bf16.mxu1 %v6940_v28 }
0x2006   :  { %4157 = vmatpush1.bf16.msra.mxu0 %v6943_v49  ;;  %4198 = vmatpush1.bf16.msra.mxu1 %v6946_v26 }
0x2007   :  { %4369 = vmatprep.subr.bf16.mxu0 %v6949_v30  ;;  %4410 = vmatprep.subr.bf16.mxu1 %v6952_v24  ;;  %v4017_v24 = vld [vmem:[#allocation3 + $0x12] ss:$8 sm:$0x3] }
0x20bc   :  { %v3949_v8 = vpop.f32.mrb[60].mxu0  ;;  %v3990_v54 = vpop.f32.mrb[60].mxu1 }
0x20bd   :  { %v3951_v48 = vpop.f32.mrb[61].mxu0  ;;  %v3992_v51 = vpop.f32.mrb[61].mxu1 }
0x20be   :  { %v4000_v3 = vcombine.low %v3949_v8, %v3951_v48  ;;  %v4020_v16 = vcombine.low %v3990_v54, %v3992_v51  ;;  %v3953_v11 = vpop.f32.mrb[62].mxu0  ;;  %v3994_v15 = vpop.f32.mrb[62].mxu1  ;;  %v4064_v51 = vrot.slane %v3913_v12, %v6055_v14 }
0x20bf   :  { %v3954_v4 = vpop.f32.mrb[63].mxu0  ;;  %v3995_v62 = vpop.f32.mrb[63].mxu1 }
0x20c0   :  { %v4007_v5 = vrot.slane %v4000_v3, %v6055_v14  ;;  %v4027_v25 = vrot.slane %v4020_v16, %v6055_v14  ;;  %v4071_v16 = vrot.slane %v4064_v51, %v6055_v14 }
0x20c2   :  { %v4014_v6 = vrot.slane %v4007_v5, %v6055_v14  ;;  %v4034_v30 = vrot.slane %v4027_v25, %v6055_v14 }
0x20c4   :  { %v4016_v13 = vadd.f32 %v4014_v6, %v3997_v27  ;;  %v4036_v17 = vadd.f32 %v4034_v30, %v4017_v24 }
0x20c6   :  { %v4932_v21 = vmul.f32 -1.442695, %v4016_v13  ;;  %v4934_v23 = vmul.f32 -1.442695, %v4036_v17  ;;  %4098 = vrot.lane.b32.xlu1 %v4036_v17, %s5750_s3  ;;  %v4044_v22 = vrot.slane %v4016_v13, 1  ;;  %v4095_v29 = vrot.slane %v4036_v17, 1 }
0x20c8   :  { %5488 = vpow2.f32 %v4932_v21 }
0x20c9   :  { %5490 = vpow2.f32 %v4934_v23 }
0x20ca   :  { %5492 = vtanh.f32 %v4044_v22 }
0x20d2   :  { %v5489_v7 = vpop.eup %5488 }
0x20d3   :  { %v4040_v9 = vadd.f32 1.0, %v5489_v7  ;;  %v5491_v57 = vpop.eup %5490 }
0x20d4   :  { %v4091_v52 = vadd.f32 1.0, %v5491_v57  ;;  %v5493_v10 = vpop.eup %5492 }
0x20d5   :  { %5494 = vrcp.f32 %v4040_v9 }
0x20d6   :  { %5496 = vtanh.f32 %v4095_v29 }
0x20d7   :  { %5498 = vrcp.f32 %v4091_v52 }
0x20df   :  { %v5495_v47 = vpop.eup %5494 }
0x20e0   :  { %v5497_v8 = vpop.eup %5496  ;;  %v4076_v54 = vmul.f32 %v5495_v47, %v5493_v10 }
0x20e1   :  { %v5499_v48 = vpop.eup %5498 }
0x20e2   :  { %v4109_v3 = vmul.f32 %v5499_v48, %v5497_v8  ;;  %4078 = vrot.lane.b32.xlu1 %v4076_v54, %s5750_s3  ;;  %v4108_v11 = vmul.f32 %v5499_v48, %v3913_v12 }
0x20e4   :  { %4111 = vrot.lane.b32.xlu0 %v4109_v3, %s5750_s3 }
0x20e6   :  { %4047 = vrot.lane.b32.xlu1 %v4016_v13, %s5750_s3 }
0x20e8   :  { %4072 = vrot.lane.b32.xlu0 %v4071_v16, %s5750_s3 }
0x2138   :  { %v4099_v31 = vpop.permute.xlu1 %4098 }
0x2139   :  { %v4100_v13 = vrot.slane %v4099_v31, 1 }
0x213b   :  { %v4935_v21 = vmul.f32 -1.442695, %v4100_v13 }
0x2154   :  { %v4079_v25 = vpop.permute.xlu1 %4078 }
0x2156   :  { %v4112_v15 = vpop.permute.xlu0 %4111 }
0x2157   :  { %v7027_v4 = vadd.f32 %v4112_v15, %v4108_v11 }
0x2158   :  { %v4048_v17 = vpop.permute.xlu1 %4047 }
0x2159   :  { %5500 = vtanh.f32 %v7027_v4  ;;  %v4049_v23 = vrot.slane %v4048_v17, 1 }
0x215a   :  { %v4073_v62 = vpop.permute.xlu0 %4072 }
0x215b   :  { %v4075_v5 = vmul.f32 %v5495_v47, %v4073_v62  ;;  %v4933_v22 = vmul.f32 -1.442695, %v4049_v23 }
0x215d   :  { %v4081_v6 = vadd.f32 %v4079_v25, %v4075_v5 }
0x215f   :  { %5502 = vtanh.f32 %v4081_v6  ;;  %v4136_v24 = vrot.slane %v4081_v6, %v6039_v53 }
0x2160   :  { %5504 = vpow2.f32 %v4935_v21 }
0x2161   :  { %5506 = vpow2.f32 %v4933_v22 }
0x2163   :  { %v5501_v30 = vpop.eup %5500 }
0x2164   :  { %4117 = vrot.lane.b32.xlu0 %v5501_v30, %s5750_s3 }
0x2169   :  { %v5503_v27 = vpop.eup %5502 }
0x216a   :  { %4084 = vrot.lane.b32.xlu0 %v5503_v27, %s5750_s3  ;;  %v5505_v7 = vpop.eup %5504 }
0x216b   :  { %v4105_v29 = vadd.f32 1.0, %v5505_v7  ;;  %v5507_v9 = vpop.eup %5506 }
0x216c   :  { %v4054_v57 = vadd.f32 1.0, %v5507_v9 }
0x216d   :  { %5508 = vrcp.f32 %v4105_v29 }
0x216e   :  { %4137 = vrot.lane.b32.xlu0 %v4136_v24, %s5750_s3  ;;  %5510 = vrcp.f32 %v4054_v57 }
0x2177   :  { %v5509_v52 = vpop.eup %5508 }
0x2178   :  { %v5511_v12 = vpop.eup %5510 }
0x21d6   :  { %v4118_v56 = vpop.permute.xlu0 %4117 }
0x21d7   :  { %v4120_v10 = vmul.f32 %v5509_v52, %v4118_v56 }
0x21d9   :  { %v4126_v47 = vrot.slane %v4120_v10, %v6039_v53 }
0x21db   :  { %4127 = vrot.lane.b32.xlu1 %v4126_v47, %s5750_s3 }
0x21dc   :  { %v4085_v8 = vpop.permute.xlu0 %4084 }
0x21dd   :  { %v4087_v54 = vmul.f32 %v5511_v12, %v4085_v8  ;;  %v5751_v12 = vmov 0.0  }
0x21df   :  { %4121 = vst.msk [vmem:[#allocation2 + $0x5] sm:$0x1] %vm689_vm1, %v4087_v54 }
0x224d   :  { %v4128_v48 = vpop.permute.xlu1 %4127 }
0x224e   :  { %4130 = vst.msk [vmem:[#allocation2 + $0x2] sm:$0x1] %vm699_vm2, %v4128_v48  ;;  %v4131_v51 = vsel %vm218_vm0, %v4087_v54, %v4128_v48 }
0x224f   :  { %v4141_v3 = vpack.c.bf16 %v4131_v51, %v4131_v51 }
0x2251   :  { %4175 = vmatmul.mubr.bf16.vlgmr.msra.gmra.mrb[64].mxu0 %v4141_v3  ;;  %4216 = vmatmul.mubr.bf16.vlgmr.msra.gmra.mrb[64].mxu1 %v4141_v3 }
0x2252   :  { %4370 = vmatpush1.bf16.msra.mxu0 %v6857_v33  ;;  %4411 = vmatpush1.bf16.msra.mxu1 %v6860_v18 }
0x2253   :  { %4371 = vmatprep.subr.bf16.mxu0 %v6863_v34  ;;  %4412 = vmatprep.subr.bf16.mxu1 %v6866_v19 }
0x2254   :  { %4401 = vmatprep.mubr.bf16.mxu0 %v5748_v0  ;;  %4442 = vmatprep.mubr.bf16.mxu1 %v5748_v0 }
0x2256   :  { %4372 = vmatpush1.bf16.msra.mxu0 %v6871_v35  ;;  %4413 = vmatpush1.bf16.msra.mxu1 %v6874_v36 }
0x2257   :  { %4373 = vmatprep.subr.bf16.mxu0 %v6877_v37  ;;  %4414 = vmatprep.subr.bf16.mxu1 %v6880_v38 }
0x225a   :  { %4374 = vmatpush1.bf16.msra.mxu0 %v6883_v32  ;;  %4415 = vmatpush1.bf16.msra.mxu1 %v6886_v39 }
0x225b   :  { %4375 = vmatprep.subr.bf16.mxu0 %v6889_v50  ;;  %4416 = vmatprep.subr.bf16.mxu1 %v6892_v40 }
0x225e   :  { %4376 = vmatpush1.bf16.msra.mxu0 %v6895_v41  ;;  %4417 = vmatpush1.bf16.msra.mxu1 %v6898_v42  ;;  %v4224_v42 = vld [vmem:[#allocation3 + $0x6] ss:$8 sm:$0x3] }
0x225f   :  { %4377 = vmatprep.subr.bf16.mxu0 %v6901_v43  ;;  %4418 = vmatprep.subr.bf16.mxu1 %v6904_v44  ;;  %v4244_v43 = vld [vmem:[#allocation3 + $0x11] ss:$8 sm:$0x3] }
0x2262   :  { %4378 = vmatpush1.bf16.msra.mxu0 %v6907_v45  ;;  %4419 = vmatpush1.bf16.msra.mxu1 %v6910_v46 }
0x2263   :  { %4379 = vmatprep.subr.bf16.mxu0 %v6913_v55  ;;  %4420 = vmatprep.subr.bf16.mxu1 %v6916_v58 }
0x2266   :  { %4380 = vmatpush1.bf16.msra.mxu0 %v6919_v59  ;;  %4421 = vmatpush1.bf16.msra.mxu1 %v6922_v20 }
0x2267   :  { %4381 = vmatprep.subr.bf16.mxu0 %v6925_v60  ;;  %4422 = vmatprep.subr.bf16.mxu1 %v6928_v61 }
0x226a   :  { %4382 = vmatpush1.bf16.msra.mxu0 %v6931_v63  ;;  %4423 = vmatpush1.bf16.msra.mxu1 %v6934_v1  ;;  %v4138_v1 = vpop.permute.xlu0 %4137 }
0x226b   :  { %4383 = vmatprep.subr.bf16.mxu0 %v6937_v2  ;;  %4424 = vmatprep.subr.bf16.mxu1 %v6940_v28 }
0x226e   :  { %4384 = vmatpush1.bf16.msra.mxu0 %v6943_v49  ;;  %4425 = vmatpush1.bf16.msra.mxu1 %v6946_v26  ;;  %v4140_v49 = vsel %vm218_vm0, %v4138_v1, %v7027_v4  ;;  %v4471_v1 = vld [vmem:[#allocation3 + $0x10] ss:$8 sm:$0x3] }
0x226f   :  { %v4291_v15 = vrot.slane %v4140_v49, %v6055_v14  ;;  %4964 = vmatprep.subr.bf16.mxu0 %v5751_v12  ;;  %4976 = vmatprep.subr.bf16.mxu1 %v5751_v12 }
0x2271   :  { %v4298_v62 = vrot.slane %v4291_v15, %v6055_v14 }
0x2324   :  { %v4176_v0 = vpop.f32.mrb[64].mxu0  ;;  %v4217_v33 = vpop.f32.mrb[64].mxu1 }
0x2325   :  { %v4178_v18 = vpop.f32.mrb[65].mxu0  ;;  %v4219_v34 = vpop.f32.mrb[65].mxu1 }
0x2326   :  { %v4227_v19 = vcombine.low %v4176_v0, %v4178_v18  ;;  %v4247_v35 = vcombine.low %v4217_v33, %v4219_v34  ;;  %v4180_v36 = vpop.f32.mrb[66].mxu0  ;;  %v4221_v37 = vpop.f32.mrb[66].mxu1 }
0x2327   :  { %v4181_v38 = vpop.f32.mrb[67].mxu0  ;;  %v4222_v32 = vpop.f32.mrb[67].mxu1  ;;  %v5169_v36 = vld [vmem:[%s7181_s8 + $0x8] sm:$0xff]   ;;  %v5170_v37 = vld [vmem:[%s7181_s8 + $0x10] sm:$0xff]  }
0x2328   :  { %v4234_v39 = vrot.slane %v4227_v19, %v6055_v14  ;;  %v4254_v50 = vrot.slane %v4247_v35, %v6055_v14  ;;  %v5168_v19 = vld [vmem:[%s7181_s8] sm:$0xff]   ;;  %v5171_v38 = vld [vmem:[%s7181_s8 + $0x18] sm:$0xff]  }
0x2329   :  { %v4585_v32 = vld [vmem:[%s7180_s7] sm:$0x1] }
0x232a   :  { %v4241_v40 = vrot.slane %v4234_v39, %v6055_v14  ;;  %v4261_v41 = vrot.slane %v4254_v50, %v6055_v14  ;;  %v4586_v39 = vpack.c.bf16 %v4585_v32, %v4585_v32 }
0x232c   :  { %v4243_v44 = vadd.f32 %v4241_v40, %v4224_v42  ;;  %v4263_v45 = vadd.f32 %v4261_v41, %v4244_v43 }
0x232e   :  { %v4936_v46 = vmul.f32 -1.442695, %v4243_v44  ;;  %v4938_v55 = vmul.f32 -1.442695, %v4263_v45  ;;  %4325 = vrot.lane.b32.xlu0 %v4263_v45, %s5750_s3  ;;  %v4271_v58 = vrot.slane %v4243_v44, 1  ;;  %v4322_v20 = vrot.slane %v4263_v45, 1 }
0x2330   :  { %5512 = vpow2.f32 %v4936_v46 }
0x2331   :  { %5514 = vpow2.f32 %v4938_v55 }
0x2332   :  { %5516 = vtanh.f32 %v4271_v58 }
0x233a   :  { %v5513_v59 = vpop.eup %5512 }
0x233b   :  { %v4267_v60 = vadd.f32 1.0, %v5513_v59  ;;  %v5515_v61 = vpop.eup %5514 }
0x233c   :  { %v4318_v63 = vadd.f32 1.0, %v5515_v61  ;;  %v5517_v2 = vpop.eup %5516 }
0x233d   :  { %5518 = vrcp.f32 %v4267_v60 }
0x233e   :  { %5520 = vtanh.f32 %v4322_v20 }
0x233f   :  { %5522 = vrcp.f32 %v4318_v63  ;;  %v4451_v63 = vld [vmem:[#allocation3 + $0x7] ss:$8 sm:$0x3] }
0x2347   :  { %v5519_v28 = vpop.eup %5518 }
0x2348   :  { %v5521_v26 = vpop.eup %5520  ;;  %v4303_v16 = vmul.f32 %v5519_v28, %v5517_v2 }
0x2349   :  { %v5523_v11 = vpop.eup %5522 }
0x234a   :  { %v4336_v31 = vmul.f32 %v5523_v11, %v5521_v26  ;;  %4305 = vrot.lane.b32.xlu0 %v4303_v16, %s5750_s3  ;;  %v4335_v5 = vmul.f32 %v5523_v11, %v4140_v49 }
0x234c   :  { %4338 = vrot.lane.b32.xlu1 %v4336_v31, %s5750_s3 }
0x234e   :  { %4274 = vrot.lane.b32.xlu0 %v4243_v44, %s5750_s3 }
0x2350   :  { %4299 = vrot.lane.b32.xlu1 %v4298_v62, %s5750_s3 }
0x23a0   :  { %v4326_v4 = vpop.permute.xlu0 %4325 }
0x23a1   :  { %v4327_v22 = vrot.slane %v4326_v4, 1 }
0x23a3   :  { %v4939_v29 = vmul.f32 -1.442695, %v4327_v22 }
0x23bc   :  { %v4306_v24 = vpop.permute.xlu0 %4305 }
0x23be   :  { %v4339_v25 = vpop.permute.xlu1 %4338 }
0x23bf   :  { %v7084_v6 = vadd.f32 %v4339_v25, %v4335_v5 }
0x23c0   :  { %v4275_v7 = vpop.permute.xlu0 %4274 }
0x23c1   :  { %5524 = vtanh.f32 %v7084_v6  ;;  %v4276_v9 = vrot.slane %v4275_v7, 1 }
0x23c2   :  { %v4300_v30 = vpop.permute.xlu1 %4299 }
0x23c3   :  { %v4302_v27 = vmul.f32 %v5519_v28, %v4300_v30  ;;  %v4937_v57 = vmul.f32 -1.442695, %v4276_v9 }
0x23c5   :  { %v4308_v13 = vadd.f32 %v4306_v24, %v4302_v27 }
0x23c7   :  { %5526 = vtanh.f32 %v4308_v13  ;;  %v4363_v23 = vrot.slane %v4308_v13, %v6039_v53 }
0x23c8   :  { %5528 = vpow2.f32 %v4939_v29  ;;  %v5173_v29 = vld [vmem:[%s7183_s10 + $0x8] sm:$0xff]  }
0x23c9   :  { %5530 = vpow2.f32 %v4937_v57 }
0x23cb   :  { %v5525_v17 = vpop.eup %5524 }
0x23cc   :  { %4344 = vrot.lane.b32.xlu1 %v5525_v17, %s5750_s3 }
0x23d1   :  { %v5527_v21 = vpop.eup %5526 }
0x23d2   :  { %4311 = vrot.lane.b32.xlu1 %v5527_v21, %s5750_s3  ;;  %v5529_v52 = vpop.eup %5528 }
0x23d3   :  { %v4332_v56 = vadd.f32 1.0, %v5529_v52  ;;  %v5531_v10 = vpop.eup %5530 }
0x23d4   :  { %v4281_v47 = vadd.f32 1.0, %v5531_v10 }
0x23d5   :  { %5532 = vrcp.f32 %v4332_v56  ;;  %v4595_v56 = vld [vmem:[%s7182_s9] sm:$0x1] }
0x23d6   :  { %4364 = vrot.lane.b32.xlu1 %v4363_v23, %s5750_s3  ;;  %5534 = vrcp.f32 %v4281_v47  ;;  %v5175_v47 = vld [vmem:[%s7183_s10 + $0x18] sm:$0xff]  }
0x23df   :  { %v5533_v8 = vpop.eup %5532 }
0x23e0   :  { %v5535_v3 = vpop.eup %5534 }
0x243e   :  { %v4345_v54 = vpop.permute.xlu1 %4344 }
0x243f   :  { %v4347_v48 = vmul.f32 %v5533_v8, %v4345_v54 }
0x2441   :  { %v4353_v51 = vrot.slane %v4347_v48, %v6039_v53 }
0x2443   :  { %4354 = vrot.lane.b32.xlu0 %v4353_v51, %s5750_s3 }
0x2444   :  { %v4312_v0 = vpop.permute.xlu1 %4311 }
0x2445   :  { %v4314_v33 = vmul.f32 %v5535_v3, %v4312_v0 }
0x2447   :  { %4348 = vst.msk [vmem:[#allocation2 + $0x6] sm:$0x1] %vm689_vm1, %v4314_v33 }
0x2448   :  { %v4365_v25 = vpop.permute.xlu1 %4364 }
0x2449   :  { %v4367_v27 = vsel %vm218_vm0, %v4365_v25, %v7084_v6  ;;  %v5172_v6 = vld [vmem:[%s7183_s10] sm:$0xff]  }
0x244a   :  { %v4518_v21 = vrot.slane %v4367_v27, %v6055_v14 }
0x244c   :  { %v4525_v22 = vrot.slane %v4518_v21, %v6055_v14 }
0x24b5   :  { %v4355_v18 = vpop.permute.xlu0 %4354 }
0x24b6   :  { %4357 = vst.msk [vmem:[#allocation2 + $0x1] sm:$0x1] %vm699_vm2, %v4355_v18  ;;  %v4358_v34 = vsel %vm218_vm0, %v4314_v33, %v4355_v18 }
0x24b7   :  { %v4368_v35 = vpack.c.bf16 %v4358_v34, %v4358_v34 }
0x24b9   :  { %4402 = vmatmul.mubr.bf16.vlgmr.msra.gmra.mrb[68].mxu0 %v4368_v35  ;;  %4443 = vmatmul.mubr.bf16.vlgmr.msra.gmra.mrb[68].mxu1 %v4368_v35 }
0x24ba   :  { %4965 = vmatpush3.bf16.msra.mxu0 %v5168_v19  ;;  %4972 = vmatprep.mubr.msk.bf16.mxu0 %vm5752_vm3, %v5751_v12 }
0x24bb   :  { %4966 = vmatprep.subr.bf16.mxu0 %v5751_v12  ;;  %4984 = vmatprep.mubr.msk.bf16.mxu1 %vm5752_vm3, %v5751_v12 }
0x24bc   :  { %4977 = vmatpush3.bf16.msra.mxu1 %v5172_v6 }
0x24bd   :  { %4978 = vmatprep.subr.bf16.mxu1 %v5751_v12 }
0x24be   :  { %4967 = vmatpush3.bf16.msra.mxu0 %v5169_v36 }
0x24bf   :  { %4968 = vmatprep.subr.bf16.mxu0 %v5751_v12 }
0x24c0   :  { %4979 = vmatpush3.bf16.msra.mxu1 %v5173_v29 }
0x24c1   :  { %4980 = vmatprep.subr.bf16.mxu1 %v5751_v12 }
0x24c2   :  { %4969 = vmatpush3.bf16.msra.mxu0 %v5170_v37 }
0x24c3   :  { %4970 = vmatprep.subr.bf16.mxu0 %v5751_v12 }
0x24c6   :  { %4971 = vmatpush3.bf16.msra.mxu0 %v5171_v38 }
0x24c9   :  { %4973 = vmatmul.mubr.msk.bf16.vlgmr.msra.gmra.mrb[72].mxu0 %vm218_vm0, %v4586_v39 }
0x258c   :  { %v4403_v50 = vpop.f32.mrb[68].mxu0  ;;  %v4444_v40 = vpop.f32.mrb[68].mxu1 }
0x258d   :  { %v4405_v41 = vpop.f32.mrb[69].mxu0  ;;  %v4446_v42 = vpop.f32.mrb[69].mxu1 }
0x258e   :  { %v4454_v43 = vcombine.low %v4403_v50, %v4405_v41  ;;  %v4474_v44 = vcombine.low %v4444_v40, %v4446_v42  ;;  %v4407_v45 = vpop.f32.mrb[70].mxu0  ;;  %v4448_v46 = vpop.f32.mrb[70].mxu1  ;;  %v4672_v41 = vld [vmem:[%s7184_s11] sm:$0x1]  ;;  %s5753_s11 = smov [#allocation12]  }
0x258f   :  { %v4408_v55 = vpop.f32.mrb[71].mxu0  ;;  %v4449_v58 = vpop.f32.mrb[71].mxu1  ;;  %s4755_s5 = sshll.u32 %s5753_s11, 4  ;;  %s4756_s5 = int_to_ptr.vmem [resolvable:$true] %s4755_s5 }
0x2590   :  { %v4461_v59 = vrot.slane %v4454_v43, %v6055_v14  ;;  %v4481_v20 = vrot.slane %v4474_v44, %v6055_v14  ;;  %s5712_s15 = scalar_lea.vmem %s4756_s5, 256  ;;  %p5717_p5 = scmp.lt.s32.totalorder %s4756_s5, %s4756_s5 }
0x2591   :  { %p5713_p4 = scmp.ne.s32.totalorder %s4756_s5, %s5712_s15  ;;  %p5718_p6 = scmp.lt.s32.totalorder %s5712_s15, %s5712_s15 }
0x2592   :  { %v4468_v60 = vrot.slane %v4461_v59, %v6055_v14  ;;  %v4488_v61 = vrot.slane %v4481_v20, %v6055_v14  ;;  %v5174_v14 = vld [vmem:[%s7183_s10 + $0x10] sm:$0xff]  }
0x2593   :  { %4981 = vmatpush3.bf16.msra.mxu1 %v5174_v14  ;;  %p5719_p7 = por %p5718_p6, %p5717_p5 }
0x2594   :  { %v4470_v2 = vadd.f32 %v4468_v60, %v4451_v63  ;;  %v4490_v28 = vadd.f32 %v4488_v61, %v4471_v1  ;;  %4982 = vmatprep.subr.bf16.mxu1 %v5751_v12 }
0x2595   :  { %p5720_p8 = pnand %p5719_p7, %p5713_p4 }
0x2596   :  { %v4940_v49 = vmul.f32 -1.442695, %v4470_v2  ;;  %v4942_v26 = vmul.f32 -1.442695, %v4490_v28  ;;  %4552 = vrot.lane.b32.xlu1 %v4490_v28, %s5750_s3  ;;  %v4498_v16 = vrot.slane %v4470_v2, 1  ;;  %v4549_v15 = vrot.slane %v4490_v28, 1 }
0x2597   :  { %4983 = vmatpush3.bf16.msra.mxu1 %v5175_v47 }
0x2598   :  { %5536 = vpow2.f32 %v4940_v49 }
0x2599   :  { %5538 = vpow2.f32 %v4942_v26 }
0x259a   :  { %5540 = vtanh.f32 %v4498_v16 }
0x259c   :  { %v4657_v7 = vpop.f32.mrb[72].mxu0 }
0x259d   :  { %v4974_v9 = vpop.f32.mrb[73].mxu0  ;;  %v4658_v10 = vadd.f32 %v4657_v7, %v4595_v56 }
0x259e   :  { %v4660_v57 = vpop.f32.mrb[74].mxu0 }
0x259f   :  { %v4975_v52 = vpop.f32.mrb[75].mxu0  ;;  %v4663_v8 = vpack.c.bf16 %v4658_v10, %v4658_v10 }
0x25a1   :  { %4985 = vmatmul.mubr.msk.bf16.vlgmr.msra.gmra.mrb[72].mxu1 %vm218_vm0, %v4663_v8 }
0x25a2   :  { %v5537_v11 = vpop.eup %5536 }
0x25a3   :  { %v4494_v31 = vadd.f32 1.0, %v5537_v11  ;;  %v5539_v62 = vpop.eup %5538 }
0x25a4   :  { %v4545_v5 = vadd.f32 1.0, %v5539_v62  ;;  %v5541_v4 = vpop.eup %5540 }
0x25a5   :  { %5542 = vrcp.f32 %v4494_v31 }
0x25a6   :  { %5544 = vtanh.f32 %v4549_v15 }
0x25a7   :  { %5546 = vrcp.f32 %v4545_v5 }
0x25af   :  { %v5543_v30 = vpop.eup %5542 }
0x25b0   :  { %v5545_v24 = vpop.eup %5544  ;;  %v4530_v13 = vmul.f32 %v5543_v30, %v5541_v4 }
0x25b1   :  { %v5547_v17 = vpop.eup %5546 }
0x25b2   :  { %v4563_v23 = vmul.f32 %v5547_v17, %v5545_v24  ;;  %4532 = vrot.lane.b32.xlu1 %v4530_v13, %s5750_s3  ;;  %v4562_v54 = vmul.f32 %v5547_v17, %v4367_v27 }
0x25b4   :  { %4565 = vrot.lane.b32.xlu0 %v4563_v23, %s5750_s3 }
0x25b6   :  { %4501 = vrot.lane.b32.xlu1 %v4470_v2, %s5750_s3 }
0x25b8   :  { %4526 = vrot.lane.b32.xlu0 %v4525_v22, %s5750_s3 }
0x2608   :  { %v4553_v3 = vpop.permute.xlu1 %4552 }
0x2609   :  { %v4554_v12 = vrot.slane %v4553_v3, 1 }
0x260b   :  { %v4943_v37 = vmul.f32 -1.442695, %v4554_v12 }
0x2624   :  { %v4533_v18 = vpop.permute.xlu1 %4532 }
0x2626   :  { %v4566_v48 = vpop.permute.xlu0 %4565 }
0x2627   :  { %v4568_v51 = vadd.f32 %v4566_v48, %v4562_v54 }
0x2628   :  { %v4502_v36 = vpop.permute.xlu1 %4501 }
0x2629   :  { %5548 = vtanh.f32 %v4568_v51  ;;  %v4503_v38 = vrot.slane %v4502_v36, 1 }
0x262a   :  { %v4527_v0 = vpop.permute.xlu0 %4526 }
0x262b   :  { %v4529_v33 = vmul.f32 %v5543_v30, %v4527_v0  ;;  %v4941_v32 = vmul.f32 -1.442695, %v4503_v38 }
0x262d   :  { %v4535_v34 = vadd.f32 %v4533_v18, %v4529_v33 }
0x262f   :  { %5550 = vtanh.f32 %v4535_v34 }
0x2630   :  { %5552 = vpow2.f32 %v4943_v37 }
0x2631   :  { %5554 = vpow2.f32 %v4941_v32 }
0x2633   :  { %v5549_v19 = vpop.eup %5548 }
0x2634   :  { %4571 = vrot.lane.b32.xlu0 %v5549_v19, %s5750_s3 }
0x2639   :  { %v5551_v35 = vpop.eup %5550 }
0x263a   :  { %4538 = vrot.lane.b32.xlu0 %v5551_v35, %s5750_s3  ;;  %v5553_v39 = vpop.eup %5552 }
0x263b   :  { %v4559_v50 = vadd.f32 1.0, %v5553_v39  ;;  %v5555_v40 = vpop.eup %5554 }
0x263c   :  { %v4508_v43 = vadd.f32 1.0, %v5555_v40 }
0x263d   :  { %5556 = vrcp.f32 %v4559_v50 }
0x263e   :  { %5558 = vrcp.f32 %v4508_v43 }
0x2647   :  { %v5557_v20 = vpop.eup %5556 }
0x2648   :  { %v5559_v1 = vpop.eup %5558 }
0x2674   :  { %v4734_v42 = vpop.f32.mrb[72].mxu1 }
0x2675   :  { %v4735_v44 = vadd.f32 %v4734_v42, %v4672_v41  ;;  %v4986_v45 = vpop.f32.mrb[73].mxu1 }
0x2676   :  { %v4737_v46 = vpop.f32.mrb[74].mxu1 }
0x2677   :  { %v4740_v55 = vmax.f32 %v4735_v44, 0.0  ;;  %v4987_v58 = vpop.f32.mrb[75].mxu1 }
0x2679   :  { %v4746_v59 = vrot.slane %v4740_v55, %v6039_v53 }
0x267b   :  { %4748 = vst.msk [vmem:[#allocation12 + $0x8] sm:$0xff] %vm4747_vm4, %v4746_v59 }
0x26a6   :  { %v4572_v60 = vpop.permute.xlu0 %4571 }
0x26a7   :  { %v4574_v61 = vmul.f32 %v5557_v20, %v4572_v60 }
0x26a9   :  { %v4580_v63 = vrot.slane %v4574_v61, %v6039_v53 }
0x26ab   :  { %4581 = vrot.lane.b32.xlu1 %v4580_v63, %s5750_s3 }
0x26ac   :  { %v4539_v2 = vpop.permute.xlu0 %4538 }
0x26ad   :  { %v4541_v28 = vmul.f32 %v5559_v1, %v4539_v2 }
0x26af   :  { %4575 = vst.msk [vmem:[#allocation2 + $0x7] sm:$0x1] %vm689_vm1, %v4541_v28 }
0x271d   :  { %v4582_v49 = vpop.permute.xlu1 %4581 }
0x271e   :  { %4584 = vst.msk [vmem:[#allocation2] sm:$0x1] %vm699_vm2, %v4582_v49 }
0x2725   :  { %v4741_v26 = vld [vmem:[#allocation2] sm:$0xff] }
0x2726   :  { %4742 = vst [vmem:[#allocation12] sm:$0xff] %v4741_v26 }
0x2727   :  { %5723 = shalt.err (!%p5720_p8)
}
0x2728   :  { %s5724_s3 = scalar_lea.hbm %s7185_s12, 256 }
0x2729   :  { %p5725_p9 = scmp.ne.s32.totalorder %s7185_s12, %s5724_s3  ;;  %p5728_p10 = scmp.lt.u32.totalorder %s5724_s3, %s7185_s12 }
0x272b   :  { %p5730_p11 = pnand %p5728_p10, %p5725_p9 }
0x272d   :  { %5733 = shalt.err (!%p5730_p11)
}
0x272e   :  { %4758 = dma.vmem_to_hbm [thread:$0]  %s4756_s5, 256, %s7185_s12, [#allocation6]  }
0x272f   :  { %5740 = dma.done.wait [#allocation6], 256  }
0x2730   :  { %5741 = vsyncadd [#allocation6], 4294967040 }
0x2731   :  { %4762 = vsyncpa [#allocation5], 1 }
0x2732   :  { %4763 = vsyncpa [#allocation8], 1 }
0x2733   :  { %4764 = vsyncpa [#allocation11], 1 }
0x2734   :  { %4765 = vsyncpa [#allocation6], 1 }

</bundles_post_ra>
